<compile_context>
chip_gen: v5e
topology: v5e:2x2
jax: 0.10.0
libtpu: 0.0.40
codegen_flags: <defaults>
</compile_context>

<pallas_src>
import jax
import jax.numpy as jnp
from jax import lax
from jax.experimental import pallas as pl
from jax.experimental.pallas import tpu as pltpu

HIDDEN1 = 3072
HIDDEN2 = 1024
EPS = 1e-12  # torch.nn.functional.normalize default eps


def _round_up(a, m):
    return ((a + m - 1) // m) * m


def _cdiv(a, b):
    return -(-a // b)


def _mlp_kernel(x_ref, w1_ref, b1_ref, w2_ref, b2_ref, w3_ref, b3_ref,
                o_ref, acc_ref):
    """Grid = (batch_tile i [parallel], HIDDEN1 chunk k [arbitrary])."""
    k = pl.program_id(1)

    @pl.when(k == 0)
    def _():
        acc_ref[...] = jnp.zeros_like(acc_ref)

    # Layer 1 (chunk of HIDDEN1) + ReLU, then partial layer-2 contraction.
    x = x_ref[...].astype(jnp.bfloat16)
    h1 = jnp.dot(x, w1_ref[...], preferred_element_type=jnp.float32) + b1_ref[...]
    h1 = jnp.maximum(h1, 0.0).astype(jnp.bfloat16)
    acc_ref[...] += jnp.dot(h1, w2_ref[...], preferred_element_type=jnp.float32)

    @pl.when(k == pl.num_programs(1) - 1)
    def _():
        # Layer 2 bias + ReLU, layer 3, L2-normalize along dim=1.
        h2 = jnp.maximum(acc_ref[...] + b2_ref[...], 0.0).astype(jnp.bfloat16)
        y = jnp.dot(h2, w3_ref[...], preferred_element_type=jnp.float32) + b3_ref[...]
        sumsq = jnp.sum(y * y, axis=1, keepdims=True)
        inv = lax.rsqrt(jnp.maximum(sumsq, EPS * EPS))  # EUP, off the VALU
        o_ref[...] = (y * inv).astype(o_ref.dtype)


def fully_connected_forward(x, params, *, tb=256, tk=768):
    """x: (B, D) f32. params: (w1,b1,w2,b2,w3,b3) with weights (in,out) bf16,
    biases (1,out) f32. Returns (B, O) f32, rows L2-normalized."""
    w1, b1, w2, b2, w3, b3 = params
    B, D = x.shape
    O = w3.shape[1]
    assert w1.shape == (D, HIDDEN1) and w2.shape == (HIDDEN1, HIDDEN2)
    assert HIDDEN1 % tk == 0, "HIDDEN1 chunk must divide 3072"
    n_k = HIDDEN1 // tk

    # Batch tile: >= 2 tiles whenever B > 8 so the "parallel" batch axis can
    # shard across both v7x TensorCores; capped at tb (256 == v6e/v7x MXU).
    if B > 8:
        TB = min(tb, _round_up(_cdiv(B, 2), 8))
    else:
        TB = max(8, _round_up(B, 8))
    n_b = _cdiv(B, TB)
    B_pad = n_b * TB
    if B_pad != B:
        x = jnp.pad(x, ((0, B_pad - B), (0, 0)))

    # Pad output lane dim to a multiple of 128 -> unmasked lane-dense stores.
    # Zero weight/bias columns give zero outputs that don't affect the row norm.
    O_pad = max(128, _round_up(O, 128))
    if O_pad != O:
        w3 = jnp.pad(w3, ((0, 0), (0, O_pad - O)))
        b3 = jnp.pad(b3, ((0, 0), (0, O_pad - O)))

    # ---- VMEM budget (generation-aware cap, honest per-buffer accounting) ----
    try:
        vmem_cap = int(pltpu.get_tpu_info().vmem_capacity_bytes)
    except Exception:
        vmem_cap = 64 << 20  # conservative (v7x-sized) fallback
    vmem_budget = (3 * vmem_cap) // 4  # ~48 MiB on v7x, ~96 MiB on v5e/v6e

    w_itemsize = jnp.dtype(w1.dtype).itemsize
    stream_w_bytes = 2 * (D * tk + tk * HIDDEN2) * w_itemsize     # double-buffered chunks
    resident_w_bytes = 2 * (HIDDEN2 * O_pad) * w_itemsize         # w3 (constant index)
    bias_bytes = 2 * (tk + HIDDEN2 + O_pad) * 4
    io_bytes = 2 * (TB * D + TB * O_pad) * 4                      # x / out tiles
    acc_bytes = TB * HIDDEN2 * 4                                  # f32 accumulator scratch
    # bf16 copies of x/h1/h2 plus f32 h1 / partial dot / y / normalize temps.
    act_bytes = TB * (2 * D + 6 * tk + 6 * HIDDEN2 + 8 * O_pad)
    vmem_need = (stream_w_bytes + resident_w_bytes + bias_bytes + io_bytes +
                 acc_bytes + act_bytes)
    vmem_limit = int(min(vmem_need + (8 << 20), vmem_budget))

    # Advisory cost: weights are re-streamed once per batch tile.
    flops = 2 * B_pad * (D * HIDDEN1 + HIDDEN1 * HIDDEN2 + HIDDEN2 * O_pad)
    bytes_accessed = (n_b * (D * HIDDEN1 + HIDDEN1 * HIDDEN2 + HIDDEN2 * O_pad) * w_itemsize
                      + (HIDDEN1 + HIDDEN2 + O_pad) * 4
                      + (B_pad * D + B_pad * O_pad) * 4)

    out = pl.pallas_call(
        _mlp_kernel,
        out_shape=jax.ShapeDtypeStruct((B_pad, O_pad), jnp.float32),
        grid=(n_b, n_k),
        in_specs=[
            pl.BlockSpec((TB, D), lambda i, k: (i, 0)),            # x: batch-tiled, k-resident
            pl.BlockSpec((D, tk), lambda i, k: (0, k)),            # w1: column chunk k
            pl.BlockSpec((1, tk), lambda i, k: (0, k)),            # b1: chunk k
            pl.BlockSpec((tk, HIDDEN2), lambda i, k: (k, 0)),      # w2: row chunk k
            pl.BlockSpec((1, HIDDEN2), lambda i, k: (0, 0)),       # b2: resident
            pl.BlockSpec((HIDDEN2, O_pad), lambda i, k: (0, 0)),   # w3: resident
            pl.BlockSpec((1, O_pad), lambda i, k: (0, 0)),         # b3: resident
        ],
        out_specs=pl.BlockSpec((TB, O_pad), lambda i, k: (i, 0)),
        scratch_shapes=[pltpu.VMEM((TB, HIDDEN2), jnp.float32)],
        compiler_params=pltpu.CompilerParams(
            dimension_semantics=("parallel", "arbitrary"),
            vmem_limit_bytes=vmem_limit,
        ),
        cost_estimate=pl.CostEstimate(
            flops=flops, transcendentals=B_pad, bytes_accessed=bytes_accessed),
    )(x, w1, b1, w2, b2, w3, b3)

    return out[:B, :O]


def init_params(key, input_size, output_size):
    """Synthetic init matching the module's shapes.
    linear1: (input_size -> 3072), linear2: (3072 -> 1024),
    output_layer: (1024 -> output_size). Weights: xavier-uniform, stored bf16
    (storage/streaming optimization; math accumulates in f32). Biases: f32,
    U(-1/sqrt(fan_in), 1/sqrt(fan_in)) like PyTorch's default, kept 2D (1,out)."""
    ks = jax.random.split(key, 6)

    def xavier(k, fan_in, fan_out):
        bound = jnp.sqrt(6.0 / (fan_in + fan_out))
        w = jax.random.uniform(k, (fan_in, fan_out), jnp.float32, -bound, bound)
        return w.astype(jnp.bfloat16)

    def bias(k, fan_in, fan_out):
        bound = 1.0 / jnp.sqrt(fan_in)
        return jax.random.uniform(k, (1, fan_out), jnp.float32, -bound, bound)

    w1 = xavier(ks[0], input_size, HIDDEN1)
    b1 = bias(ks[1], input_size, HIDDEN1)
    w2 = xavier(ks[2], HIDDEN1, HIDDEN2)
    b2 = bias(ks[3], HIDDEN1, HIDDEN2)
    w3 = xavier(ks[4], HIDDEN2, output_size)
    b3 = bias(ks[5], HIDDEN2, output_size)
    return (w1, b1, w2, b2, w3, b3)


def reference_forward(x, params):
    """Pure-JAX reference with the same mixed precision as the kernel."""
    w1, b1, w2, b2, w3, b3 = params
    xb = x.astype(jnp.bfloat16)
    h1 = jnp.maximum(jnp.dot(xb, w1, preferred_element_type=jnp.float32) + b1, 0.0)
    h1 = h1.astype(jnp.bfloat16)
    h2 = jnp.maximum(jnp.dot(h1, w2, preferred_element_type=jnp.float32) + b2, 0.0)
    h2 = h2.astype(jnp.bfloat16)
    y = jnp.dot(h2, w3, preferred_element_type=jnp.float32) + b3
    norm = jnp.sqrt(jnp.sum(y * y, axis=1, keepdims=True))
    return y / jnp.maximum(norm, EPS)


if __name__ == "__main__":
    key = jax.random.PRNGKey(0)
    k_params, k_x = jax.random.split(key)

    batch = 8
    input_size = 256
    output_size = 128

    params = init_params(k_params, input_size, output_size)
    x = jax.random.normal(k_x, (batch, input_size), dtype=jnp.float32)

    out = fully_connected_forward(x, params)
    out = jax.block_until_ready(out)

    ref = reference_forward(x, params)
    assert out.shape == (batch, output_size)
    # Same mixed-precision math as the kernel (only f32 summation order differs).
    assert jnp.allclose(out, ref, atol=2e-3, rtol=2e-3), "mismatch vs reference"
    # Rows should be unit-norm (normalize(dim=1)).
    assert jnp.allclose(jnp.linalg.norm(out, axis=1), 1.0, atol=1e-3)

    print("KERNEL_OK")
</pallas_src>

<mosaic_0001>
module attributes {stable_mosaic.version = 11 : i64} {
  func.func @_mlp_kernel(%arg0: i32, %arg1: i32, %arg2: memref<8x256xf32, #tpu.memory_space<vmem>>, %arg3: memref<256x768xbf16, #tpu.memory_space<vmem>>, %arg4: memref<1x768xf32, #tpu.memory_space<vmem>>, %arg5: memref<768x1024xbf16, #tpu.memory_space<vmem>>, %arg6: memref<1x1024xf32, #tpu.memory_space<vmem>>, %arg7: memref<1024x128xbf16, #tpu.memory_space<vmem>>, %arg8: memref<1x128xf32, #tpu.memory_space<vmem>>, %arg9: memref<8x128xf32, #tpu.memory_space<vmem>>, %arg10: memref<8x1024xf32, #tpu.memory_space<vmem>>) attributes {dimension_semantics = [#tpu.dimension_semantics<parallel>, #tpu.dimension_semantics<arbitrary>], iteration_bounds = array<i64: 1, 4>, scalar_prefetch = 0 : i64, scratch_operands = 1 : i64, tpu.core_type = #tpu.core_type<tc>, window_params = [{transform_indices = @transform_0, window_bounds = array<i64: 8, 256>}, {transform_indices = @transform_1, window_bounds = array<i64: 256, 768>}, {transform_indices = @transform_2, window_bounds = array<i64: 1, 768>}, {transform_indices = @transform_3, window_bounds = array<i64: 768, 1024>}, {pipeline_mode = #tpu.pipeline_mode<synchronous>, transform_indices = @transform_4, window_bounds = array<i64: 1, 1024>}, {pipeline_mode = #tpu.pipeline_mode<synchronous>, transform_indices = @transform_5, window_bounds = array<i64: 1024, 128>}, {pipeline_mode = #tpu.pipeline_mode<synchronous>, transform_indices = @transform_6, window_bounds = array<i64: 1, 128>}, {transform_indices = @transform_7, window_bounds = array<i64: 8, 128>}]} {
    %c0_i32 = arith.constant 0 : i32
    %0 = arith.cmpi eq, %arg1, %c0_i32 : i32
    %1 = arith.extui %0 : i1 to i32
    %c0_i32_0 = arith.constant 0 : i32
    %2 = arith.cmpi ne, %1, %c0_i32_0 : i32
    scf.if %2 {
      %cst_15 = arith.constant 0.000000e+00 : f32
      %21 = vector.broadcast %cst_15 : f32 to vector<8x1024xf32>
      %c0_16 = arith.constant 0 : index
      %c0_17 = arith.constant 0 : index
      %22 = vector.load %arg10[%c0_16, %c0_17] : memref<8x1024xf32, #tpu.memory_space<vmem>>, vector<8x1024xf32>
      tpu.vector_store %arg10[%c0_16, %c0_17], %21 {strides = array<i32>} : memref<8x1024xf32, #tpu.memory_space<vmem>>, vector<8x1024xf32>,
    } else {
    }
    %c0 = arith.constant 0 : index
    %c0_1 = arith.constant 0 : index
    %3 = vector.load %arg2[%c0, %c0_1] : memref<8x256xf32, #tpu.memory_space<vmem>>, vector<8x256xf32>
    %4 = arith.truncf %3 : vector<8x256xf32> to vector<8x256xbf16>
    %c0_2 = arith.constant 0 : index
    %c0_3 = arith.constant 0 : index
    %5 = vector.load %arg3[%c0_2, %c0_3] : memref<256x768xbf16, #tpu.memory_space<vmem>>, vector<256x768xbf16>
    %cst = arith.constant dense<0.000000e+00> : vector<8x768xf32>
    %6 = tpu.matmul %4, %5, %cst {dimension_numbers = #tpu.dot_dimension_numbers<[1], [0], [0], [1], [0, 0, 1, 1], [], []>} : vector<8x256xbf16>, vector<256x768xbf16>, vector<8x768xf32> -> vector<8x768xf32>
    %c0_4 = arith.constant 0 : index
    %c0_5 = arith.constant 0 : index
    %7 = vector.load %arg4[%c0_4, %c0_5] : memref<1x768xf32, #tpu.memory_space<vmem>>, vector<1x768xf32>
    %8 = vector.broadcast %7 : vector<1x768xf32> to vector<8x768xf32>
    %9 = arith.addf %6, %8 : vector<8x768xf32>
    %cst_6 = arith.constant 0.000000e+00 : f32
    %10 = vector.broadcast %cst_6 : f32 to vector<8x768xf32>
    %11 = arith.maximumf %9, %10 : vector<8x768xf32>
    %12 = arith.truncf %11 : vector<8x768xf32> to vector<8x768xbf16>
    %c0_7 = arith.constant 0 : index
    %c0_8 = arith.constant 0 : index
    %13 = vector.load %arg10[%c0_7, %c0_8] : memref<8x1024xf32, #tpu.memory_space<vmem>>, vector<8x1024xf32>
    %c0_9 = arith.constant 0 : index
    %c0_10 = arith.constant 0 : index
    %14 = vector.load %arg5[%c0_9, %c0_10] : memref<768x1024xbf16, #tpu.memory_space<vmem>>, vector<768x1024xbf16>
    %cst_11 = arith.constant dense<0.000000e+00> : vector<8x1024xf32>
    %15 = tpu.matmul %12, %14, %cst_11 {dimension_numbers = #tpu.dot_dimension_numbers<[1], [0], [0], [1], [0, 0, 1, 1], [], []>} : vector<8x768xbf16>, vector<768x1024xbf16>, vector<8x1024xf32> -> vector<8x1024xf32>
    %16 = arith.addf %13, %15 : vector<8x1024xf32>
    %c0_12 = arith.constant 0 : index
    %c0_13 = arith.constant 0 : index
    %17 = vector.load %arg10[%c0_12, %c0_13] : memref<8x1024xf32, #tpu.memory_space<vmem>>, vector<8x1024xf32>
    tpu.vector_store %arg10[%c0_12, %c0_13], %16 {strides = array<i32>} : memref<8x1024xf32, #tpu.memory_space<vmem>>, vector<8x1024xf32>,
    %c3_i32 = arith.constant 3 : i32
    %18 = arith.cmpi eq, %arg1, %c3_i32 : i32
    %19 = arith.extui %18 : i1 to i32
    %c0_i32_14 = arith.constant 0 : i32
    %20 = arith.cmpi ne, %19, %c0_i32_14 : i32
    scf.if %20 {
      %c0_15 = arith.constant 0 : index
      %c0_16 = arith.constant 0 : index
      %21 = vector.load %arg10[%c0_15, %c0_16] : memref<8x1024xf32, #tpu.memory_space<vmem>>, vector<8x1024xf32>
      %c0_17 = arith.constant 0 : index
      %c0_18 = arith.constant 0 : index
      %22 = vector.load %arg6[%c0_17, %c0_18] : memref<1x1024xf32, #tpu.memory_space<vmem>>, vector<1x1024xf32>
      %23 = vector.broadcast %22 : vector<1x1024xf32> to vector<8x1024xf32>
      %24 = arith.addf %21, %23 : vector<8x1024xf32>
      %cst_19 = arith.constant 0.000000e+00 : f32
      %25 = vector.broadcast %cst_19 : f32 to vector<8x1024xf32>
      %26 = arith.maximumf %24, %25 : vector<8x1024xf32>
      %27 = arith.truncf %26 : vector<8x1024xf32> to vector<8x1024xbf16>
      %c0_20 = arith.constant 0 : index
      %c0_21 = arith.constant 0 : index
      %28 = vector.load %arg7[%c0_20, %c0_21] : memref<1024x128xbf16, #tpu.memory_space<vmem>>, vector<1024x128xbf16>
      %cst_22 = arith.constant dense<0.000000e+00> : vector<8x128xf32>
      %29 = tpu.matmul %27, %28, %cst_22 {dimension_numbers = #tpu.dot_dimension_numbers<[1], [0], [0], [1], [0, 0, 1, 1], [], []>} : vector<8x1024xbf16>, vector<1024x128xbf16>, vector<8x128xf32> -> vector<8x128xf32>
      %c0_23 = arith.constant 0 : index
      %c0_24 = arith.constant 0 : index
      %30 = vector.load %arg8[%c0_23, %c0_24] : memref<1x128xf32, #tpu.memory_space<vmem>>, vector<1x128xf32>
      %31 = vector.broadcast %30 : vector<1x128xf32> to vector<8x128xf32>
      %32 = arith.addf %29, %31 : vector<8x128xf32>
      %33 = arith.mulf %32, %32 : vector<8x128xf32>
      %cst_25 = arith.constant dense<0.000000e+00> : vector<8xf32>
      %34 = vector.multi_reduction <add>, %33, %cst_25 [1] : vector<8x128xf32> to vector<8xf32>
      %35 = vector.shape_cast %34 : vector<8xf32> to vector<8x1xf32>
      %cst_26 = arith.constant 1.000000e-24 : f32
      %36 = vector.broadcast %cst_26 : f32 to vector<8x1xf32>
      %37 = arith.maximumf %35, %36 : vector<8x1xf32>
      %38 = math.rsqrt %37 : vector<8x1xf32>
      %39 = vector.broadcast %38 : vector<8x1xf32> to vector<8x128xf32>
      %40 = arith.mulf %32, %39 : vector<8x128xf32>
      %c0_27 = arith.constant 0 : index
      %c0_28 = arith.constant 0 : index
      %41 = vector.load %arg9[%c0_27, %c0_28] : memref<8x128xf32, #tpu.memory_space<vmem>>, vector<8x128xf32>
      tpu.vector_store %arg9[%c0_27, %c0_28], %40 {strides = array<i32>} : memref<8x128xf32, #tpu.memory_space<vmem>>, vector<8x128xf32>,
    } else {
    }
    return
  }
  func.func @transform_0(%arg0: i32, %arg1: i32) -> (i32, i32) {
    %c0_i32 = arith.constant 0 : i32
    %c0_i32_0 = arith.constant 0 : i32
    return %arg0, %c0_i32 : i32, i32
  }
  func.func @transform_1(%arg0: i32, %arg1: i32) -> (i32, i32) {
    %c0_i32 = arith.constant 0 : i32
    %c0_i32_0 = arith.constant 0 : i32
    return %c0_i32, %arg1 : i32, i32
  }
  func.func @transform_2(%arg0: i32, %arg1: i32) -> (i32, i32) {
    %c0_i32 = arith.constant 0 : i32
    %c0_i32_0 = arith.constant 0 : i32
    return %c0_i32, %arg1 : i32, i32
  }
  func.func @transform_3(%arg0: i32, %arg1: i32) -> (i32, i32) {
    %c0_i32 = arith.constant 0 : i32
    %c0_i32_0 = arith.constant 0 : i32
    return %arg1, %c0_i32 : i32, i32
  }
  func.func @transform_4(%arg0: i32, %arg1: i32) -> (i32, i32) {
    %c0_i32 = arith.constant 0 : i32
    %c0_i32_0 = arith.constant 0 : i32
    %c0_i32_1 = arith.constant 0 : i32
    return %c0_i32, %c0_i32_0 : i32, i32
  }
  func.func @transform_5(%arg0: i32, %arg1: i32) -> (i32, i32) {
    %c0_i32 = arith.constant 0 : i32
    %c0_i32_0 = arith.constant 0 : i32
    %c0_i32_1 = arith.constant 0 : i32
    return %c0_i32, %c0_i32_0 : i32, i32
  }
  func.func @transform_6(%arg0: i32, %arg1: i32) -> (i32, i32) {
    %c0_i32 = arith.constant 0 : i32
    %c0_i32_0 = arith.constant 0 : i32
    %c0_i32_1 = arith.constant 0 : i32
    return %c0_i32, %c0_i32_0 : i32, i32
  }
  func.func @transform_7(%arg0: i32, %arg1: i32) -> (i32, i32) {
    %c0_i32 = arith.constant 0 : i32
    %c0_i32_0 = arith.constant 0 : i32
    return %arg0, %c0_i32 : i32, i32
  }
}

</mosaic_0001>

<bundles_post_ra>
// kernel: tpu_custom_call.1
= control target key start
LH: loop header
LB: loop body
LE: loop exit
PB: predicated region body
PF: predicated region fallthrough
CT: control target
= control target key end

     0   :  { %s9538_s0 = inlined_call_operand.hbm [shape: f32[8,256], index: 0, kind: input, shape index: {}]   ;;  %s9539_s1 = inlined_call_operand.hbm [shape: bf16[256,3072], index: 1, kind: input, shape index: {}]   ;;  %s9540_s2 = inlined_call_operand.hbm [shape: f32[1,3072], index: 2, kind: input, shape index: {}]   ;;  %s9541_s3 = inlined_call_operand.hbm [shape: bf16[3072,1024], index: 3, kind: input, shape index: {}]   ;;  %s9542_s4 = inlined_call_operand.hbm [shape: f32[1,1024], index: 4, kind: input, shape index: {}]   ;;  %s9543_s5 = inlined_call_operand.hbm [shape: bf16[1024,128], index: 5, kind: input, shape index: {}]   ;;  %s9544_s6 = inlined_call_operand.hbm [shape: f32[1,128], index: 6, kind: input, shape index: {}]   ;;  %s9545_s7 = inlined_call_operand.hbm [shape: f32[8,128], index: 7, kind: output, shape index: {}]  }
   0x1   :  { %9548 = sst [smem:[#allocation24_spill]] %s9538_s0 }
   0x2   :  { %9549 = sst [smem:[#allocation25_spill]] %s9539_s1 }
   0x3   :  { %9550 = sst [smem:[#allocation26_spill]] %s9542_s4 }
   0x4   :  { %9551 = sst [smem:[#allocation27_spill]] %s9543_s5 }
   0x5   :  { %12 = vsyncpa [#allocation4], 0 }
   0x6   :  { %13 = vsyncpa [#allocation7], 0 }
   0x7   :  { %15 = vsyncpa [#allocation7 + $0x1], 0 }
   0x8   :  { %16 = vsyncpa [#allocation10], 0 }
   0x9   :  { %18 = vsyncpa [#allocation10 + $0x1], 0 }
   0xa   :  { %19 = vsyncpa [#allocation13], 0 }
   0xb   :  { %20 = vsyncpa [#allocation5], 0  ;;  %s8265_s24 = smov 0   ;;  %s8267_s25 = smov 0  }
   0xc   :  { %s8269_s26 = smov 0   ;;  %s8271_s27 = smov 0  }
   0xd   :  { %s8273_s28 = smov 0   ;;  %s8275_s29 = smov 0  }
   0xe LB: > { %s8294_s30 = sadd.s32 4294967295, %s8210_s29   ;;  %p84_p0 = scmp.ne.s32.totalorder %s8194_s25, %s8190_s24  ;;  %s8210_s29 = sphi %s8275_s29, %s26_s29   ;;  %s8206_s28 = sphi %s8273_s28, %s9569_s28   ;;  %s8202_s27 = sphi %s8271_s27, %s9568_s27   ;;  %s8198_s26 = sphi %s8269_s26, %s9567_s26   ;;  %s8194_s25 = sphi %s8267_s25, %s9566_s25   ;;  %s8190_s24 = sphi %s8265_s24, %s9565_s24  }
   0xf   : > { %p85_p1 = scmp.eq.s32.totalorder %s8294_s30, 0  ;;  %p5028_p2 = scmp.ge.s32.totalorder %s8210_s29, 1 }
  0x10   : > { %p236_p3 = scmp.lt.s32.totalorder %s8210_s29, 5  ;;  %s9553_s4 = sld [smem:[#allocation26_spill]] }
  0x11   : > { %p8302_p4 = por %p85_p1, %p84_p0  ;;  %s8212_s13 = smov [#allocation11]  }
  0x12   : > { %p8309_p5 = pnand %p5028_p2, %p236_p3  ;;  %s265_s14 = sshll.u32 %s8212_s13, 4  ;;  %s266_s14 = int_to_ptr.vmem [resolvable:$true] %s265_s14 }
  0x13   : > { %s9555_s5 = sld [smem:[#allocation27_spill]]  ;;  %s8213_s19 = smov [#allocation12]  }
  0x14   : > { %p7804_p6 = pneg %p8309_p5  ;;  %s276_s20 = sshll.u32 %s8213_s19, 4  ;;  %s277_s20 = int_to_ptr.vmem [resolvable:$true] %s276_s20 }
  0x15   : > { %s8214_s21 = smov 64   ;;  %s8215_s22 = smov 4  }
  0x16   : > { %s263_s11 = sshll.u32 %s9553_s4, 4  ;;  %p8320_p7 = pnand %p7804_p6, %p85_p1  ;;  %s264_s11 = int_to_ptr.hbm [resolvable:$true] %s263_s11 }
  0x17   : > { %s35_s23 = sadd.s32 1, %s8206_s28  ;;  %s71_s24 = sadd.s32 1, %s8198_s26 }
  0x18   : > { %7810 = dma.hbm_to_vmem [thread:$0]  (!%p8320_p7), %s264_s11, 128, %s266_s14, [#allocation10]  }
  0x19   : > { %s274_s17 = sshll.u32 %s9555_s5, 4  ;;  %p36_p8 = scmp.ge.s32.totalorder %s35_s23, 4  ;;  %s275_s17 = int_to_ptr.hbm [resolvable:$true] %s274_s17 }
  0x1a   : > { %7813 = dma.hbm_to_vmem [thread:$0]  (!%p8320_p7), %s275_s17, 8192, %s277_s20, [#allocation13], %s8214_s21, %s8214_s21, %s8215_s22  }
  0x1b   : > { %p78_p9 = scmp.ne.s32.totalorder %s8198_s26, %s8194_s25  ;;  %p79_p10 = scmp.eq.s32.totalorder %s8210_s29, 0 }
  0x1c   : > { %p7831_p11 = scmp.lt.s32.totalorder %s8210_s29, 4  ;;  %s9571_s23 = smov (%p36_p8, %s35_s23), 0 }
  0x1d   : > { %9557 = sst [smem:[#allocation22_spill]] %s9571_s23  ;;  %p80_p12 = por %p79_p10, %p78_p9 }
  0x1e   : > { %s9547_s9 = sand.u32 1, %s8210_s29   ;;  %s68_s10 = ssub.s32 %s8206_s28, %s9571_s23 }
  0x1f   : > { %p69_p13 = scmp.eq.s32.totalorder %s68_s10, 0  ;;  %s8340_s11 = sand.u32 1, %s8198_s26  }
  0x20   : > { %s7772_s13 = smul.u32 768, %s8340_s11  ;;  %p8343_p0 = pnand %p7831_p11, %p80_p12 }
  0x21   : > { %s8348_s15 = scalar_select %p69_p13, %s8198_s26, %s71_s24  }
  0x22   : > { %s7224_s16 = smul.u32 24, %s8206_s28  ;;  %s306_s17 = scalar_lea.vmem [#allocation6], %s7772_s13 }
  0x23   : > { %9559 = sst [smem:[#allocation23_spill]] %s8348_s15  ;;  %s314_s19 = sshll.u32 %s306_s17, 4  ;;  %s315_s19 = int_to_ptr.vmem [resolvable:$true] %s314_s19 }
  0x24   : > { %s9560_s1 = sld [smem:[#allocation25_spill]]  ;;  %s303_s4 = scalar_lea.sflag [#allocation7], %s9547_s9 }
  0x25   : > { %s8216_s5 = smov 1536   ;;  %s8217_s23 = smov 384  }
  0x26   : > { %s8218_s24 = smov 24   ;;  %s9561_s0 = sld [smem:[#allocation24_spill]] }
  0x27   : > { %s7773_s9 = smul.u32 6, %s8340_s11 }
  0x29   : > { %s328_s13 = scalar_lea.vmem [#allocation8], %s7773_s9 }
  0x2a   : > { %s311_s22 = scalar_lea.hbm %s9560_s1, %s7224_s16  ;;  %s8219_s16 = smov [#allocation3]  }
  0x2b   : > { %s312_s10 = sshll.u32 %s311_s22, 4  ;;  %s253_s20 = sshll.u32 %s8219_s16, 4  ;;  %s313_s10 = int_to_ptr.hbm [resolvable:$true] %s312_s10  ;;  %s254_s20 = int_to_ptr.vmem [resolvable:$true] %s253_s20 }
  0x2c   : > { %7820 = dma.hbm_to_vmem [thread:$0]  (!%p8343_p0), %s313_s10, 12288, %s315_s19, %s303_s4, %s8216_s5, %s8217_s23, %s8218_s24  }
  0x2d   : > { %s251_s15 = sshll.u32 %s9561_s0, 4  ;;  %s289_s22 = sshll.u32 %s9544_s6, 4  ;;  %s252_s15 = int_to_ptr.hbm [resolvable:$true] %s251_s15  ;;  %s290_s22 = int_to_ptr.hbm [resolvable:$true] %s289_s22 }
  0x2e   : > { %7807 = dma.hbm_to_vmem [thread:$0]  (!%p8320_p7), %s252_s15, 256, %s254_s20, [#allocation4]  }
  0x2f   : > { %s8220_s5 = smov [#allocation14]   ;;  %s329_s19 = smul.u32 6, %s8206_s28 }
  0x30   : > { %s291_s23 = sshll.u32 %s8220_s5, 4  ;;  %s336_s17 = sshll.u32 %s328_s13, 4  ;;  %s292_s23 = int_to_ptr.vmem [resolvable:$true] %s291_s23  ;;  %s337_s17 = int_to_ptr.vmem [resolvable:$true] %s336_s17 }
  0x31   : > { %7816 = dma.hbm_to_vmem [thread:$0]  (!%p8320_p7), %s290_s22, 16, %s292_s23, [#allocation13]  }
  0x32   : > { %s332_s1 = scalar_lea.hbm %s9540_s2, %s329_s19  ;;  %s7774_s15 = smul.u32 3072, %s8340_s11 }
  0x33   : > { %s334_s16 = sshll.u32 %s332_s1, 4  ;;  %s7771_s20 = smul.u32 3072, %s8206_s28  ;;  %s335_s16 = int_to_ptr.hbm [resolvable:$true] %s334_s16 }
  0x34   : > { %7823 = dma.hbm_to_vmem [thread:$0]  (!%p8343_p0), %s335_s16, 96, %s337_s17, %s303_s4  }
  0x35   : > { %s353_s18 = scalar_lea.hbm %s9541_s3, %s7771_s20  ;;  %s347_s22 = scalar_lea.vmem [#allocation9], %s7774_s15 }
  0x36   : > { %s356_s23 = sshll.u32 %s347_s22, 4  ;;  %s354_s0 = sshll.u32 %s353_s18, 4  ;;  %s357_s23 = int_to_ptr.vmem [resolvable:$true] %s356_s23  ;;  %s355_s0 = int_to_ptr.hbm [resolvable:$true] %s354_s0 }
  0x37   : > { %s9562_s19 = sand.u32 1, %s8210_s29   ;;  %s8221_s10 = smov 512  }
  0x38   : > { %s344_s9 = scalar_lea.sflag [#allocation10], %s9562_s19  ;;  %s8222_s24 = smov 32  }
  0x39   : > { %7826 = dma.hbm_to_vmem [thread:$0]  (!%p8343_p0), %s355_s0, 49152, %s357_s23, %s344_s9, %s8221_s10, %s8221_s10, %s8222_s24  }
  0x3a   : > { %368 = sbr.rel (%p8309_p5) target bundleno = 1124 (0x464), region = 48 }
  0x3f   : > { %8165 = dma.done.wait (%p85_p1), [#allocation4], 256  }
  0x40   : > { %8167 = vsyncadd (%p85_p1), [#allocation4], 4294967040  ;;  %s375_s4 = sand.u32 1, %s8294_s30   ;;  %s377_s11 = sand.u32 1, %s8194_s25  }
  0x41   : > { %s7775_s1 = smul.u32 768, %s377_s11  ;;  %s376_s13 = scalar_lea.sflag [#allocation7], %s375_s4 }
  0x43   : > { %s8392_s17 = scalar_lea.vmem [#allocation6], %s7775_s1 }
  0x44   : > { %8169 = dma.done.wait (%p8302_p4), %s376_s13, 12384  }
  0x45   : > { %8171 = vsyncadd (%p8302_p4), %s376_s13, 4294954912  ;;  %s7776_s0 = smul.u32 6, %s377_s11  ;;  %s396_s16 = scalar_lea.sflag [#allocation10], %s375_s4 }
  0x46   : > { %s7777_s12 = smul.u32 3072, %s377_s11 }
  0x47   : > { %s8398_s14 = scalar_lea.vmem [#allocation8], %s7776_s0 }
  0x48   : > { %s8400_s15 = scalar_lea.vmem [#allocation9], %s7777_s12 }
  0x49   : > { %8173 = dma.done.wait (%p8302_p4), %s396_s16, 49152  }
  0x4a   : > { %8175 = vsyncadd (%p8302_p4), %s396_s16, 4294918144 }
  0x4b   : > { %8177 = dma.done.wait (%p85_p1), [#allocation10], 128  }
  0x4c   : > { %8179 = vsyncadd (%p85_p1), [#allocation10], 4294967168 }
  0x4d   : > { %8181 = dma.done.wait (%p85_p1), [#allocation13], 8208  }
  0x4e   : > { %8183 = vsyncadd (%p85_p1), [#allocation13], 4294959088  ;;  %p5042_p2 = scmp.ne.s32.totalorder %s8202_s27, 0 }
  0x50   : > { %457 = sbr.rel (%p5042_p2) target bundleno = 94 (0x5e), region = 80 }
  0x55   : > { %v8223_v0 = vmov 0.0  }
  0x56   : > { %458 = vst [vmem:[#allocation2 + $0x30] sm:$0xff] %v8223_v0 }
  0x57   : > { %459 = vst [vmem:[#allocation2] sm:$0xff] %v8223_v0 }
  0x58   : > { %460 = vst [vmem:[#allocation2 + $0x18] sm:$0xff] %v8223_v0 }
  0x59   : > { %461 = vst [vmem:[#allocation2 + $0x10] sm:$0xff] %v8223_v0 }
  0x5a   : > { %462 = vst [vmem:[#allocation2 + $0x8] sm:$0xff] %v8223_v0 }
  0x5b   : > { %463 = vst [vmem:[#allocation2 + $0x20] sm:$0xff] %v8223_v0 }
  0x5c   : > { %464 = vst [vmem:[#allocation2 + $0x28] sm:$0xff] %v8223_v0 }
  0x5d   : > { %465 = vst [vmem:[#allocation2 + $0x38] sm:$0xff] %v8223_v0 }
  0x5e PF: > { %v5213_v1 = vld [vmem:[%s8392_s17 + $0x150] sm:$0xf]  ;;  %v7272_v2 = vld [vmem:[%s8392_s17 + $0x164] sm:$0xf0]  ;;  %v7269_v6 = vld [vmem:[%s8392_s17 + $0x154] sm:$0xf] }
  0x5f   : > { %v5405_v3 = vld [vmem:[%s8392_s17 + $0x2d0] sm:$0xf]  ;;  %v5214_v4 = vor.u32 %v7272_v2, %v5213_v1  ;;  %v7320_v5 = vld [vmem:[%s8392_s17 + $0x2e4] sm:$0xf0]  ;;  %v5215_v7 = vld [vmem:[%s8392_s17 + $0x168] sm:$0xf0] }
  0x60   : > { %v5406_v8 = vor.u32 %v7320_v5, %v5405_v3  ;;  %v5218_v9 = vor.u32 %v7269_v6, %v5215_v7  ;;  %v7317_v10 = vld [vmem:[%s8392_s17 + $0x2d4] sm:$0xf]  ;;  %v5407_v11 = vld [vmem:[%s8392_s17 + $0x2e8] sm:$0xf0]  ;;  %v5189_v12 = vld [vmem:[%s8392_s17 + $0x120] sm:$0xf] }
  0x61   : > { %1060 = vmatpush.bf16.msra.mxu0 %v5214_v4  ;;  %v5410_v13 = vor.u32 %v7317_v10, %v5407_v11  ;;  %v7266_v14 = vld [vmem:[%s8392_s17 + $0x134] sm:$0xf0]  ;;  %v5381_v15 = vld [vmem:[%s8392_s17 + $0x2a0] sm:$0xf]  ;;  %v7263_v19 = vld [vmem:[%s8392_s17 + $0x124] sm:$0xf] }
  0x62   : > { %v7314_v16 = vld [vmem:[%s8392_s17 + $0x2b4] sm:$0xf0]  ;;  %1073 = vmatpush.bf16.msra.mxu1 %v5406_v8  ;;  %1086 = vmatpush.bf16.msra.mxu2 %v5218_v9  ;;  %v5190_v17 = vor.u32 %v7266_v14, %v5189_v12  ;;  %v5191_v20 = vld [vmem:[%s8392_s17 + $0x138] sm:$0xf0]  ;;  %v7311_v21 = vld [vmem:[%s8392_s17 + $0x2a4] sm:$0xf] }
  0x63   : > { %v5382_v18 = vor.u32 %v7314_v16, %v5381_v15  ;;  %1099 = vmatpush.bf16.msra.mxu3 %v5410_v13  ;;  %v5194_v22 = vor.u32 %v7263_v19, %v5191_v20  ;;  %v5383_v23 = vld [vmem:[%s8392_s17 + $0x2b8] sm:$0xf0]  ;;  %v5165_v24 = vld [vmem:[%s8392_s17 + $0xf0] sm:$0xf]  ;;  %v7260_v25 = vld [vmem:[%s8392_s17 + $0x104] sm:$0xf0] }
  0x64   : > { %v5386_v26 = vor.u32 %v7311_v21, %v5383_v23  ;;  %v5357_v27 = vld [vmem:[%s8392_s17 + $0x270] sm:$0xf]  ;;  %v7308_v28 = vld [vmem:[%s8392_s17 + $0x284] sm:$0xf0]  ;;  %v7257_v29 = vld [vmem:[%s8392_s17 + $0xf4] sm:$0xf]  ;;  %v5166_v30 = vor.u32 %v7260_v25, %v5165_v24 }
  0x65   : > { %1061 = vmatpush.bf16.msra.mxu0 %v5190_v17  ;;  %v5167_v31 = vld [vmem:[%s8392_s17 + $0x108] sm:$0xf0]  ;;  %v7305_v32 = vld [vmem:[%s8392_s17 + $0x274] sm:$0xf]  ;;  %v5358_v34 = vor.u32 %v7308_v28, %v5357_v27  ;;  %v5141_v36 = vld [vmem:[%s8392_s17 + $0xc0] sm:$0xf] }
  0x66   : > { %v5359_v33 = vld [vmem:[%s8392_s17 + $0x288] sm:$0xf0]  ;;  %1074 = vmatpush.bf16.msra.mxu1 %v5382_v18  ;;  %1087 = vmatpush.bf16.msra.mxu2 %v5194_v22  ;;  %v5170_v35 = vor.u32 %v7257_v29, %v5167_v31  ;;  %v7254_v37 = vld [vmem:[%s8392_s17 + $0xd4] sm:$0xf0]  ;;  %v5333_v38 = vld [vmem:[%s8392_s17 + $0x240] sm:$0xf] }
  0x67   : > { %1100 = vmatpush.bf16.msra.mxu3 %v5386_v26  ;;  %v5362_v39 = vor.u32 %v7305_v32, %v5359_v33  ;;  %v7302_v40 = vld [vmem:[%s8392_s17 + $0x254] sm:$0xf0]  ;;  %v7251_v41 = vld [vmem:[%s8392_s17 + $0xc4] sm:$0xf]  ;;  %v5143_v42 = vld [vmem:[%s8392_s17 + $0xd8] sm:$0xf0]  ;;  %v5142_v45 = vor.u32 %v7254_v37, %v5141_v36 }
  0x68   : > { %v7299_v43 = vld [vmem:[%s8392_s17 + $0x244] sm:$0xf]  ;;  %v5335_v44 = vld [vmem:[%s8392_s17 + $0x258] sm:$0xf0]  ;;  %v5334_v46 = vor.u32 %v7302_v40, %v5333_v38  ;;  %v5146_v47 = vor.u32 %v7251_v41, %v5143_v42  ;;  %v5117_v48 = vld [vmem:[%s8392_s17 + $0x90] sm:$0xf] }
  0x69   : > { %1062 = vmatpush.bf16.msra.mxu0 %v5166_v30  ;;  %v7248_v49 = vld [vmem:[%s8392_s17 + $0xa4] sm:$0xf0]  ;;  %v5309_v50 = vld [vmem:[%s8392_s17 + $0x210] sm:$0xf]  ;;  %v5338_v51 = vor.u32 %v7299_v43, %v5335_v44  ;;  %v7245_v53 = vld [vmem:[%s8392_s17 + $0x94] sm:$0xf] }
  0x6a   : > { %1075 = vmatpush.bf16.msra.mxu1 %v5358_v34  ;;  %1088 = vmatpush.bf16.msra.mxu2 %v5170_v35  ;;  %v7296_v52 = vld [vmem:[%s8392_s17 + $0x224] sm:$0xf0]  ;;  %v5119_v54 = vld [vmem:[%s8392_s17 + $0xa8] sm:$0xf0]  ;;  %v7293_v55 = vld [vmem:[%s8392_s17 + $0x214] sm:$0xf]  ;;  %v5118_v57 = vor.u32 %v7248_v49, %v5117_v48 }
  0x6b   : > { %1101 = vmatpush.bf16.msra.mxu3 %v5362_v39  ;;  %v5311_v56 = vld [vmem:[%s8392_s17 + $0x228] sm:$0xf0]  ;;  %v5310_v58 = vor.u32 %v7296_v52, %v5309_v50  ;;  %v5122_v59 = vor.u32 %v7245_v53, %v5119_v54  ;;  %v5093_v60 = vld [vmem:[%s8392_s17 + $0x60] sm:$0xf]  ;;  %v7242_v61 = vld [vmem:[%s8392_s17 + $0x74] sm:$0xf0] }
  0x6c   : > { %v5285_v62 = vld [vmem:[%s8392_s17 + $0x1e0] sm:$0xf]  ;;  %v5314_v63 = vor.u32 %v7293_v55, %v5311_v56  ;;  %v7290_v0 = vld [vmem:[%s8392_s17 + $0x1f4] sm:$0xf0]  ;;  %v7239_v1 = vld [vmem:[%s8392_s17 + $0x64] sm:$0xf]  ;;  %v5094_v5 = vor.u32 %v7242_v61, %v5093_v60 }
  0x6d   : > { %1063 = vmatpush.bf16.msra.mxu0 %v5142_v45  ;;  %v5095_v2 = vld [vmem:[%s8392_s17 + $0x78] sm:$0xf0]  ;;  %v7287_v3 = vld [vmem:[%s8392_s17 + $0x1e4] sm:$0xf]  ;;  %v5286_v6 = vor.u32 %v7290_v0, %v5285_v62  ;;  %v5069_v8 = vld [vmem:[%s8392_s17 + $0x30] sm:$0xf] }
  0x6e   : > { %1076 = vmatpush.bf16.msra.mxu1 %v5334_v46  ;;  %1089 = vmatpush.bf16.msra.mxu2 %v5146_v47  ;;  %v5287_v4 = vld [vmem:[%s8392_s17 + $0x1f8] sm:$0xf0]  ;;  %v5098_v7 = vor.u32 %v7239_v1, %v5095_v2  ;;  %v7236_v9 = vld [vmem:[%s8392_s17 + $0x44] sm:$0xf0]  ;;  %v5261_v10 = vld [vmem:[%s8392_s17 + $0x1b0] sm:$0xf] }
  0x6f   : > { %1102 = vmatpush.bf16.msra.mxu3 %v5338_v51  ;;  %v5290_v11 = vor.u32 %v7287_v3, %v5287_v4  ;;  %v7284_v12 = vld [vmem:[%s8392_s17 + $0x1c4] sm:$0xf0]  ;;  %v7233_v13 = vld [vmem:[%s8392_s17 + $0x34] sm:$0xf]  ;;  %v5071_v14 = vld [vmem:[%s8392_s17 + $0x48] sm:$0xf0]  ;;  %v5070_v17 = vor.u32 %v7236_v9, %v5069_v8 }
  0x70   : > { %v7281_v15 = vld [vmem:[%s8392_s17 + $0x1b4] sm:$0xf]  ;;  %v5263_v16 = vld [vmem:[%s8392_s17 + $0x1c8] sm:$0xf0]  ;;  %v5045_v18 = vld [vmem:[%s8392_s17] sm:$0xf]  ;;  %v5262_v20 = vor.u32 %v7284_v12, %v5261_v10  ;;  %v5074_v21 = vor.u32 %v7233_v13, %v5071_v14 }
  0x71   : > { %1064 = vmatpush.bf16.msra.mxu0 %v5118_v57  ;;  %v7230_v19 = vld [vmem:[%s8392_s17 + $0x14] sm:$0xf0]  ;;  %v5237_v22 = vld [vmem:[%s8392_s17 + $0x180] sm:$0xf]  ;;  %v7227_v24 = vld [vmem:[%s8392_s17 + $0x4] sm:$0xf]  ;;  %v5266_v25 = vor.u32 %v7281_v15, %v5263_v16 }
  0x72   : > { %1077 = vmatpush.bf16.msra.mxu1 %v5310_v58  ;;  %1090 = vmatpush.bf16.msra.mxu2 %v5122_v59  ;;  %v7278_v23 = vld [vmem:[%s8392_s17 + $0x194] sm:$0xf0]  ;;  %v5047_v26 = vld [vmem:[%s8392_s17 + $0x18] sm:$0xf0]  ;;  %v7275_v27 = vld [vmem:[%s8392_s17 + $0x184] sm:$0xf]  ;;  %v5046_v32 = vor.u32 %v7230_v19, %v5045_v18 }
  0x73   : > { %1103 = vmatpush.bf16.msra.mxu3 %v5314_v63  ;;  %v5239_v28 = vld [vmem:[%s8392_s17 + $0x198] sm:$0xf0]  ;;  %v5221_v29 = vld [vmem:[%s8392_s17 + $0x158] sm:$0xf]  ;;  %v7273_v30 = vld [vmem:[%s8392_s17 + $0x16c] sm:$0xf0]  ;;  %v5238_v36 = vor.u32 %v7278_v23, %v5237_v22  ;;  %v5050_v37 = vor.u32 %v7227_v24, %v5047_v26 }
  0x74   : > { %v5413_v31 = vld [vmem:[%s8392_s17 + $0x2d8] sm:$0xf]  ;;  %v7321_v33 = vld [vmem:[%s8392_s17 + $0x2ec] sm:$0xf0]  ;;  %v7270_v34 = vld [vmem:[%s8392_s17 + $0x15c] sm:$0xf]  ;;  %v5242_v41 = vor.u32 %v7275_v27, %v5239_v28  ;;  %v5222_v42 = vor.u32 %v7273_v30, %v5221_v29 }
  0x75   : > { %1065 = vmatpush.bf16.msra.mxu0 %v5094_v5  ;;  %v5223_v35 = vld [vmem:[%s8392_s17 + $0x170] sm:$0xf0]  ;;  %v7318_v38 = vld [vmem:[%s8392_s17 + $0x2dc] sm:$0xf]  ;;  %v5414_v44 = vor.u32 %v7321_v33, %v5413_v31  ;;  %v5197_v46 = vld [vmem:[%s8392_s17 + $0x128] sm:$0xf] }
  0x76   : > { %1078 = vmatpush.bf16.msra.mxu1 %v5286_v6  ;;  %1091 = vmatpush.bf16.msra.mxu2 %v5098_v7  ;;  %v5415_v39 = vld [vmem:[%s8392_s17 + $0x2f0] sm:$0xf0]  ;;  %v467_v43 = vld [vmem:[#allocation3 + $0x8] sm:$0xff]  ;;  %v5226_v45 = vor.u32 %v7270_v34, %v5223_v35  ;;  %v7267_v47 = vld [vmem:[%s8392_s17 + $0x13c] sm:$0xf0]  ;;  %p6963_p1 = scmp.ne.s32.totalorder %s8202_s27, 3 }
  0x77   : > { %1104 = vmatpush.bf16.msra.mxu3 %v5290_v11  ;;  %v466_v40 = vld [vmem:[#allocation3] sm:$0xff]  ;;  %v5389_v48 = vld [vmem:[%s8392_s17 + $0x2a8] sm:$0xf]  ;;  %v5418_v49 = vor.u32 %v7318_v38, %v5415_v39  ;;  %v7315_v50 = vld [vmem:[%s8392_s17 + $0x2bc] sm:$0xf0]  ;;  %v8497_v56 = vpack.c.bf16 %v467_v43, %v467_v43  ;;  %v5198_v57 = vor.u32 %v7267_v47, %v5197_v46 }
  0x78   : > { %v7264_v51 = vld [vmem:[%s8392_s17 + $0x12c] sm:$0xf]  ;;  %v5199_v52 = vld [vmem:[%s8392_s17 + $0x140] sm:$0xf0]  ;;  %v8493_v53 = vpack.c.bf16 %v466_v40, %v466_v40  ;;  %v5390_v58 = vor.u32 %v7315_v50, %v5389_v48  ;;  %v5173_v60 = vld [vmem:[%s8392_s17 + $0xf8] sm:$0xf] }
  0x79   : > { %1066 = vmatpush.bf16.msra.mxu0 %v5070_v17  ;;  %v7312_v54 = vld [vmem:[%s8392_s17 + $0x2ac] sm:$0xf]  ;;  %v5391_v55 = vld [vmem:[%s8392_s17 + $0x2c0] sm:$0xf0]  ;;  %v5202_v59 = vor.u32 %v7264_v51, %v5199_v52  ;;  %v7261_v61 = vld [vmem:[%s8392_s17 + $0x10c] sm:$0xf0] }
  0x7a   : > { %1079 = vmatpush.bf16.msra.mxu1 %v5262_v20  ;;  %1092 = vmatpush.bf16.msra.mxu2 %v5074_v21  ;;  %v5365_v62 = vld [vmem:[%s8392_s17 + $0x278] sm:$0xf]  ;;  %v5394_v63 = vor.u32 %v7312_v54, %v5391_v55  ;;  %v7309_v0 = vld [vmem:[%s8392_s17 + $0x28c] sm:$0xf0]  ;;  %v7258_v1 = vld [vmem:[%s8392_s17 + $0xfc] sm:$0xf]  ;;  %v5174_v5 = vor.u32 %v7261_v61, %v5173_v60 }
  0x7b   : > { %1105 = vmatpush.bf16.msra.mxu3 %v5266_v25  ;;  %v5175_v2 = vld [vmem:[%s8392_s17 + $0x110] sm:$0xf0]  ;;  %v7306_v3 = vld [vmem:[%s8392_s17 + $0x27c] sm:$0xf]  ;;  %v5366_v6 = vor.u32 %v7309_v0, %v5365_v62  ;;  %v5149_v8 = vld [vmem:[%s8392_s17 + $0xc8] sm:$0xf] }
  0x7c   : > { %v5367_v4 = vld [vmem:[%s8392_s17 + $0x290] sm:$0xf0]  ;;  %v5178_v7 = vor.u32 %v7258_v1, %v5175_v2  ;;  %v7255_v9 = vld [vmem:[%s8392_s17 + $0xdc] sm:$0xf0]  ;;  %v5341_v10 = vld [vmem:[%s8392_s17 + $0x248] sm:$0xf] }
  0x7d   : > { %1067 = vmatpush.bf16.msra.mxu0 %v5046_v32  ;;  %v5370_v11 = vor.u32 %v7306_v3, %v5367_v4  ;;  %v7303_v12 = vld [vmem:[%s8392_s17 + $0x25c] sm:$0xf0]  ;;  %v7252_v13 = vld [vmem:[%s8392_s17 + $0xcc] sm:$0xf]  ;;  %v5151_v14 = vld [vmem:[%s8392_s17 + $0xe0] sm:$0xf0]  ;;  %v5150_v17 = vor.u32 %v7255_v9, %v5149_v8 }
  0x7e   : > { %1080 = vmatpush.bf16.msra.mxu1 %v5238_v36  ;;  %1093 = vmatpush.bf16.msra.mxu2 %v5050_v37  ;;  %v7300_v15 = vld [vmem:[%s8392_s17 + $0x24c] sm:$0xf]  ;;  %v5343_v16 = vld [vmem:[%s8392_s17 + $0x260] sm:$0xf0]  ;;  %v5342_v18 = vor.u32 %v7303_v12, %v5341_v10  ;;  %v5154_v19 = vor.u32 %v7252_v13, %v5151_v14  ;;  %v5125_v20 = vld [vmem:[%s8392_s17 + $0x98] sm:$0xf] }
  0x7f   : > { %1106 = vmatpush.bf16.msra.mxu3 %v5242_v41  ;;  %v7249_v21 = vld [vmem:[%s8392_s17 + $0xac] sm:$0xf0]  ;;  %v5317_v22 = vld [vmem:[%s8392_s17 + $0x218] sm:$0xf]  ;;  %v5346_v23 = vor.u32 %v7300_v15, %v5343_v16  ;;  %v7246_v25 = vld [vmem:[%s8392_s17 + $0x9c] sm:$0xf] }
  0x80   : > { %1068 = vmatmul.bf16.vlgmr.msra.gmra.mxu0 %v8493_v53  ;;  %v7297_v24 = vld [vmem:[%s8392_s17 + $0x22c] sm:$0xf0]  ;;  %v5127_v26 = vld [vmem:[%s8392_s17 + $0xb0] sm:$0xf0]  ;;  %v7294_v27 = vld [vmem:[%s8392_s17 + $0x21c] sm:$0xf]  ;;  %v5126_v29 = vor.u32 %v7249_v21, %v5125_v20 }
  0x81   : > { %1112 = vmatpush.bf16.msrb.mxu0 %v5222_v42  ;;  %1094 = vmatmul.bf16.vlgmr.msra.gmra.mxu2 %v8493_v53  ;;  %v5319_v28 = vld [vmem:[%s8392_s17 + $0x230] sm:$0xf0]  ;;  %v5318_v30 = vor.u32 %v7297_v24, %v5317_v22  ;;  %v5130_v31 = vor.u32 %v7246_v25, %v5127_v26  ;;  %v5101_v32 = vld [vmem:[%s8392_s17 + $0x68] sm:$0xf]  ;;  %v7243_v33 = vld [vmem:[%s8392_s17 + $0x7c] sm:$0xf0] }
  0x82   : > { %1125 = vmatpush.bf16.msrb.mxu1 %v5414_v44  ;;  %1138 = vmatpush.bf16.msrb.mxu2 %v5226_v45  ;;  %v5293_v34 = vld [vmem:[%s8392_s17 + $0x1e8] sm:$0xf]  ;;  %v5322_v35 = vor.u32 %v7294_v27, %v5319_v28  ;;  %v7291_v36 = vld [vmem:[%s8392_s17 + $0x1fc] sm:$0xf0]  ;;  %v7240_v37 = vld [vmem:[%s8392_s17 + $0x6c] sm:$0xf]  ;;  %v5102_v41 = vor.u32 %v7243_v33, %v5101_v32 }
  0x83   : > { %1151 = vmatpush.bf16.msrb.mxu3 %v5418_v49  ;;  %1081 = vmatmul.bf16.vlgmr.msra.gmra.mxu1 %v8497_v56  ;;  %v5103_v38 = vld [vmem:[%s8392_s17 + $0x80] sm:$0xf0]  ;;  %v7288_v39 = vld [vmem:[%s8392_s17 + $0x1ec] sm:$0xf]  ;;  %v5294_v42 = vor.u32 %v7291_v36, %v5293_v34  ;;  %v5077_v44 = vld [vmem:[%s8392_s17 + $0x38] sm:$0xf] }
  0x84   : > { %1107 = vmatmul.bf16.vlgmr.msra.gmra.mxu3 %v8497_v56  ;;  %v5295_v40 = vld [vmem:[%s8392_s17 + $0x200] sm:$0xf0]  ;;  %v5106_v43 = vor.u32 %v7240_v37, %v5103_v38  ;;  %v7237_v45 = vld [vmem:[%s8392_s17 + $0x4c] sm:$0xf0]  ;;  %v5269_v46 = vld [vmem:[%s8392_s17 + $0x1b8] sm:$0xf] }
  0x85   : > { %1113 = vmatpush.bf16.msrb.mxu0 %v5198_v57  ;;  %v5298_v47 = vor.u32 %v7288_v39, %v5295_v40  ;;  %v7285_v48 = vld [vmem:[%s8392_s17 + $0x1cc] sm:$0xf0]  ;;  %v7234_v49 = vld [vmem:[%s8392_s17 + $0x3c] sm:$0xf]  ;;  %v5079_v50 = vld [vmem:[%s8392_s17 + $0x50] sm:$0xf0]  ;;  %v5078_v54 = vor.u32 %v7237_v45, %v5077_v44 }
  0x86   : > { %1126 = vmatpush.bf16.msrb.mxu1 %v5390_v58  ;;  %1139 = vmatpush.bf16.msrb.mxu2 %v5202_v59  ;;  %v7282_v51 = vld [vmem:[%s8392_s17 + $0x1bc] sm:$0xf]  ;;  %v5271_v52 = vld [vmem:[%s8392_s17 + $0x1d0] sm:$0xf0]  ;;  %v5053_v55 = vld [vmem:[%s8392_s17 + $0x8] sm:$0xf]  ;;  %v5270_v58 = vor.u32 %v7285_v48, %v5269_v46  ;;  %v5082_v59 = vor.u32 %v7234_v49, %v5079_v50 }
  0x87   : > { %1152 = vmatpush.bf16.msrb.mxu3 %v5394_v63  ;;  %v7231_v57 = vld [vmem:[%s8392_s17 + $0x1c] sm:$0xf0]  ;;  %v5245_v60 = vld [vmem:[%s8392_s17 + $0x188] sm:$0xf]  ;;  %v7228_v62 = vld [vmem:[%s8392_s17 + $0xc] sm:$0xf]  ;;  %v5274_v63 = vor.u32 %v7282_v51, %v5271_v52 }
  0x88   : > { %v7279_v61 = vld [vmem:[%s8392_s17 + $0x19c] sm:$0xf0]  ;;  %v5055_v0 = vld [vmem:[%s8392_s17 + $0x20] sm:$0xf0]  ;;  %v7276_v1 = vld [vmem:[%s8392_s17 + $0x18c] sm:$0xf] }
  0x89   : > { %1114 = vmatpush.bf16.msrb.mxu0 %v5174_v5  ;;  %v5247_v2 = vld [vmem:[%s8392_s17 + $0x1a0] sm:$0xf0]  ;;  %v5229_v3 = vld [vmem:[%s8392_s17 + $0x160] sm:$0xf]  ;;  %v7274_v4 = vld [vmem:[%s8392_s17 + $0x174] sm:$0xf0]  ;;  %v5246_v10 = vor.u32 %v7279_v61, %v5245_v60 }
  0x8a   : > { %1127 = vmatpush.bf16.msrb.mxu1 %v5366_v6  ;;  %1140 = vmatpush.bf16.msrb.mxu2 %v5178_v7  ;;  %v7271_v5 = vld [vmem:[%s8392_s17 + $0x164] sm:$0xf]  ;;  %v5054_v6 = vor.u32 %v7231_v57, %v5053_v55  ;;  %v5231_v7 = vld [vmem:[%s8392_s17 + $0x178] sm:$0xf0]  ;;  %v5250_v12 = vor.u32 %v7276_v1, %v5247_v2  ;;  %v5230_v13 = vor.u32 %v7274_v4, %v5229_v3  ;;  %v5421_v14 = vld [vmem:[%s8392_s17 + $0x2e0] sm:$0xf] }
  0x8b   : > { %1153 = vmatpush.bf16.msrb.mxu3 %v5370_v11  ;;  %v7319_v8 = vld [vmem:[%s8392_s17 + $0x2e4] sm:$0xf]  ;;  %v5423_v9 = vld [vmem:[%s8392_s17 + $0x2f8] sm:$0xf0]  ;;  %v5058_v11 = vor.u32 %v7228_v62, %v5055_v0  ;;  %v7322_v15 = vld [vmem:[%s8392_s17 + $0x2f4] sm:$0xf0]  ;;  %v5234_v16 = vor.u32 %v7271_v5, %v5231_v7 }
  0x8c   : > { %v7265_v20 = vld [vmem:[%s8392_s17 + $0x134] sm:$0xf]  ;;  %v5207_v21 = vld [vmem:[%s8392_s17 + $0x148] sm:$0xf0]  ;;  %v5422_v24 = vor.u32 %v7322_v15, %v5421_v14  ;;  %v5397_v26 = vld [vmem:[%s8392_s17 + $0x2b0] sm:$0xf] }
  0x8d   : > { %1115 = vmatpush.bf16.msrb.mxu0 %v5150_v17  ;;  %v5426_v17 = vor.u32 %v7319_v8, %v5423_v9  ;;  %v7313_v22 = vld [vmem:[%s8392_s17 + $0x2b4] sm:$0xf]  ;;  %v7316_v27 = vld [vmem:[%s8392_s17 + $0x2c4] sm:$0xf0]  ;;  %v5210_v28 = vor.u32 %v7265_v20, %v5207_v21  ;;  %v7259_v32 = vld [vmem:[%s8392_s17 + $0x104] sm:$0xf] }
  0x8e   : > { %1128 = vmatpush.bf16.msrb.mxu1 %v5342_v18  ;;  %1141 = vmatpush.bf16.msrb.mxu2 %v5154_v19  ;;  %v5205_v18 = vld [vmem:[%s8392_s17 + $0x130] sm:$0xf]  ;;  %v7268_v19 = vld [vmem:[%s8392_s17 + $0x144] sm:$0xf0]  ;;  %v5183_v33 = vld [vmem:[%s8392_s17 + $0x118] sm:$0xf0]  ;;  %v5398_v36 = vor.u32 %v7316_v27, %v5397_v26 }
  0x8f   : > { %1154 = vmatpush.bf16.msrb.mxu3 %v5346_v23  ;;  %v5399_v23 = vld [vmem:[%s8392_s17 + $0x2c8] sm:$0xf0]  ;;  %v5206_v25 = vor.u32 %v7268_v19, %v5205_v18  ;;  %v7307_v34 = vld [vmem:[%s8392_s17 + $0x284] sm:$0xf]  ;;  %v5373_v38 = vld [vmem:[%s8392_s17 + $0x280] sm:$0xf]  ;;  %v5186_v40 = vor.u32 %v7259_v32, %v5183_v33 }
  0x90   : > { %v7310_v39 = vld [vmem:[%s8392_s17 + $0x294] sm:$0xf0]  ;;  %v7253_v44 = vld [vmem:[%s8392_s17 + $0xd4] sm:$0xf]  ;;  %v5159_v45 = vld [vmem:[%s8392_s17 + $0xe8] sm:$0xf0] }
  0x91   : > { %1116 = vmatpush.bf16.msrb.mxu0 %v5126_v29  ;;  %v5402_v29 = vor.u32 %v7313_v22, %v5399_v23  ;;  %v7301_v46 = vld [vmem:[%s8392_s17 + $0x254] sm:$0xf]  ;;  %v5374_v48 = vor.u32 %v7310_v39, %v5373_v38  ;;  %v5349_v50 = vld [vmem:[%s8392_s17 + $0x250] sm:$0xf]  ;;  %v7304_v51 = vld [vmem:[%s8392_s17 + $0x264] sm:$0xf0]  ;;  %v5162_v52 = vor.u32 %v7253_v44, %v5159_v45 }
  0x92   : > { %1129 = vmatpush.bf16.msrb.mxu1 %v5318_v30  ;;  %1142 = vmatpush.bf16.msrb.mxu2 %v5130_v31  ;;  %v5181_v30 = vld [vmem:[%s8392_s17 + $0x100] sm:$0xf]  ;;  %v7262_v31 = vld [vmem:[%s8392_s17 + $0x114] sm:$0xf0]  ;;  %v7295_v60 = vld [vmem:[%s8392_s17 + $0x224] sm:$0xf]  ;;  %v5350_v62 = vor.u32 %v7304_v51, %v5349_v50 }
  0x93   : > { %1155 = vmatpush.bf16.msrb.mxu3 %v5322_v35  ;;  %v5375_v35 = vld [vmem:[%s8392_s17 + $0x298] sm:$0xf0]  ;;  %v5182_v37 = vor.u32 %v7262_v31, %v5181_v30  ;;  %v5133_v55 = vld [vmem:[%s8392_s17 + $0xa0] sm:$0xf]  ;;  %v7250_v57 = vld [vmem:[%s8392_s17 + $0xb4] sm:$0xf0] }
  0x94   : > { %v5327_v61 = vld [vmem:[%s8392_s17 + $0x238] sm:$0xf0]  ;;  %v5325_v0 = vld [vmem:[%s8392_s17 + $0x220] sm:$0xf]  ;;  %v7298_v1 = vld [vmem:[%s8392_s17 + $0x234] sm:$0xf0] }
  0x95   : > { %1117 = vmatpush.bf16.msrb.mxu0 %v5102_v41  ;;  %v5378_v41 = vor.u32 %v7307_v34, %v5375_v35  ;;  %v5330_v3 = vor.u32 %v7295_v60, %v5327_v61  ;;  %v5109_v4 = vld [vmem:[%s8392_s17 + $0x70] sm:$0xf]  ;;  %v7244_v5 = vld [vmem:[%s8392_s17 + $0x84] sm:$0xf0]  ;;  %v5111_v7 = vld [vmem:[%s8392_s17 + $0x88] sm:$0xf0] }
  0x96   : > { %1130 = vmatpush.bf16.msrb.mxu1 %v5294_v42  ;;  %1143 = vmatpush.bf16.msrb.mxu2 %v5106_v43  ;;  %v5157_v42 = vld [vmem:[%s8392_s17 + $0xd0] sm:$0xf]  ;;  %v7256_v43 = vld [vmem:[%s8392_s17 + $0xe4] sm:$0xf0]  ;;  %v7289_v8 = vld [vmem:[%s8392_s17 + $0x1f4] sm:$0xf] }
  0x97   : > { %1156 = vmatpush.bf16.msrb.mxu3 %v5298_v47  ;;  %v5351_v47 = vld [vmem:[%s8392_s17 + $0x268] sm:$0xf0]  ;;  %v5158_v49 = vor.u32 %v7256_v43, %v5157_v42  ;;  %v7235_v18 = vld [vmem:[%s8392_s17 + $0x44] sm:$0xf]  ;;  %v5087_v19 = vld [vmem:[%s8392_s17 + $0x58] sm:$0xf0] }
  0x98   : > { %v5303_v9 = vld [vmem:[%s8392_s17 + $0x208] sm:$0xf0]  ;;  %v7283_v20 = vld [vmem:[%s8392_s17 + $0x1c4] sm:$0xf]  ;;  %v5279_v21 = vld [vmem:[%s8392_s17 + $0x1d8] sm:$0xf0]  ;;  %v5090_v27 = vor.u32 %v7235_v18, %v5087_v19 }
  0x99   : > { %1118 = vmatpush.bf16.msrb.mxu0 %v5078_v54  ;;  %v5354_v54 = vor.u32 %v7301_v46, %v5351_v47  ;;  %v5306_v15 = vor.u32 %v7289_v8, %v5303_v9  ;;  %v5061_v26 = vld [vmem:[%s8392_s17 + $0x10] sm:$0xf]  ;;  %v7229_v30 = vld [vmem:[%s8392_s17 + $0x14] sm:$0xf]  ;;  %v5063_v31 = vld [vmem:[%s8392_s17 + $0x28] sm:$0xf0] }
  0x9a   : > { %1131 = vmatpush.bf16.msrb.mxu1 %v5270_v58  ;;  %1144 = vmatpush.bf16.msrb.mxu2 %v5082_v59  ;;  %v7247_v58 = vld [vmem:[%s8392_s17 + $0xa4] sm:$0xf]  ;;  %v5135_v59 = vld [vmem:[%s8392_s17 + $0xb8] sm:$0xf0]  ;;  %v7277_v32 = vld [vmem:[%s8392_s17 + $0x194] sm:$0xf]  ;;  %v5066_v42 = vor.u32 %v7229_v30, %v5063_v31 }
  0x9b   : > { %1157 = vmatpush.bf16.msrb.mxu3 %v5274_v63  ;;  %v5134_v63 = vor.u32 %v7250_v57, %v5133_v55  ;;  %v5138_v2 = vor.u32 %v7247_v58, %v5135_v59  ;;  %v5255_v33 = vld [vmem:[%s8392_s17 + $0x1a8] sm:$0xf0]  ;;  %v5253_v44 = vld [vmem:[%s8392_s17 + $0x190] sm:$0xf]  ;;  %v7280_v45 = vld [vmem:[%s8392_s17 + $0x1a4] sm:$0xf0] }
  0x9c   : > { %v5653_v34 = vld [vmem:[%s8400_s15 + $0x1c0] sm:$0xf]  ;;  %v5258_v43 = vor.u32 %v7277_v32, %v5255_v33  ;;  %v5254_v57 = vor.u32 %v7280_v45, %v5253_v44 }
  0x9d   : > { %1119 = vmatpush.bf16.msrb.mxu0 %v5054_v6  ;;  %v7241_v6 = vld [vmem:[%s8392_s17 + $0x74] sm:$0xf]  ;;  %v7383_v35 = vld [vmem:[%s8400_s15 + $0x1dc] sm:$0xf0] }
  0x9e   : > { %1132 = vmatpush.bf16.msrb.mxu1 %v5246_v10  ;;  %1145 = vmatpush.bf16.msrb.mxu2 %v5058_v11  ;;  %v5326_v10 = vor.u32 %v7298_v1, %v5325_v0  ;;  %v5110_v11 = vor.u32 %v7244_v5, %v5109_v4  ;;  %v5114_v14 = vor.u32 %v7241_v6, %v5111_v7  ;;  %v7447_v50 = vld [vmem:[%s8400_s15 + $0x3dc] sm:$0xf0] }
  0x9f   : > { %1158 = vmatpush.bf16.msrb.mxu3 %v5250_v12  ;;  %v5301_v12 = vld [vmem:[%s8392_s17 + $0x1f0] sm:$0xf]  ;;  %v5654_v46 = vor.u32 %v7383_v35, %v5653_v34  ;;  %v7375_v51 = vld [vmem:[%s8400_s15 + $0x19c] sm:$0xf0] }
  0xa0   : > { %1120 = vmatmul.bf16.vlgmr.msrb.gmra.mxu0 %v8493_v53  ;;  %v6389_v58 = vld [vmem:[%s8400_s15 + $0x780] sm:$0xf] }
  0xa1   : > { %1164 = vmatpush.bf16.msra.mxu0 %v5230_v13  ;;  %1133 = vmatmul.bf16.vlgmr.msrb.gmra.mxu1 %v8497_v56  ;;  %v7292_v13 = vld [vmem:[%s8392_s17 + $0x204] sm:$0xf0]  ;;  %v7567_v59 = vld [vmem:[%s8400_s15 + $0x79c] sm:$0xf0] }
  0xa2   : > { %1190 = vmatpush.bf16.msra.mxu2 %v5234_v16  ;;  %1159 = vmatmul.bf16.vlgmr.msrb.gmra.mxu3 %v8497_v56  ;;  %v5085_v16 = vld [vmem:[%s8392_s17 + $0x40] sm:$0xf]  ;;  %v5302_v22 = vor.u32 %v7292_v13, %v5301_v12  ;;  %v5877_v0 = vld [vmem:[%s8400_s15 + $0x380] sm:$0xf]  ;;  %v6390_v5 = vor.u32 %v7567_v59, %v6389_v58 }
  0xa3   : > { %1203 = vmatpush.bf16.msra.mxu3 %v5426_v17  ;;  %1146 = vmatmul.bf16.vlgmr.msrb.gmra.mxu2 %v8493_v53  ;;  %v7238_v17 = vld [vmem:[%s8392_s17 + $0x54] sm:$0xf0]  ;;  %v7439_v1 = vld [vmem:[%s8400_s15 + $0x39c] sm:$0xf0] }
  0xa4   : > { %1177 = vmatpush.bf16.msra.mxu1 %v5422_v24  ;;  %v5086_v23 = vor.u32 %v7238_v17, %v5085_v16  ;;  %v5277_v24 = vld [vmem:[%s8392_s17 + $0x1c0] sm:$0xf]  ;;  %v7495_v4 = vld [vmem:[%s8400_s15 + $0x55c] sm:$0xf0]  ;;  %v5878_v8 = vor.u32 %v7439_v1, %v5877_v0 }
  0xa5   : > { %1165 = vmatpush.bf16.msra.mxu0 %v5206_v25  ;;  %v7286_v25 = vld [vmem:[%s8392_s17 + $0x1d4] sm:$0xf0]  ;;  %v6357_v6 = vld [vmem:[%s8400_s15 + $0x740] sm:$0xf] }
  0xa6   : > { %1191 = vmatpush.bf16.msra.mxu2 %v5210_v28  ;;  %v5282_v28 = vor.u32 %v7283_v20, %v5279_v21  ;;  %v5278_v38 = vor.u32 %v7286_v25, %v5277_v24  ;;  %v7559_v7 = vld [vmem:[%s8400_s15 + $0x75c] sm:$0xf0] }
  0xa7   : > { %1204 = vmatpush.bf16.msra.mxu3 %v5402_v29  ;;  %v7232_v29 = vld [vmem:[%s8392_s17 + $0x24] sm:$0xf0]  ;;  %v5845_v12 = vld [vmem:[%s8400_s15 + $0x340] sm:$0xf]  ;;  %v6358_v16 = vor.u32 %v7559_v7, %v6357_v6 }
  0xa8   : > { %1178 = vmatpush.bf16.msra.mxu1 %v5398_v36  ;;  %v6165_v36 = vld [vmem:[%s8400_s15 + $0x5c0] sm:$0xf]  ;;  %v5062_v39 = vor.u32 %v7232_v29, %v5061_v26 }
  0xa9   : > { %1166 = vmatpush.bf16.msra.mxu0 %v5182_v37  ;;  %v7511_v37 = vld [vmem:[%s8400_s15 + $0x5dc] sm:$0xf0] }
  0xaa   : > { %1192 = vmatpush.bf16.msra.mxu2 %v5186_v40  ;;  %v6421_v40 = vld [vmem:[%s8400_s15 + $0x7c0] sm:$0xf]  ;;  %v6166_v47 = vor.u32 %v7511_v37, %v6165_v36 }
  0xab   : > { %1205 = vmatpush.bf16.msra.mxu3 %v5378_v41  ;;  %v7575_v41 = vld [vmem:[%s8400_s15 + $0x7dc] sm:$0xf0] }
  0xac   : > { %1179 = vmatpush.bf16.msra.mxu1 %v5374_v48  ;;  %v5621_v48 = vld [vmem:[%s8400_s15 + $0x180] sm:$0xf]  ;;  %v6422_v55 = vor.u32 %v7575_v41, %v6421_v40 }
  0xad   : > { %1167 = vmatpush.bf16.msra.mxu0 %v5158_v49  ;;  %v5909_v49 = vld [vmem:[%s8400_s15 + $0x3c0] sm:$0xf]  ;;  %v5622_v61 = vor.u32 %v7375_v51, %v5621_v48 }
  0xae   : > { %1193 = vmatpush.bf16.msra.mxu2 %v5162_v52  ;;  %v6133_v52 = vld [vmem:[%s8400_s15 + $0x580] sm:$0xf]  ;;  %v5910_v60 = vor.u32 %v7447_v50, %v5909_v49 }
  0xaf   : > { %1206 = vmatpush.bf16.msra.mxu3 %v5354_v54  ;;  %v7503_v54 = vld [vmem:[%s8400_s15 + $0x59c] sm:$0xf0] }
  0xb0   : > { %1180 = vmatpush.bf16.msra.mxu1 %v5350_v62  ;;  %v6134_v62 = vor.u32 %v7503_v54, %v6133_v52  ;;  %v7431_v13 = vld [vmem:[%s8400_s15 + $0x35c] sm:$0xf0] }
  0xb1   : > { %1168 = vmatpush.bf16.msra.mxu0 %v5134_v63  ;;  %v5589_v63 = vld [vmem:[%s8400_s15 + $0x140] sm:$0xf]  ;;  %v5846_v19 = vor.u32 %v7431_v13, %v5845_v12  ;;  %v7371_v13 = vld [vmem:[%s8400_s15 + $0x184] sm:$0xf] }
  0xb2   : > { %1194 = vmatpush.bf16.msra.mxu2 %v5138_v2  ;;  %v7367_v2 = vld [vmem:[%s8400_s15 + $0x15c] sm:$0xf0] }
  0xb3   : > { %1207 = vmatpush.bf16.msra.mxu3 %v5330_v3  ;;  %v6101_v3 = vld [vmem:[%s8400_s15 + $0x540] sm:$0xf]  ;;  %v5590_v9 = vor.u32 %v7367_v2, %v5589_v63 }
  0xb4   : > { %1181 = vmatpush.bf16.msra.mxu1 %v5326_v10  ;;  %v6102_v10 = vor.u32 %v7495_v4, %v6101_v3  ;;  %v6325_v17 = vld [vmem:[%s8400_s15 + $0x700] sm:$0xf]  ;;  %v7379_v4 = vld [vmem:[%s8400_s15 + $0x1c4] sm:$0xf] }
  0xb5   : > { %1169 = vmatpush.bf16.msra.mxu0 %v5110_v11  ;;  %v5557_v11 = vld [vmem:[%s8400_s15 + $0x100] sm:$0xf] }
  0xb6   : > { %1195 = vmatpush.bf16.msra.mxu2 %v5114_v14  ;;  %v6069_v14 = vld [vmem:[%s8400_s15 + $0x500] sm:$0xf] }
  0xb7   : > { %1208 = vmatpush.bf16.msra.mxu3 %v5306_v15  ;;  %v7487_v15 = vld [vmem:[%s8400_s15 + $0x51c] sm:$0xf0] }
  0xb8   : > { %1182 = vmatpush.bf16.msra.mxu1 %v5302_v22  ;;  %v7551_v18 = vld [vmem:[%s8400_s15 + $0x71c] sm:$0xf0]  ;;  %v6070_v21 = vor.u32 %v7487_v15, %v6069_v14  ;;  %v5623_v14 = vld [vmem:[%s8400_s15 + $0x1a0] sm:$0xf0] }
  0xb9   : > { %1170 = vmatpush.bf16.msra.mxu0 %v5086_v23  ;;  %v5813_v22 = vld [vmem:[%s8400_s15 + $0x300] sm:$0xf] }
  0xba   : > { %1196 = vmatpush.bf16.msra.mxu2 %v5090_v27  ;;  %v7423_v23 = vld [vmem:[%s8400_s15 + $0x31c] sm:$0xf0]  ;;  %v6326_v27 = vor.u32 %v7551_v18, %v6325_v17  ;;  %v5626_v17 = vor.u32 %v7371_v13, %v5623_v14  ;;  %v5783_v13 = vld [vmem:[%s8400_s15 + $0x2e0] sm:$0xf0] }
  0xbb   : > { %1209 = vmatpush.bf16.msra.mxu3 %v5282_v28  ;;  %v7351_v24 = vld [vmem:[%s8400_s15 + $0xdc] sm:$0xf0]  ;;  %v5814_v30 = vor.u32 %v7423_v23, %v5813_v22  ;;  %v7443_v23 = vld [vmem:[%s8400_s15 + $0x3c4] sm:$0xf] }
  0xbc   : > { %1183 = vmatpush.bf16.msra.mxu1 %v5278_v38  ;;  %v6037_v25 = vld [vmem:[%s8400_s15 + $0x4c0] sm:$0xf] }
  0xbd   : > { %1171 = vmatpush.bf16.msra.mxu0 %v5062_v39  ;;  %v7479_v26 = vld [vmem:[%s8400_s15 + $0x4dc] sm:$0xf0] }
  0xbe   : > { %1197 = vmatpush.bf16.msra.mxu2 %v5066_v42  ;;  %v6293_v28 = vld [vmem:[%s8400_s15 + $0x6c0] sm:$0xf]  ;;  %v6038_v32 = vor.u32 %v7479_v26, %v6037_v25 }
  0xbf   : > { %1210 = vmatpush.bf16.msra.mxu3 %v5258_v43  ;;  %v7543_v29 = vld [vmem:[%s8400_s15 + $0x6dc] sm:$0xf0] }
  0xc0   : > { %1172 = vmatmul.bf16.vlgmr.msra.gmra.mxu0 %v8493_v53  ;;  %1184 = vmatpush.bf16.msra.mxu1 %v5254_v57  ;;  %v5493_v33 = vld [vmem:[%s8400_s15 + $0x80] sm:$0xf]  ;;  %v6294_v39 = vor.u32 %v7543_v29, %v6293_v28  ;;  %v7363_v29 = vld [vmem:[%s8400_s15 + $0x144] sm:$0xf] }
  0xc1   : > { %3540 = vmatpush.bf16.msrb.mxu0 %v5654_v46  ;;  %1198 = vmatmul.bf16.vlgmr.msra.gmra.mxu2 %v8493_v53  ;;  %v7359_v53 = vld [vmem:[%s8400_s15 + $0x11c] sm:$0xf0] }
  0xc2   : > { %3566 = vmatpush.bf16.msrb.mxu2 %v6166_v47  ;;  %1211 = vmatmul.bf16.vlgmr.msra.gmra.mxu3 %v8497_v56  ;;  %v5558_v20 = vor.u32 %v7359_v53, %v5557_v11  ;;  %v5781_v34 = vld [vmem:[%s8400_s15 + $0x2c0] sm:$0xf] }
  0xc3   : > { %3579 = vmatpush.bf16.msrb.mxu3 %v6422_v55  ;;  %1185 = vmatmul.bf16.vlgmr.msra.gmra.mxu1 %v8497_v56  ;;  %v5525_v56 = vld [vmem:[%s8400_s15 + $0xc0] sm:$0xf] }
  0xc4   : > { %3553 = vmatpush.bf16.msrb.mxu1 %v5910_v60  ;;  %v5526_v31 = vor.u32 %v7351_v24, %v5525_v56  ;;  %v7415_v35 = vld [vmem:[%s8400_s15 + $0x2dc] sm:$0xf0]  ;;  %v5911_v24 = vld [vmem:[%s8400_s15 + $0x3e0] sm:$0xf0] }
  0xc5   : > { %3541 = vmatpush.bf16.msrb.mxu0 %v5622_v61  ;;  %v7343_v36 = vld [vmem:[%s8400_s15 + $0x9c] sm:$0xf0]  ;;  %v5782_v42 = vor.u32 %v7415_v35, %v5781_v34  ;;  %v5914_v26 = vor.u32 %v7443_v23, %v5911_v24 }
  0xc6   : > { %3567 = vmatpush.bf16.msrb.mxu2 %v6134_v62  ;;  %v6005_v37 = vld [vmem:[%s8400_s15 + $0x480] sm:$0xf]  ;;  %v5494_v43 = vor.u32 %v7343_v36, %v5493_v33  ;;  %v7435_v36 = vld [vmem:[%s8400_s15 + $0x384] sm:$0xf] }
  0xc7   : > { %3580 = vmatpush.bf16.msrb.mxu3 %v6390_v5  ;;  %v7471_v38 = vld [vmem:[%s8400_s15 + $0x49c] sm:$0xf0]  ;;  %v5655_v5 = vld [vmem:[%s8400_s15 + $0x1e0] sm:$0xf0] }
  0xc8   : > { %3554 = vmatpush.bf16.msrb.mxu1 %v5878_v8  ;;  %v6261_v40 = vld [vmem:[%s8400_s15 + $0x680] sm:$0xf]  ;;  %v6006_v44 = vor.u32 %v7471_v38, %v6005_v37  ;;  %v5879_v37 = vld [vmem:[%s8400_s15 + $0x3a0] sm:$0xf0] }
  0xc9   : > { %3542 = vmatpush.bf16.msrb.mxu0 %v5590_v9  ;;  %v7535_v41 = vld [vmem:[%s8400_s15 + $0x69c] sm:$0xf0] }
  0xca   : > { %3568 = vmatpush.bf16.msrb.mxu2 %v6102_v10  ;;  %v5461_v45 = vld [vmem:[%s8400_s15 + $0x40] sm:$0xf]  ;;  %v6262_v51 = vor.u32 %v7535_v41, %v6261_v40  ;;  %v5658_v10 = vor.u32 %v7379_v4, %v5655_v5  ;;  %v7355_v41 = vld [vmem:[%s8400_s15 + $0x104] sm:$0xf] }
  0xcb   : > { %3581 = vmatpush.bf16.msrb.mxu3 %v6358_v16  ;;  %v5749_v46 = vld [vmem:[%s8400_s15 + $0x280] sm:$0xf]  ;;  %v7339_v4 = vld [vmem:[%s8400_s15 + $0x84] sm:$0xf] }
  0xcc   : > { %3555 = vmatpush.bf16.msrb.mxu1 %v5846_v19  ;;  %v7407_v47 = vld [vmem:[%s8400_s15 + $0x29c] sm:$0xf0] }
  0xcd   : > { %3543 = vmatpush.bf16.msrb.mxu0 %v5558_v20  ;;  %v7335_v48 = vld [vmem:[%s8400_s15 + $0x5c] sm:$0xf0]  ;;  %v5750_v55 = vor.u32 %v7407_v47, %v5749_v46  ;;  %v7427_v47 = vld [vmem:[%s8400_s15 + $0x344] sm:$0xf] }
  0xce   : > { %3569 = vmatpush.bf16.msrb.mxu2 %v6070_v21  ;;  %v5973_v49 = vld [vmem:[%s8400_s15 + $0x440] sm:$0xf]  ;;  %v5462_v58 = vor.u32 %v7335_v48, %v5461_v45  ;;  %v5847_v48 = vld [vmem:[%s8400_s15 + $0x360] sm:$0xf0] }
  0xcf   : > { %3582 = vmatpush.bf16.msrb.mxu3 %v6326_v27  ;;  %v7463_v50 = vld [vmem:[%s8400_s15 + $0x45c] sm:$0xf0] }
  0xd0   : > { %3556 = vmatpush.bf16.msrb.mxu1 %v5814_v30  ;;  %v6229_v52 = vld [vmem:[%s8400_s15 + $0x640] sm:$0xf]  ;;  %v5974_v59 = vor.u32 %v7463_v50, %v5973_v49 }
  0xd1   : > { %3544 = vmatpush.bf16.msrb.mxu0 %v5526_v31  ;;  %v7527_v54 = vld [vmem:[%s8400_s15 + $0x65c] sm:$0xf0]  ;;  %v5591_v31 = vld [vmem:[%s8400_s15 + $0x160] sm:$0xf0] }
  0xd2   : > { %3570 = vmatpush.bf16.msrb.mxu2 %v6038_v32  ;;  %v5429_v57 = vld [vmem:[%s8400_s15] sm:$0xf]  ;;  %v6230_v2 = vor.u32 %v7527_v54, %v6229_v52  ;;  %v5594_v34 = vor.u32 %v7363_v29, %v5591_v31  ;;  %v5850_v52 = vor.u32 %v7427_v47, %v5847_v48  ;;  %v7347_v54 = vld [vmem:[%s8400_s15 + $0xc4] sm:$0xf] }
  0xd3   : > { %3583 = vmatpush.bf16.msrb.mxu3 %v6294_v39  ;;  %v7327_v60 = vld [vmem:[%s8400_s15 + $0x1c] sm:$0xf0]  ;;  %v5882_v39 = vor.u32 %v7435_v36, %v5879_v37  ;;  %v5431_v36 = vld [vmem:[%s8400_s15 + $0x20] sm:$0xf0] }
  0xd4   : > { %3557 = vmatpush.bf16.msrb.mxu1 %v5782_v42  ;;  %v5717_v61 = vld [vmem:[%s8400_s15 + $0x240] sm:$0xf]  ;;  %v5430_v7 = vor.u32 %v7327_v60, %v5429_v57  ;;  %v5559_v42 = vld [vmem:[%s8400_s15 + $0x120] sm:$0xf0] }
  0xd5   : > { %3545 = vmatpush.bf16.msrb.mxu0 %v5494_v43  ;;  %v7399_v62 = vld [vmem:[%s8400_s15 + $0x25c] sm:$0xf0]  ;;  %v7419_v60 = vld [vmem:[%s8400_s15 + $0x304] sm:$0xf] }
  0xd6   : > { %3571 = vmatpush.bf16.msrb.mxu2 %v6006_v44  ;;  %v5941_v63 = vld [vmem:[%s8400_s15 + $0x400] sm:$0xf]  ;;  %v5718_v6 = vor.u32 %v7399_v62, %v5717_v61  ;;  %v5562_v44 = vor.u32 %v7355_v41, %v5559_v42  ;;  %v5815_v61 = vld [vmem:[%s8400_s15 + $0x320] sm:$0xf0] }
  0xd7   : > { %3584 = vmatpush.bf16.msrb.mxu3 %v6262_v51  ;;  %v7455_v0 = vld [vmem:[%s8400_s15 + $0x41c] sm:$0xf0]  ;;  %v6167_v41 = vld [vmem:[%s8400_s15 + $0x5e0] sm:$0xf0] }
  0xd8   : > { %v6677_v1 = vld [vmem:[%s8400_s15 + $0x9c0] sm:$0xf]  ;;  %3558 = vmatpush.bf16.msrb.mxu1 %v5750_v55  ;;  %v5942_v8 = vor.u32 %v7455_v0, %v5941_v63  ;;  %v5527_v55 = vld [vmem:[%s8400_s15 + $0xe0] sm:$0xf0]  ;;  %v8724_v63 = vld [vmem:[%s8398_s14] sm:$0x3f] }
  0xd9   : > { %v7639_v3 = vld [vmem:[%s8400_s15 + $0x9dc] sm:$0xf0]  ;;  %3546 = vmatpush.bf16.msrb.mxu0 %v5462_v58  ;;  %v5530_v62 = vor.u32 %v7347_v54, %v5527_v55  ;;  %v568_v5 = vperm.slane %v8724_v63, 0  ;;  %v7499_v54 = vld [vmem:[%s8400_s15 + $0x584] sm:$0xf] }
  0xda   : > { %3572 = vmatpush.bf16.msrb.mxu2 %v5974_v59  ;;  %v6678_v9 = vor.u32 %v7639_v3, %v6677_v1  ;;  %v6645_v11 = vld [vmem:[%s8400_s15 + $0x980] sm:$0xf]  ;;  %v5818_v1 = vor.u32 %v7419_v60, %v5815_v61  ;;  %v6135_v55 = vld [vmem:[%s8400_s15 + $0x5a0] sm:$0xf0] }
  0xdb   : > { %3585 = vmatpush.bf16.msrb.mxu3 %v6230_v2  ;;  %v7631_v12 = vld [vmem:[%s8400_s15 + $0x99c] sm:$0xf0]  ;;  %v7387_v61 = vld [vmem:[%s8400_s15 + $0x204] sm:$0xf] }
  0xdc   : > { %3559 = vmatpush.bf16.msrb.mxu1 %v5718_v6  ;;  %v6646_v53 = vor.u32 %v7631_v12, %v6645_v11  ;;  %v5685_v15 = vld [vmem:[%s8400_s15 + $0x200] sm:$0xf]  ;;  %v7411_v11 = vld [vmem:[%s8400_s15 + $0x2c4] sm:$0xf] }
  0xdd   : > { %3547 = vmatpush.bf16.msrb.mxu0 %v5430_v7  ;;  %v7391_v16 = vld [vmem:[%s8400_s15 + $0x21c] sm:$0xf0]  ;;  %v5495_v7 = vld [vmem:[%s8400_s15 + $0xa0] sm:$0xf0]  ;;  %v5786_v14 = vor.u32 %v7411_v11, %v5783_v13 }
  0xde   : > { %3573 = vmatpush.bf16.msrb.mxu2 %v5942_v8  ;;  %v5686_v18 = vor.u32 %v7391_v16, %v5685_v15  ;;  %v6197_v19 = vld [vmem:[%s8400_s15 + $0x600] sm:$0xf]  ;;  %v5498_v8 = vor.u32 %v7339_v4, %v5495_v7  ;;  %v6423_v4 = vld [vmem:[%s8400_s15 + $0x7e0] sm:$0xf0] }
  0xdf   : > { %v7519_v20 = vld [vmem:[%s8400_s15 + $0x61c] sm:$0xf0]  ;;  %v7491_v7 = vld [vmem:[%s8400_s15 + $0x544] sm:$0xf] }
  0xe0   : > { %v6933_v21 = vld [vmem:[%s8400_s15 + $0xbc0] sm:$0xf]  ;;  %v6198_v56 = vor.u32 %v7519_v20, %v6197_v19  ;;  %3560 = vmatpush.bf16.msrb.mxu1 %v5686_v18  ;;  %v569_v19 = vperm.slane %v8724_v63, 1  ;;  %v7563_v11 = vld [vmem:[%s8400_s15 + $0x784] sm:$0xf] }
  0xe1   : > { %3592 = vmatpush.bf16.msra.mxu0 %v6678_v9  ;;  %v7703_v22 = vld [vmem:[%s8400_s15 + $0xbdc] sm:$0xf0] }
  0xe2   : > { %3618 = vmatpush.bf16.msra.mxu2 %v5658_v10  ;;  %v6934_v25 = vor.u32 %v7703_v22, %v6933_v21  ;;  %v6613_v27 = vld [vmem:[%s8400_s15 + $0x940] sm:$0xf]  ;;  %3586 = vmatpush.bf16.msrb.mxu3 %v6198_v56  ;;  %v5463_v56 = vld [vmem:[%s8400_s15 + $0x60] sm:$0xf0] }
  0xe3   : > { %v7623_v28 = vld [vmem:[%s8400_s15 + $0x95c] sm:$0xf0] }
  0xe4   : > { %v6614_v30 = vor.u32 %v7623_v28, %v6613_v27  ;;  %v6901_v32 = vld [vmem:[%s8400_s15 + $0xb80] sm:$0xf]  ;;  %3605 = vmatpush.bf16.msra.mxu1 %v6934_v25  ;;  %v7403_v25 = vld [vmem:[%s8400_s15 + $0x284] sm:$0xf] }
  0xe5   : > { %3593 = vmatpush.bf16.msra.mxu0 %v6646_v53  ;;  %v7695_v33 = vld [vmem:[%s8400_s15 + $0xb9c] sm:$0xf0]  ;;  %v5751_v28 = vld [vmem:[%s8400_s15 + $0x2a0] sm:$0xf0] }
  0xe6   : > { %3619 = vmatpush.bf16.msra.mxu2 %v5626_v17  ;;  %3631 = vmatpush.bf16.msra.mxu3 %v5914_v26  ;;  %v6902_v35 = vor.u32 %v7695_v33, %v6901_v32  ;;  %v6581_v38 = vld [vmem:[%s8400_s15 + $0x900] sm:$0xf]  ;;  %v7331_v17 = vld [vmem:[%s8400_s15 + $0x44] sm:$0xf]  ;;  %v5754_v29 = vor.u32 %v7403_v25, %v5751_v28 }
  0xe7   : > { %v7615_v40 = vld [vmem:[%s8400_s15 + $0x91c] sm:$0xf0]  ;;  %v5466_v22 = vor.u32 %v7331_v17, %v5463_v56  ;;  %v6359_v17 = vld [vmem:[%s8400_s15 + $0x760] sm:$0xf0] }
  0xe8   : > { %v6582_v43 = vor.u32 %v7615_v40, %v6581_v38  ;;  %v6869_v45 = vld [vmem:[%s8400_s15 + $0xb40] sm:$0xf]  ;;  %3606 = vmatpush.bf16.msra.mxu1 %v6902_v35  ;;  %v7323_v35 = vld [vmem:[%s8400_s15 + $0x4] sm:$0xf] }
  0xe9   : > { %3594 = vmatpush.bf16.msra.mxu0 %v6614_v30  ;;  %v7687_v46 = vld [vmem:[%s8400_s15 + $0xb5c] sm:$0xf0]  ;;  %v7507_v40 = vld [vmem:[%s8400_s15 + $0x5c4] sm:$0xf] }
  0xea   : > { %3620 = vmatpush.bf16.msra.mxu2 %v5594_v34  ;;  %v6549_v49 = vld [vmem:[%s8400_s15 + $0x8c0] sm:$0xf]  ;;  %3632 = vmatpush.bf16.msra.mxu3 %v5882_v39  ;;  %v6870_v51 = vor.u32 %v7687_v46, %v6869_v45  ;;  %v5434_v39 = vor.u32 %v7323_v35, %v5431_v36  ;;  %v7547_v56 = vld [vmem:[%s8400_s15 + $0x704] sm:$0xf] }
  0xeb   : > { %v7607_v50 = vld [vmem:[%s8400_s15 + $0x8dc] sm:$0xf0]  ;;  %v6007_v25 = vld [vmem:[%s8400_s15 + $0x4a0] sm:$0xf0] }
  0xec   : > { %v6837_v57 = vld [vmem:[%s8400_s15 + $0xb00] sm:$0xf]  ;;  %v6550_v58 = vor.u32 %v7607_v50, %v6549_v49  ;;  %3607 = vmatpush.bf16.msra.mxu1 %v6870_v51  ;;  %v7395_v49 = vld [vmem:[%s8400_s15 + $0x244] sm:$0xf] }
  0xed   : > { %3595 = vmatpush.bf16.msra.mxu0 %v6582_v43  ;;  %v7679_v59 = vld [vmem:[%s8400_s15 + $0xb1c] sm:$0xf0]  ;;  %v6170_v43 = vor.u32 %v7507_v40, %v6167_v41  ;;  %v5719_v50 = vld [vmem:[%s8400_s15 + $0x260] sm:$0xf0] }
  0xee   : > { %3621 = vmatpush.bf16.msra.mxu2 %v5562_v44  ;;  %3633 = vmatpush.bf16.msra.mxu3 %v5850_v52  ;;  %v6838_v0 = vor.u32 %v7679_v59, %v6837_v57  ;;  %v6517_v2 = vld [vmem:[%s8400_s15 + $0x880] sm:$0xf]  ;;  %v5722_v52 = vor.u32 %v7395_v49, %v5719_v50  ;;  %v7539_v28 = vld [vmem:[%s8400_s15 + $0x6c4] sm:$0xf] }
  0xef   : > { %v7599_v3 = vld [vmem:[%s8400_s15 + $0x89c] sm:$0xf0]  ;;  %v7635_v40 = vld [vmem:[%s8400_s15 + $0x9c4] sm:$0xf] }
  0xf0   : > { %v6518_v6 = vor.u32 %v7599_v3, %v6517_v2  ;;  %3608 = vmatpush.bf16.msra.mxu1 %v6838_v0  ;;  %v6805_v9 = vld [vmem:[%s8400_s15 + $0xac0] sm:$0xf]  ;;  %v7571_v3 = vld [vmem:[%s8400_s15 + $0x7c4] sm:$0xf] }
  0xf1   : > { %3596 = vmatpush.bf16.msra.mxu0 %v6550_v58  ;;  %v7671_v10 = vld [vmem:[%s8400_s15 + $0xadc] sm:$0xf0]  ;;  %v6138_v58 = vor.u32 %v7499_v54, %v6135_v55  ;;  %v6679_v41 = vld [vmem:[%s8400_s15 + $0x9e0] sm:$0xf0] }
  0xf2   : > { %3622 = vmatpush.bf16.msra.mxu2 %v5530_v62  ;;  %3634 = vmatpush.bf16.msra.mxu3 %v5818_v1  ;;  %v6806_v12 = vor.u32 %v7671_v10, %v6805_v9  ;;  %v6485_v15 = vld [vmem:[%s8400_s15 + $0x840] sm:$0xf]  ;;  %v5687_v62 = vld [vmem:[%s8400_s15 + $0x220] sm:$0xf0]  ;;  %v6682_v49 = vor.u32 %v7635_v40, %v6679_v41 }
  0xf3   : > { %v7591_v16 = vld [vmem:[%s8400_s15 + $0x85c] sm:$0xf0]  ;;  %v5690_v2 = vor.u32 %v7387_v61, %v5687_v62  ;;  %v7627_v50 = vld [vmem:[%s8400_s15 + $0x984] sm:$0xf] }
  0xf4   : > { %v6486_v21 = vor.u32 %v7591_v16, %v6485_v15  ;;  %3609 = vmatpush.bf16.msra.mxu1 %v6806_v12  ;;  %v6773_v23 = vld [vmem:[%s8400_s15 + $0xa80] sm:$0xf]  ;;  %v6391_v12 = vld [vmem:[%s8400_s15 + $0x7a0] sm:$0xf0] }
  0xf5   : > { %3597 = vmatpush.bf16.msra.mxu0 %v6518_v6  ;;  %v7663_v24 = vld [vmem:[%s8400_s15 + $0xa9c] sm:$0xf0]  ;;  %v6426_v6 = vor.u32 %v7571_v3, %v6423_v4  ;;  %v6394_v13 = vor.u32 %v7563_v11, %v6391_v12  ;;  %v7555_v16 = vld [vmem:[%s8400_s15 + $0x744] sm:$0xf] }
  0xf6   : > { %3623 = vmatpush.bf16.msra.mxu2 %v5498_v8  ;;  %3635 = vmatpush.bf16.msra.mxu3 %v5786_v14  ;;  %v6774_v27 = vor.u32 %v7663_v24, %v6773_v23  ;;  %v6453_v30 = vld [vmem:[%s8400_s15 + $0x800] sm:$0xf]  ;;  %v6103_v8 = vld [vmem:[%s8400_s15 + $0x560] sm:$0xf0] }
  0xf7   : > { %v7583_v31 = vld [vmem:[%s8400_s15 + $0x81c] sm:$0xf0]  ;;  %v6106_v10 = vor.u32 %v7491_v7, %v6103_v8  ;;  %v6071_v14 = vld [vmem:[%s8400_s15 + $0x520] sm:$0xf0] }
  0xf8   : > { %v6454_v34 = vor.u32 %v7583_v31, %v6453_v30  ;;  %3610 = vmatpush.bf16.msra.mxu1 %v6774_v27  ;;  %v6741_v44 = vld [vmem:[%s8400_s15 + $0xa40] sm:$0xf]  ;;  %v7467_v24 = vld [vmem:[%s8400_s15 + $0x484] sm:$0xf] }
  0xf9   : > { %3598 = vmatpush.bf16.msra.mxu0 %v6486_v21  ;;  %v7655_v45 = vld [vmem:[%s8400_s15 + $0xa5c] sm:$0xf0]  ;;  %v6010_v27 = vor.u32 %v7467_v24, %v6007_v25  ;;  %v6647_v55 = vld [vmem:[%s8400_s15 + $0x9a0] sm:$0xf0] }
  0xfa   : > { %3624 = vmatpush.bf16.msra.mxu2 %v5466_v22  ;;  %3636 = vmatpush.bf16.msra.mxu3 %v5754_v29  ;;  %v6742_v48 = vor.u32 %v7655_v45, %v6741_v44  ;;  %v6709_v59 = vld [vmem:[%s8400_s15 + $0xa00] sm:$0xf]  ;;  %v6327_v22 = vld [vmem:[%s8400_s15 + $0x720] sm:$0xf0]  ;;  %v571_v44 = vperm.slane %v8724_v63, 3 }
  0xfb   : > { %v7647_v60 = vld [vmem:[%s8400_s15 + $0xa1c] sm:$0xf0]  ;;  %v6330_v23 = vor.u32 %v7547_v56, %v6327_v22  ;;  %v6295_v29 = vld [vmem:[%s8400_s15 + $0x6e0] sm:$0xf0] }
  0xfc   : > { %3611 = vmatpush.bf16.msra.mxu1 %v6742_v48  ;;  %v6710_v1 = vor.u32 %v7647_v60, %v6709_v59  ;;  %v6298_v30 = vor.u32 %v7539_v28, %v6295_v29  ;;  %v7451_v45 = vld [vmem:[%s8400_s15 + $0x404] sm:$0xf] }
  0xfd   : > { %v1069_v53 = vpop.f32.mrf.mxu0  ;;  %3599 = vmatpush.bf16.msra.mxu0 %v6454_v34  ;;  %v5975_v34 = vld [vmem:[%s8400_s15 + $0x460] sm:$0xf0] }
  0xfe   : > { %v1070_v18 = vadd.f32 %v1069_v53, %v568_v5  ;;  %3625 = vmatpush.bf16.msra.mxu2 %v5434_v39  ;;  %3637 = vmatpush.bf16.msra.mxu3 %v5722_v52  ;;  %v7483_v53 = vld [vmem:[%s8400_s15 + $0x504] sm:$0xf] }
  0xff   : > { %v6074_v15 = vor.u32 %v7483_v53, %v6071_v14  ;;  %v7699_v3 = vld [vmem:[%s8400_s15 + $0xbc4] sm:$0xf] }
 0x100   : > { %v1082_v20 = vpop.f32.mrf.mxu1  ;;  %3612 = vmatpush.bf16.msra.mxu1 %v6710_v1  ;;  %v6935_v4 = vld [vmem:[%s8400_s15 + $0xbe0] sm:$0xf0] }
 0x101   : > { %v1083_v26 = vadd.f32 %v1082_v20, %v1070_v18  ;;  %v6362_v18 = vor.u32 %v7555_v16, %v6359_v17  ;;  %v6039_v20 = vld [vmem:[%s8400_s15 + $0x4e0] sm:$0xf0]  ;;  %v6938_v11 = vor.u32 %v7699_v3, %v6935_v4 }
 0x102   : > { %3638 = vmatpush.bf16.msra.mxu3 %v5690_v2  ;;  %v6650_v2 = vor.u32 %v7627_v50, %v6647_v55  ;;  %v7515_v7 = vld [vmem:[%s8400_s15 + $0x604] sm:$0xf] }
 0x103   : > { %v1216_v33 = vmax.f32 %v1083_v26, 0.0  ;;  %v570_v26 = vperm.slane %v8724_v63, 2  ;;  %v6199_v8 = vld [vmem:[%s8400_s15 + $0x620] sm:$0xf0] }
 0x104   : > { %v1095_v32 = vpop.f32.mrf.mxu2  ;;  %v7691_v53 = vld [vmem:[%s8400_s15 + $0xb84] sm:$0xf] }
 0x105   : > { %v1096_v37 = vadd.f32 %v1095_v32, %v569_v19  ;;  %v8750_v42 = vpack.c.bf16 %v1216_v33, %v1216_v33  ;;  %v1071_v47 = vpop.f32.mrf.mxu0  ;;  %v7475_v19 = vld [vmem:[%s8400_s15 + $0x4c4] sm:$0xf] }
 0x106   : > { %v6042_v21 = vor.u32 %v7475_v19, %v6039_v20  ;;  %v7459_v33 = vld [vmem:[%s8400_s15 + $0x444] sm:$0xf] }
 0x107   : > { %v1108_v38 = vpop.f32.mrf.mxu3  ;;  %3548 = vmatmul.bf16.vlgmr.msrb.gmra.mxu0 %v8750_v42  ;;  %v5978_v36 = vor.u32 %v7459_v33, %v5975_v34  ;;  %v6903_v14 = vld [vmem:[%s8400_s15 + $0xba0] sm:$0xf0] }
 0x108   : > { %v1109_v46 = vadd.f32 %v1108_v38, %v1096_v37  ;;  %v1084_v51 = vpop.f32.mrf.mxu1  ;;  %3644 = vmatpush.bf16.msrb.mxu0 %v6170_v43  ;;  %v7531_v37 = vld [vmem:[%s8400_s15 + $0x684] sm:$0xf]  ;;  %v6906_v19 = vor.u32 %v7691_v53, %v6903_v14  ;;  %v5917_v14 = vld [vmem:[%s8400_s15 + $0x3c8] sm:$0xf] }
 0x109   : > { %v6263_v38 = vld [vmem:[%s8400_s15 + $0x6a0] sm:$0xf0] }
 0x10a   : > { %v1217_v57 = vmax.f32 %v1109_v46, 0.0  ;;  %v6266_v43 = vor.u32 %v7531_v37, %v6263_v38  ;;  %v5943_v46 = vld [vmem:[%s8400_s15 + $0x420] sm:$0xf0] }
 0x10b   : > { %v5946_v48 = vor.u32 %v7451_v45, %v5943_v46  ;;  %v7611_v17 = vld [vmem:[%s8400_s15 + $0x904] sm:$0xf]  ;;  %v6173_v46 = vld [vmem:[%s8400_s15 + $0x5c8] sm:$0xf] }
 0x10c   : > { %v8763_v0 = vpack.c.bf16 %v1217_v57, %v1217_v57  ;;  %v1097_v5 = vpop.f32.mrf.mxu2  ;;  %3645 = vmatpush.bf16.msrb.mxu0 %v6138_v58  ;;  %v7523_v57 = vld [vmem:[%s8400_s15 + $0x644] sm:$0xf] }
 0x10d   : > { %v6231_v58 = vld [vmem:[%s8400_s15 + $0x660] sm:$0xf0] }
 0x10e   : > { %3561 = vmatmul.bf16.vlgmr.msrb.gmra.mxu1 %v8763_v0  ;;  %v6234_v62 = vor.u32 %v7523_v57, %v6231_v58  ;;  %v7619_v5 = vld [vmem:[%s8400_s15 + $0x944] sm:$0xf]  ;;  %v7384_v57 = vld [vmem:[%s8400_s15 + $0x1e4] sm:$0xf0] }
 0x10f   : > { %v1110_v9 = vpop.f32.mrf.mxu3  ;;  %3657 = vmatpush.bf16.msrb.mxu1 %v6426_v6  ;;  %v6615_v6 = vld [vmem:[%s8400_s15 + $0x960] sm:$0xf0] }
 0x110   : > { %3646 = vmatpush.bf16.msrb.mxu0 %v6106_v10  ;;  %v6202_v10 = vor.u32 %v7515_v7, %v6199_v8  ;;  %v6871_v56 = vld [vmem:[%s8400_s15 + $0xb60] sm:$0xf0]  ;;  %v5629_v7 = vld [vmem:[%s8400_s15 + $0x188] sm:$0xf] }
 0x111   : > { %v7603_v22 = vld [vmem:[%s8400_s15 + $0x8c4] sm:$0xf] }
 0x112   : > { %v7595_v28 = vld [vmem:[%s8400_s15 + $0x884] sm:$0xf] }
 0x113   : > { %3658 = vmatpush.bf16.msrb.mxu1 %v6394_v13  ;;  %v6618_v13 = vor.u32 %v7619_v5, %v6615_v6  ;;  %v6519_v29 = vld [vmem:[%s8400_s15 + $0x8a0] sm:$0xf0] }
 0x114   : > { %3647 = vmatpush.bf16.msrb.mxu0 %v6074_v15  ;;  %v7667_v33 = vld [vmem:[%s8400_s15 + $0xac4] sm:$0xf] }
 0x115   : > { %v6807_v34 = vld [vmem:[%s8400_s15 + $0xae0] sm:$0xf0] }
 0x116   : > { %v6810_v38 = vor.u32 %v7667_v33, %v6807_v34  ;;  %v7659_v41 = vld [vmem:[%s8400_s15 + $0xa84] sm:$0xf]  ;;  %v7440_v33 = vld [vmem:[%s8400_s15 + $0x3a4] sm:$0xf0] }
 0x117   : > { %3659 = vmatpush.bf16.msrb.mxu1 %v6362_v18  ;;  %v6583_v18 = vld [vmem:[%s8400_s15 + $0x920] sm:$0xf0]  ;;  %v6077_v34 = vld [vmem:[%s8400_s15 + $0x508] sm:$0xf] }
 0x118   : > { %3648 = vmatpush.bf16.msrb.mxu0 %v6042_v21  ;;  %v6586_v20 = vor.u32 %v7611_v17, %v6583_v18  ;;  %v7683_v21 = vld [vmem:[%s8400_s15 + $0xb44] sm:$0xf]  ;;  %v7448_v17 = vld [vmem:[%s8400_s15 + $0x3e4] sm:$0xf0] }
 0x119   : > { %v6874_v24 = vor.u32 %v7683_v21, %v6871_v56  ;;  %v6455_v45 = vld [vmem:[%s8400_s15 + $0x820] sm:$0xf0]  ;;  %v6109_v18 = vld [vmem:[%s8400_s15 + $0x548] sm:$0xf] }
 0x11a   : > { %v7651_v58 = vld [vmem:[%s8400_s15 + $0xa44] sm:$0xf] }
 0x11b   : > { %3660 = vmatpush.bf16.msrb.mxu1 %v6330_v23  ;;  %v6551_v23 = vld [vmem:[%s8400_s15 + $0x8e0] sm:$0xf0] }
 0x11c   : > { %3649 = vmatpush.bf16.msrb.mxu0 %v6010_v27  ;;  %v6554_v25 = vor.u32 %v7603_v22, %v6551_v23  ;;  %v6839_v27 = vld [vmem:[%s8400_s15 + $0xb20] sm:$0xf0] }
 0x11d   : > { %v1121_v31 = vpop.f32.mrf.mxu0 }
 0x11e   : > { %v1134_v32 = vpop.f32.mrf.mxu1  ;;  %v1122_v35 = vadd.f32 %v1121_v31, %v570_v26  ;;  %v7675_v26 = vld [vmem:[%s8400_s15 + $0xb04] sm:$0xf]  ;;  %v572_v31 = vperm.slane %v8724_v63, 4 }
 0x11f   : > { %3661 = vmatpush.bf16.msrb.mxu1 %v6298_v30  ;;  %v6842_v30 = vor.u32 %v7675_v26, %v6839_v27  ;;  %v5918_v27 = vor.u32 %v7448_v17, %v5917_v14  ;;  %v7464_v14 = vld [vmem:[%s8400_s15 + $0x464] sm:$0xf0] }
 0x120   : > { %v1135_v39 = vadd.f32 %v1134_v32, %v1122_v35  ;;  %3650 = vmatpush.bf16.msrb.mxu0 %v5978_v36  ;;  %v6522_v32 = vor.u32 %v7595_v28, %v6519_v29  ;;  %v7587_v35 = vld [vmem:[%s8400_s15 + $0x844] sm:$0xf]  ;;  %v5885_v29 = vld [vmem:[%s8400_s15 + $0x388] sm:$0xf] }
 0x121   : > { %v6487_v36 = vld [vmem:[%s8400_s15 + $0x860] sm:$0xf0]  ;;  %v5469_v17 = vld [vmem:[%s8400_s15 + $0x48] sm:$0xf] }
 0x122   : > { %v1218_v47 = vmax.f32 %v1135_v39, 0.0  ;;  %v6490_v40 = vor.u32 %v7587_v35, %v6487_v36  ;;  %v7488_v35 = vld [vmem:[%s8400_s15 + $0x524] sm:$0xf0] }
 0x123   : > { %3662 = vmatpush.bf16.msrb.mxu1 %v6266_v43  ;;  %v6775_v43 = vld [vmem:[%s8400_s15 + $0xaa0] sm:$0xf0] }
 0x124   : > { %v8795_v51 = vpack.c.bf16 %v1218_v47, %v1218_v47  ;;  %3651 = vmatpush.bf16.msrb.mxu0 %v5946_v48  ;;  %v7512_v47 = vld [vmem:[%s8400_s15 + $0x5e4] sm:$0xf0]  ;;  %v6778_v50 = vor.u32 %v7659_v41, %v6775_v43  ;;  %v5886_v41 = vor.u32 %v7440_v33, %v5885_v29  ;;  %v6078_v43 = vor.u32 %v7488_v35, %v6077_v34  ;;  %v5663_v29 = vld [vmem:[%s8400_s15 + $0x1e8] sm:$0xf0] }
 0x125   : > { %v1160_v54 = vpop.f32.mrf.mxu3  ;;  %v1123_v60 = vpop.f32.mrf.mxu0  ;;  %v6685_v33 = vld [vmem:[%s8400_s15 + $0x9c8] sm:$0xf] }
 0x126   : > { %v1147_v52 = vpop.f32.mrf.mxu2  ;;  %v1136_v61 = vpop.f32.mrf.mxu1  ;;  %3574 = vmatmul.bf16.vlgmr.msrb.gmra.mxu2 %v8795_v51  ;;  %v6174_v60 = vor.u32 %v7512_v47, %v6173_v46  ;;  %v7560_v46 = vld [vmem:[%s8400_s15 + $0x764] sm:$0xf0] }
 0x127   : > { %v1148_v59 = vadd.f32 %v1147_v52, %v571_v44  ;;  %3670 = vmatpush.bf16.msrb.mxu2 %v6682_v49  ;;  %3663 = vmatpush.bf16.msrb.mxu1 %v6234_v62  ;;  %v7579_v44 = vld [vmem:[%s8400_s15 + $0x804] sm:$0xf]  ;;  %v573_v49 = vperm.slane %v8724_v63, 5  ;;  %v5661_v52 = vld [vmem:[%s8400_s15 + $0x1c8] sm:$0xf] }
 0x128   : > { %v6458_v55 = vor.u32 %v7579_v44, %v6455_v45  ;;  %v5662_v5 = vor.u32 %v7384_v57, %v5661_v52  ;;  %v5853_v44 = vld [vmem:[%s8400_s15 + $0x348] sm:$0xf] }
 0x129   : > { %v1161_v1 = vadd.f32 %v1160_v54, %v1148_v59  ;;  %v6743_v59 = vld [vmem:[%s8400_s15 + $0xa60] sm:$0xf0]  ;;  %v6365_v45 = vld [vmem:[%s8400_s15 + $0x748] sm:$0xf] }
 0x12a   : > { %v6746_v6 = vor.u32 %v7651_v58, %v6743_v59  ;;  %v7432_v47 = vld [vmem:[%s8400_s15 + $0x364] sm:$0xf0]  ;;  %v6366_v52 = vor.u32 %v7560_v46, %v6365_v45  ;;  %v5631_v45 = vld [vmem:[%s8400_s15 + $0x1a8] sm:$0xf0] }
 0x12b   : > { %v1219_v9 = vmax.f32 %v1161_v1, 0.0  ;;  %3671 = vmatpush.bf16.msrb.mxu2 %v6650_v2  ;;  %3664 = vmatpush.bf16.msrb.mxu1 %v6202_v10  ;;  %v6141_v1 = vld [vmem:[%s8400_s15 + $0x588] sm:$0xf]  ;;  %v7643_v10 = vld [vmem:[%s8400_s15 + $0xa04] sm:$0xf]  ;;  %v5854_v57 = vor.u32 %v7432_v47, %v5853_v44 }
 0x12c   : > { %v7504_v2 = vld [vmem:[%s8400_s15 + $0x5a4] sm:$0xf0]  ;;  %v7372_v44 = vld [vmem:[%s8400_s15 + $0x18c] sm:$0xf] }
 0x12d   : > { %v8807_v12 = vpack.c.bf16 %v1219_v9, %v1219_v9  ;;  %v1162_v16 = vpop.f32.mrf.mxu3  ;;  %v7376_v9 = vld [vmem:[%s8400_s15 + $0x1a4] sm:$0xf0]  ;;  %v6142_v53 = vor.u32 %v7504_v2, %v6141_v1 }
 0x12e   : > { %v1149_v15 = vpop.f32.mrf.mxu2  ;;  %v7576_v16 = vld [vmem:[%s8400_s15 + $0x7e4] sm:$0xf0]  ;;  %v5630_v56 = vor.u32 %v7376_v9, %v5629_v7 }
 0x12f   : > { %3587 = vmatmul.bf16.vlgmr.msrb.gmra.mxu3 %v8807_v12  ;;  %3672 = vmatpush.bf16.msrb.mxu2 %v6618_v13  ;;  %v6429_v15 = vld [vmem:[%s8400_s15 + $0x7c8] sm:$0xf] }
 0x130   : > { %3683 = vmatpush.bf16.msrb.mxu3 %v6938_v11  ;;  %v6711_v11 = vld [vmem:[%s8400_s15 + $0xa20] sm:$0xf0]  ;;  %v6430_v23 = vor.u32 %v7576_v16, %v6429_v15  ;;  %v5821_v59 = vld [vmem:[%s8400_s15 + $0x308] sm:$0xf] }
 0x131   : > { %v6714_v22 = vor.u32 %v7643_v10, %v6711_v11  ;;  %v6013_v1 = vld [vmem:[%s8400_s15 + $0x488] sm:$0xf] }
 0x132   : > { %v7472_v2 = vld [vmem:[%s8400_s15 + $0x4a4] sm:$0xf0] }
 0x133   : > { %3673 = vmatpush.bf16.msrb.mxu2 %v6586_v20  ;;  %v6014_v7 = vor.u32 %v7472_v2, %v6013_v1  ;;  %v5789_v9 = vld [vmem:[%s8400_s15 + $0x2c8] sm:$0xf]  ;;  %v7364_v1 = vld [vmem:[%s8400_s15 + $0x14c] sm:$0xf] }
 0x134   : > { %3684 = vmatpush.bf16.msrb.mxu3 %v6906_v19  ;;  %v7496_v19 = vld [vmem:[%s8400_s15 + $0x564] sm:$0xf0]  ;;  %v5599_v2 = vld [vmem:[%s8400_s15 + $0x168] sm:$0xf0] }
 0x135   : > { %v6110_v28 = vor.u32 %v7496_v19, %v6109_v18  ;;  %v6301_v10 = vld [vmem:[%s8400_s15 + $0x6c8] sm:$0xf] }
 0x136   : > { %3626 = vmatmul.bf16.vlgmr.msra.gmra.mxu2 %v8750_v42  ;;  %v7544_v11 = vld [vmem:[%s8400_s15 + $0x6e4] sm:$0xf0] }
 0x137   : > { %3674 = vmatpush.bf16.msrb.mxu2 %v6554_v25  ;;  %v7368_v25 = vld [vmem:[%s8400_s15 + $0x164] sm:$0xf0]  ;;  %v6302_v16 = vor.u32 %v7544_v11, %v6301_v10  ;;  %v5602_v10 = vor.u32 %v7364_v1, %v5599_v2  ;;  %v7404_v2 = vld [vmem:[%s8400_s15 + $0x28c] sm:$0xf] }
 0x138   : > { %3685 = vmatpush.bf16.msrb.mxu3 %v6874_v24  ;;  %v5597_v24 = vld [vmem:[%s8400_s15 + $0x148] sm:$0xf] }
 0x139   : > { %v7336_v18 = vld [vmem:[%s8400_s15 + $0x64] sm:$0xf0] }
 0x13a   : > { %v6909_v11 = vld [vmem:[%s8400_s15 + $0xb88] sm:$0xf] }
 0x13b   : > { %3675 = vmatpush.bf16.msrb.mxu2 %v6522_v32  ;;  %v6781_v1 = vld [vmem:[%s8400_s15 + $0xa88] sm:$0xf] }
 0x13c   : > { %3686 = vmatpush.bf16.msrb.mxu3 %v6842_v30  ;;  %v6397_v30 = vld [vmem:[%s8400_s15 + $0x788] sm:$0xf] }
 0x13d   : > { %v1173_v37 = vpop.f32.mrf.mxu0 }
 0x13e   : > { %v1174_v39 = vadd.f32 %v1173_v37, %v572_v31  ;;  %v7568_v31 = vld [vmem:[%s8400_s15 + $0x7a4] sm:$0xf0]  ;;  %v5598_v37 = vor.u32 %v7368_v25, %v5597_v24 }
 0x13f   : > { %3639 = vmatmul.bf16.vlgmr.msra.gmra.mxu3 %v8763_v0  ;;  %3676 = vmatpush.bf16.msrb.mxu2 %v6490_v40  ;;  %v7360_v40 = vld [vmem:[%s8400_s15 + $0x124] sm:$0xf0] }
 0x140   : > { %v1186_v48 = vpop.f32.mrf.mxu1  ;;  %3687 = vmatpush.bf16.msrb.mxu3 %v6810_v38  ;;  %v6398_v38 = vor.u32 %v7568_v31, %v6397_v30  ;;  %v5949_v24 = vld [vmem:[%s8400_s15 + $0x408] sm:$0xf] }
 0x141   : > { %v1187_v54 = vadd.f32 %v1186_v48, %v1174_v39  ;;  %v5565_v39 = vld [vmem:[%s8400_s15 + $0x108] sm:$0xf] }
 0x142   : > { %v6045_v48 = vld [vmem:[%s8400_s15 + $0x4c8] sm:$0xf] }
 0x143   : > { %v1220_v61 = vmax.f32 %v1187_v54, 0.0  ;;  %3677 = vmatpush.bf16.msrb.mxu2 %v6458_v55  ;;  %v5533_v54 = vld [vmem:[%s8400_s15 + $0xc8] sm:$0xf] }
 0x144   : > { %v1199_v62 = vpop.f32.mrf.mxu2  ;;  %3688 = vmatpush.bf16.msrb.mxu3 %v6778_v50  ;;  %v5566_v50 = vor.u32 %v7360_v40, %v5565_v39  ;;  %v7352_v55 = vld [vmem:[%s8400_s15 + $0xe4] sm:$0xf0] }
 0x145   : > { %v1200_v3 = vadd.f32 %v1199_v62, %v573_v49  ;;  %v1212_v63 = vpop.f32.mrf.mxu3  ;;  %v1175_v4 = vpop.f32.mrf.mxu0  ;;  %v8843_v8 = vpack.c.bf16 %v1220_v61, %v1220_v61  ;;  %v7480_v49 = vld [vmem:[%s8400_s15 + $0x4e4] sm:$0xf0] }
 0x146   : > { %v6046_v58 = vor.u32 %v7480_v49, %v6045_v48  ;;  %v7552_v61 = vld [vmem:[%s8400_s15 + $0x724] sm:$0xf0] }
 0x147   : > { %v1213_v13 = vadd.f32 %v1212_v63, %v1200_v3  ;;  %3722 = vmatpush.bf16.msra.mxu2 %v6174_v60  ;;  %3600 = vmatmul.bf16.vlgmr.msra.gmra.mxu0 %v8843_v8  ;;  %v6333_v60 = vld [vmem:[%s8400_s15 + $0x708] sm:$0xf]  ;;  %v5534_v3 = vor.u32 %v7352_v55, %v5533_v54 }
 0x148   : > { %3696 = vmatpush.bf16.msra.mxu0 %v5662_v5  ;;  %3689 = vmatpush.bf16.msrb.mxu3 %v6746_v6  ;;  %v1188_v21 = vpop.f32.mrf.mxu1  ;;  %v7424_v62 = vld [vmem:[%s8400_s15 + $0x324] sm:$0xf0]  ;;  %v6334_v63 = vor.u32 %v7552_v61, %v6333_v60  ;;  %v7444_v60 = vld [vmem:[%s8400_s15 + $0x3cc] sm:$0xf] }
 0x149   : > { %v1221_v20 = vmax.f32 %v1213_v13, 0.0  ;;  %3678 = vmatmul.bf16.vlgmr.msrb.gmra.mxu2 %v8843_v8  ;;  %v5501_v4 = vld [vmem:[%s8400_s15 + $0x88] sm:$0xf]  ;;  %v5822_v6 = vor.u32 %v7424_v62, %v5821_v59  ;;  %v5919_v61 = vld [vmem:[%s8400_s15 + $0x3e8] sm:$0xf0] }
 0x14a   : > { %v7344_v5 = vld [vmem:[%s8400_s15 + $0xa4] sm:$0xf0] }
 0x14b   : > { %v8858_v26 = vpack.c.bf16 %v1221_v20, %v1221_v20  ;;  %3723 = vmatpush.bf16.msra.mxu2 %v6142_v53  ;;  %v7416_v13 = vld [vmem:[%s8400_s15 + $0x2e4] sm:$0xf0]  ;;  %v5502_v15 = vor.u32 %v7344_v5, %v5501_v4  ;;  %v5922_v5 = vor.u32 %v7444_v60, %v5919_v61 }
 0x14c   : > { %v1201_v32 = vpop.f32.mrf.mxu2  ;;  %3697 = vmatpush.bf16.msra.mxu0 %v5630_v56  ;;  %3690 = vmatpush.bf16.msrb.mxu3 %v6714_v22  ;;  %v5981_v53 = vld [vmem:[%s8400_s15 + $0x448] sm:$0xf]  ;;  %v5790_v19 = vor.u32 %v7416_v13, %v5789_v9  ;;  %v7436_v13 = vld [vmem:[%s8400_s15 + $0x38c] sm:$0xf] }
 0x14d   : > { %v1214_v36 = vpop.f32.mrf.mxu3  ;;  %3613 = vmatmul.bf16.vlgmr.msra.gmra.mxu1 %v8858_v26  ;;  %v5982_v20 = vor.u32 %v7464_v14, %v5981_v53  ;;  %v5757_v21 = vld [vmem:[%s8400_s15 + $0x288] sm:$0xf]  ;;  %v5887_v53 = vld [vmem:[%s8400_s15 + $0x3a8] sm:$0xf0] }
 0x14e   : > { %3709 = vmatpush.bf16.msra.mxu1 %v5918_v27  ;;  %v6269_v56 = vld [vmem:[%s8400_s15 + $0x688] sm:$0xf]  ;;  %v5470_v27 = vor.u32 %v7336_v18, %v5469_v17  ;;  %v5890_v18 = vor.u32 %v7436_v13, %v5887_v53  ;;  %v7508_v53 = vld [vmem:[%s8400_s15 + $0x5cc] sm:$0xf] }
 0x14f   : > { %3724 = vmatpush.bf16.msra.mxu2 %v6110_v28  ;;  %3691 = vmatmul.bf16.vlgmr.msrb.gmra.mxu3 %v8858_v26  ;;  %v7536_v22 = vld [vmem:[%s8400_s15 + $0x6a4] sm:$0xf0]  ;;  %v7380_v28 = vld [vmem:[%s8400_s15 + $0x1cc] sm:$0xf] }
 0x150   : > { %3735 = vmatpush.bf16.msra.mxu3 %v6430_v23  ;;  %3698 = vmatpush.bf16.msra.mxu0 %v5598_v37  ;;  %v7408_v23 = vld [vmem:[%s8400_s15 + $0x2a4] sm:$0xf0]  ;;  %v6270_v30 = vor.u32 %v7536_v22, %v6269_v56  ;;  %v5666_v39 = vor.u32 %v7380_v28, %v5663_v29  ;;  %v5535_v28 = vld [vmem:[%s8400_s15 + $0xe8] sm:$0xf0] }
 0x151   : > { %v7456_v25 = vld [vmem:[%s8400_s15 + $0x424] sm:$0xf0]  ;;  %v5758_v34 = vor.u32 %v7408_v23, %v5757_v21  ;;  %v7428_v23 = vld [vmem:[%s8400_s15 + $0x34c] sm:$0xf] }
 0x152   : > { %3710 = vmatpush.bf16.msra.mxu1 %v5886_v41  ;;  %v5437_v31 = vld [vmem:[%s8400_s15 + $0x8] sm:$0xf]  ;;  %v5950_v35 = vor.u32 %v7456_v25, %v5949_v24  ;;  %v5855_v24 = vld [vmem:[%s8400_s15 + $0x368] sm:$0xf0] }
 0x153   : > { %3725 = vmatpush.bf16.msra.mxu2 %v6078_v43  ;;  %v7328_v32 = vld [vmem:[%s8400_s15 + $0x24] sm:$0xf0] }
 0x154   : > { %3736 = vmatpush.bf16.msra.mxu3 %v6398_v38  ;;  %3699 = vmatpush.bf16.msra.mxu0 %v5566_v50  ;;  %v7640_v36 = vld [vmem:[%s8400_s15 + $0x9e4] sm:$0xf0]  ;;  %v5438_v43 = vor.u32 %v7328_v32, %v5437_v31 }
 0x155   : > { %v6237_v37 = vld [vmem:[%s8400_s15 + $0x648] sm:$0xf]  ;;  %v6686_v46 = vor.u32 %v7640_v36, %v6685_v33  ;;  %v7420_v36 = vld [vmem:[%s8400_s15 + $0x30c] sm:$0xf] }
 0x156   : > { %3711 = vmatpush.bf16.msra.mxu1 %v5854_v57  ;;  %v7528_v38 = vld [vmem:[%s8400_s15 + $0x664] sm:$0xf0] }
 0x157   : > { %3726 = vmatpush.bf16.msra.mxu2 %v6046_v58  ;;  %3652 = vmatmul.bf16.vlgmr.msrb.gmra.mxu0 %v8795_v51  ;;  %v5725_v40 = vld [vmem:[%s8400_s15 + $0x248] sm:$0xf]  ;;  %v6238_v47 = vor.u32 %v7528_v38, %v6237_v37  ;;  %v5634_v58 = vor.u32 %v7372_v44, %v5631_v45  ;;  %v5823_v37 = vld [vmem:[%s8400_s15 + $0x328] sm:$0xf0] }
 0x158   : > { %3737 = vmatpush.bf16.msra.mxu3 %v6366_v52  ;;  %3700 = vmatpush.bf16.msra.mxu0 %v5534_v3  ;;  %v7400_v41 = vld [vmem:[%s8400_s15 + $0x264] sm:$0xf0] }
 0x159   : > { %v6653_v48 = vld [vmem:[%s8400_s15 + $0x988] sm:$0xf]  ;;  %v5726_v52 = vor.u32 %v7400_v41, %v5725_v40  ;;  %v5503_v40 = vld [vmem:[%s8400_s15 + $0xa8] sm:$0xf0] }
 0x15a   : > { %3712 = vmatpush.bf16.msra.mxu1 %v5822_v6  ;;  %v7632_v49 = vld [vmem:[%s8400_s15 + $0x9a4] sm:$0xf0] }
 0x15b   : > { %3727 = vmatpush.bf16.msra.mxu2 %v6014_v7  ;;  %v5693_v50 = vld [vmem:[%s8400_s15 + $0x208] sm:$0xf]  ;;  %v6654_v3 = vor.u32 %v7632_v49, %v6653_v48  ;;  %v7412_v49 = vld [vmem:[%s8400_s15 + $0x2cc] sm:$0xf] }
 0x15c   : > { %3738 = vmatpush.bf16.msra.mxu3 %v6334_v63  ;;  %3701 = vmatpush.bf16.msra.mxu0 %v5502_v15  ;;  %v7392_v54 = vld [vmem:[%s8400_s15 + $0x224] sm:$0xf0]  ;;  %v7356_v15 = vld [vmem:[%s8400_s15 + $0x10c] sm:$0xf] }
 0x15d   : > { %3665 = vmatmul.bf16.vlgmr.msrb.gmra.mxu1 %v8807_v12  ;;  %v6205_v55 = vld [vmem:[%s8400_s15 + $0x608] sm:$0xf]  ;;  %v5694_v4 = vor.u32 %v7392_v54, %v5693_v50  ;;  %v5791_v50 = vld [vmem:[%s8400_s15 + $0x2e8] sm:$0xf0] }
 0x15e   : > { %3713 = vmatpush.bf16.msra.mxu1 %v5790_v19  ;;  %v7520_v57 = vld [vmem:[%s8400_s15 + $0x624] sm:$0xf0]  ;;  %v7332_v54 = vld [vmem:[%s8400_s15 + $0x4c] sm:$0xf] }
 0x15f   : > { %3728 = vmatpush.bf16.msra.mxu2 %v5982_v20  ;;  %v6941_v59 = vld [vmem:[%s8400_s15 + $0xbc8] sm:$0xf]  ;;  %v6206_v63 = vor.u32 %v7520_v57, %v6205_v55  ;;  %v5471_v55 = vld [vmem:[%s8400_s15 + $0x68] sm:$0xf0] }
 0x160   : > { %3739 = vmatpush.bf16.msra.mxu3 %v6302_v16  ;;  %3702 = vmatpush.bf16.msra.mxu0 %v5470_v27  ;;  %v7704_v62 = vld [vmem:[%s8400_s15 + $0xbe4] sm:$0xf0]  ;;  %v5567_v16 = vld [vmem:[%s8400_s15 + $0x128] sm:$0xf0] }
 0x161   : > { %v6621_v6 = vld [vmem:[%s8400_s15 + $0x948] sm:$0xf]  ;;  %v6942_v9 = vor.u32 %v7704_v62, %v6941_v59  ;;  %v5570_v56 = vor.u32 %v7356_v15, %v5567_v16  ;;  %v7348_v27 = vld [vmem:[%s8400_s15 + $0xcc] sm:$0xf]  ;;  %v5474_v62 = vor.u32 %v7332_v54, %v5471_v55 }
 0x162   : > { %3714 = vmatpush.bf16.msra.mxu1 %v5758_v34  ;;  %v7624_v7 = vld [vmem:[%s8400_s15 + $0x964] sm:$0xf0]  ;;  %v5538_v34 = vor.u32 %v7348_v27, %v5535_v28  ;;  %v6175_v16 = vld [vmem:[%s8400_s15 + $0x5e8] sm:$0xf0] }
 0x163   : > { %3729 = vmatpush.bf16.msra.mxu2 %v5950_v35  ;;  %v7696_v14 = vld [vmem:[%s8400_s15 + $0xba4] sm:$0xf0]  ;;  %v6622_v17 = vor.u32 %v7624_v7, %v6621_v6  ;;  %v7636_v7 = vld [vmem:[%s8400_s15 + $0x9cc] sm:$0xf] }
 0x164   : > { %3740 = vmatpush.bf16.msra.mxu3 %v6270_v30  ;;  %3703 = vmatpush.bf16.msra.mxu0 %v5438_v43  ;;  %v6589_v19 = vld [vmem:[%s8400_s15 + $0x908] sm:$0xf]  ;;  %v6910_v21 = vor.u32 %v7696_v14, %v6909_v11  ;;  %v5858_v30 = vor.u32 %v7428_v23, %v5855_v24  ;;  %v5826_v43 = vor.u32 %v7420_v36, %v5823_v37  ;;  %v6655_v23 = vld [vmem:[%s8400_s15 + $0x9a8] sm:$0xf0] }
 0x165   : > { %v7616_v20 = vld [vmem:[%s8400_s15 + $0x924] sm:$0xf0]  ;;  %v6178_v24 = vor.u32 %v7508_v53, %v6175_v16  ;;  %v7500_v27 = vld [vmem:[%s8400_s15 + $0x58c] sm:$0xf] }
 0x166   : > { %3715 = vmatpush.bf16.msra.mxu1 %v5726_v52  ;;  %3730 = vmatmul.bf16.vlgmr.msra.gmra.mxu2 %v8795_v51  ;;  %v6877_v22 = vld [vmem:[%s8400_s15 + $0xb48] sm:$0xf]  ;;  %v6590_v29 = vor.u32 %v7616_v20, %v6589_v19  ;;  %v6143_v28 = vld [vmem:[%s8400_s15 + $0x5a8] sm:$0xf0] }
 0x167   : > { %3774 = vmatpush.bf16.msrb.mxu2 %v5666_v39  ;;  %3704 = vmatmul.bf16.vlgmr.msra.gmra.mxu0 %v8750_v42  ;;  %v7688_v25 = vld [vmem:[%s8400_s15 + $0xb64] sm:$0xf0]  ;;  %v7340_v39 = vld [vmem:[%s8400_s15 + $0x8c] sm:$0xf] }
 0x168   : > { %3748 = vmatpush.bf16.msrb.mxu0 %v6686_v46  ;;  %3741 = vmatpush.bf16.msra.mxu3 %v6238_v47  ;;  %v6557_v31 = vld [vmem:[%s8400_s15 + $0x8c8] sm:$0xf]  ;;  %v6878_v33 = vor.u32 %v7688_v25, %v6877_v22  ;;  %v5506_v47 = vor.u32 %v7340_v39, %v5503_v40  ;;  %v7628_v22 = vld [vmem:[%s8400_s15 + $0x98c] sm:$0xf] }
 0x169   : > { %v7608_v32 = vld [vmem:[%s8400_s15 + $0x8e4] sm:$0xf0]  ;;  %v7700_v36 = vld [vmem:[%s8400_s15 + $0xbcc] sm:$0xf] }
 0x16a   : > { %3716 = vmatpush.bf16.msra.mxu1 %v5694_v4  ;;  %v6845_v35 = vld [vmem:[%s8400_s15 + $0xb08] sm:$0xf]  ;;  %v6558_v41 = vor.u32 %v7608_v32, %v6557_v31  ;;  %v7324_v4 = vld [vmem:[%s8400_s15 + $0xc] sm:$0xf] }
 0x16b   : > { %3775 = vmatpush.bf16.msrb.mxu2 %v5634_v58  ;;  %v7680_v38 = vld [vmem:[%s8400_s15 + $0xb24] sm:$0xf0]  ;;  %v5794_v58 = vor.u32 %v7412_v49, %v5791_v50  ;;  %v7388_v32 = vld [vmem:[%s8400_s15 + $0x20c] sm:$0xf] }
 0x16c   : > { %3749 = vmatpush.bf16.msrb.mxu0 %v6654_v3  ;;  %3742 = vmatpush.bf16.msra.mxu3 %v6206_v63  ;;  %v6525_v44 = vld [vmem:[%s8400_s15 + $0x888] sm:$0xf]  ;;  %v6846_v46 = vor.u32 %v7680_v38, %v6845_v35  ;;  %v5759_v3 = vld [vmem:[%s8400_s15 + $0x2a8] sm:$0xf0] }
 0x16d   : > { %3717 = vmatmul.bf16.vlgmr.msra.gmra.mxu1 %v8763_v0  ;;  %v7600_v45 = vld [vmem:[%s8400_s15 + $0x8a4] sm:$0xf0]  ;;  %v7572_v35 = vld [vmem:[%s8400_s15 + $0x7cc] sm:$0xf] }
 0x16e   : > { %3761 = vmatpush.bf16.msrb.mxu1 %v6942_v9  ;;  %v6813_v48 = vld [vmem:[%s8400_s15 + $0xac8] sm:$0xf]  ;;  %v6526_v57 = vor.u32 %v7600_v45, %v6525_v44  ;;  %v6687_v9 = vld [vmem:[%s8400_s15 + $0x9e8] sm:$0xf0] }
 0x16f   : > { %3776 = vmatpush.bf16.msrb.mxu2 %v5602_v10  ;;  %3743 = vmatmul.bf16.vlgmr.msra.gmra.mxu3 %v8807_v12  ;;  %v7672_v52 = vld [vmem:[%s8400_s15 + $0xae4] sm:$0xf0]  ;;  %v5762_v10 = vor.u32 %v7404_v2, %v5759_v3  ;;  %v6690_v19 = vor.u32 %v7636_v7, %v6687_v9  ;;  %v6943_v37 = vld [vmem:[%s8400_s15 + $0xbe8] sm:$0xf0] }
 0x170   : > { %3787 = vmatpush.bf16.msrb.mxu3 %v5922_v5  ;;  %3750 = vmatpush.bf16.msrb.mxu0 %v6622_v17  ;;  %v6493_v59 = vld [vmem:[%s8400_s15 + $0x848] sm:$0xf]  ;;  %v6814_v61 = vor.u32 %v7672_v52, %v6813_v48  ;;  %v5439_v5 = vld [vmem:[%s8400_s15 + $0x28] sm:$0xf0]  ;;  %v6946_v45 = vor.u32 %v7700_v36, %v6943_v37 }
 0x171   : > { %v7592_v60 = vld [vmem:[%s8400_s15 + $0x864] sm:$0xf0]  ;;  %v5442_v15 = vor.u32 %v7324_v4, %v5439_v5  ;;  %v7396_v17 = vld [vmem:[%s8400_s15 + $0x24c] sm:$0xf] }
 0x172   : > { %3762 = vmatpush.bf16.msrb.mxu1 %v6910_v21  ;;  %v7664_v63 = vld [vmem:[%s8400_s15 + $0xaa4] sm:$0xf0]  ;;  %v6494_v6 = vor.u32 %v7592_v60, %v6493_v59  ;;  %v6431_v38 = vld [vmem:[%s8400_s15 + $0x7e8] sm:$0xf0] }
 0x173   : > { %3777 = vmatpush.bf16.msrb.mxu2 %v5570_v56  ;;  %v6461_v11 = vld [vmem:[%s8400_s15 + $0x808] sm:$0xf]  ;;  %v6782_v14 = vor.u32 %v7664_v63, %v6781_v1  ;;  %v7620_v39 = vld [vmem:[%s8400_s15 + $0x94c] sm:$0xf]  ;;  %v6434_v48 = vor.u32 %v7572_v35, %v6431_v38 }
 0x174   : > { %3788 = vmatpush.bf16.msrb.mxu3 %v5890_v18  ;;  %3751 = vmatpush.bf16.msrb.mxu0 %v6590_v29  ;;  %v7584_v13 = vld [vmem:[%s8400_s15 + $0x824] sm:$0xf0]  ;;  %v5727_v18 = vld [vmem:[%s8400_s15 + $0x268] sm:$0xf0] }
 0x175   : > { %v6749_v20 = vld [vmem:[%s8400_s15 + $0xa48] sm:$0xf]  ;;  %v6462_v56 = vor.u32 %v7584_v13, %v6461_v11  ;;  %v5730_v25 = vor.u32 %v7396_v17, %v5727_v18  ;;  %v6623_v40 = vld [vmem:[%s8400_s15 + $0x968] sm:$0xf0] }
 0x176   : > { %3763 = vmatpush.bf16.msrb.mxu1 %v6878_v33  ;;  %v7656_v21 = vld [vmem:[%s8400_s15 + $0xa64] sm:$0xf0]  ;;  %v5695_v33 = vld [vmem:[%s8400_s15 + $0x228] sm:$0xf0]  ;;  %v6626_v49 = vor.u32 %v7620_v39, %v6623_v40 }
 0x177   : > { %3778 = vmatpush.bf16.msrb.mxu2 %v5538_v34  ;;  %v6717_v29 = vld [vmem:[%s8400_s15 + $0xa08] sm:$0xf]  ;;  %v6658_v34 = vor.u32 %v7628_v22, %v6655_v23  ;;  %v7564_v50 = vld [vmem:[%s8400_s15 + $0x78c] sm:$0xf] }
 0x178   : > { %3789 = vmatpush.bf16.msrb.mxu3 %v5858_v30  ;;  %3752 = vmatpush.bf16.msrb.mxu0 %v6558_v41  ;;  %v6750_v30 = vor.u32 %v7656_v21, %v6749_v20  ;;  %v7648_v31 = vld [vmem:[%s8400_s15 + $0xa24] sm:$0xf0]  ;;  %v6146_v41 = vor.u32 %v7500_v27, %v6143_v28  ;;  %v7692_v52 = vld [vmem:[%s8400_s15 + $0xb8c] sm:$0xf] }
 0x179   : > { %v6718_v44 = vor.u32 %v7648_v31, %v6717_v29  ;;  %v6911_v54 = vld [vmem:[%s8400_s15 + $0xba8] sm:$0xf0] }
 0x17a   : > { %3764 = vmatpush.bf16.msrb.mxu1 %v6846_v46  ;;  %v7492_v46 = vld [vmem:[%s8400_s15 + $0x54c] sm:$0xf]  ;;  %v6914_v60 = vor.u32 %v7692_v52, %v6911_v54  ;;  %v6181_v52 = vld [vmem:[%s8400_s15 + $0x5d0] sm:$0xf] }
 0x17b   : > { %3779 = vmatpush.bf16.msrb.mxu2 %v5506_v47  ;;  %v6111_v47 = vld [vmem:[%s8400_s15 + $0x568] sm:$0xf0]  ;;  %v7513_v54 = vld [vmem:[%s8400_s15 + $0x5ec] sm:$0xf0] }
 0x17c   : > { %3790 = vmatpush.bf16.msrb.mxu3 %v5826_v43  ;;  %3753 = vmatpush.bf16.msrb.mxu0 %v6526_v57  ;;  %v5698_v43 = vor.u32 %v7388_v32, %v5695_v33  ;;  %v6399_v55 = vld [vmem:[%s8400_s15 + $0x7a8] sm:$0xf0]  ;;  %v6114_v59 = vor.u32 %v7492_v46, %v6111_v47 }
 0x17d   : > { %v7612_v57 = vld [vmem:[%s8400_s15 + $0x90c] sm:$0xf]  ;;  %v6402_v1 = vor.u32 %v7564_v50, %v6399_v55 }
 0x17e   : > { %3765 = vmatpush.bf16.msrb.mxu1 %v6814_v61  ;;  %v7484_v61 = vld [vmem:[%s8400_s15 + $0x50c] sm:$0xf] }
 0x17f   : > { %3780 = vmatpush.bf16.msrb.mxu2 %v5474_v62  ;;  %v6079_v62 = vld [vmem:[%s8400_s15 + $0x528] sm:$0xf0] }
 0x180   : > { %3791 = vmatpush.bf16.msrb.mxu3 %v5794_v58  ;;  %3754 = vmatpush.bf16.msrb.mxu0 %v6494_v6  ;;  %v6591_v58 = vld [vmem:[%s8400_s15 + $0x928] sm:$0xf0] }
 0x181   : > { %v6594_v2 = vor.u32 %v7612_v57, %v6591_v58  ;;  %v7556_v3 = vld [vmem:[%s8400_s15 + $0x74c] sm:$0xf] }
 0x182   : > { %3766 = vmatpush.bf16.msrb.mxu1 %v6782_v14  ;;  %v7684_v63 = vld [vmem:[%s8400_s15 + $0xb4c] sm:$0xf] }
 0x183   : > { %3781 = vmatpush.bf16.msrb.mxu2 %v5442_v15  ;;  %v6879_v4 = vld [vmem:[%s8400_s15 + $0xb68] sm:$0xf0] }
 0x184   : > { %3792 = vmatpush.bf16.msrb.mxu3 %v5762_v10  ;;  %3755 = vmatpush.bf16.msrb.mxu0 %v6462_v56  ;;  %v9009_v5 = vpop.f32.mrf.mxu0  ;;  %v6367_v6 = vld [vmem:[%s8400_s15 + $0x768] sm:$0xf0]  ;;  %v6082_v10 = vor.u32 %v7484_v61, %v6079_v62  ;;  %v6882_v11 = vor.u32 %v7684_v63, %v6879_v4  ;;  %v7385_v62 = vld [vmem:[%s8400_s15 + $0x1ec] sm:$0xf0] }
 0x185   : > { %v7604_v7 = vld [vmem:[%s8400_s15 + $0x8cc] sm:$0xf]  ;;  %v6370_v14 = vor.u32 %v7556_v3, %v6367_v6  ;;  %v6182_v3 = vor.u32 %v7513_v54, %v6181_v52  ;;  %v7433_v52 = vld [vmem:[%s8400_s15 + $0x36c] sm:$0xf0] }
 0x186   : > { %3767 = vmatpush.bf16.msrb.mxu1 %v6750_v30  ;;  %3782 = vmatmul.bf16.vlgmr.msrb.gmra.mxu2 %v8750_v42  ;;  %v6559_v9 = vld [vmem:[%s8400_s15 + $0x8e8] sm:$0xf0]  ;;  %v6053_v54 = vld [vmem:[%s8400_s15 + $0x4d0] sm:$0xf] }
 0x187   : > { %3826 = vmatpush.bf16.msra.mxu2 %v6690_v19  ;;  %3756 = vmatmul.bf16.vlgmr.msrb.gmra.mxu0 %v8843_v8  ;;  %v7476_v13 = vld [vmem:[%s8400_s15 + $0x4cc] sm:$0xf]  ;;  %v6562_v15 = vor.u32 %v7604_v7, %v6559_v9  ;;  %v6149_v7 = vld [vmem:[%s8400_s15 + $0x590] sm:$0xf] }
 0x188   : > { %3800 = vmatpush.bf16.msra.mxu0 %v6178_v24  ;;  %3793 = vmatpush.bf16.msrb.mxu3 %v5730_v25  ;;  %v6047_v53 = vld [vmem:[%s8400_s15 + $0x4e8] sm:$0xf0]  ;;  %v7505_v9 = vld [vmem:[%s8400_s15 + $0x5ac] sm:$0xf0] }
 0x189   : > { %v7548_v16 = vld [vmem:[%s8400_s15 + $0x70c] sm:$0xf]  ;;  %v6050_v22 = vor.u32 %v7476_v13, %v6047_v53  ;;  %v5637_v13 = vld [vmem:[%s8400_s15 + $0x190] sm:$0xf] }
 0x18a   : > { %3768 = vmatpush.bf16.msrb.mxu1 %v6718_v44  ;;  %v7676_v17 = vld [vmem:[%s8400_s15 + $0xb0c] sm:$0xf]  ;;  %v7377_v53 = vld [vmem:[%s8400_s15 + $0x1ac] sm:$0xf0] }
 0x18b   : > { %3827 = vmatpush.bf16.msra.mxu2 %v6658_v34  ;;  %v6847_v18 = vld [vmem:[%s8400_s15 + $0xb28] sm:$0xf0]  ;;  %v9022_v20 = vpop.f32.mrf.mxu1 }
 0x18c   : > { %3801 = vmatpush.bf16.msra.mxu0 %v6146_v41  ;;  %3794 = vmatpush.bf16.msrb.mxu3 %v5698_v43  ;;  %v6335_v19 = vld [vmem:[%s8400_s15 + $0x728] sm:$0xf0]  ;;  %v6850_v23 = vor.u32 %v7676_v17, %v6847_v18  ;;  %v3551_v32 = vpop.f32.mrf.mxu0 }
 0x18d   : > { %3769 = vmatmul.bf16.vlgmr.msrb.gmra.mxu1 %v8858_v26  ;;  %v7596_v21 = vld [vmem:[%s8400_s15 + $0x88c] sm:$0xf]  ;;  %v6338_v27 = vor.u32 %v7548_v16, %v6335_v19  ;;  %v6150_v19 = vor.u32 %v7505_v9, %v6149_v7  ;;  %v7369_v32 = vld [vmem:[%s8400_s15 + $0x16c] sm:$0xf0] }
 0x18e   : > { %3813 = vmatpush.bf16.msra.mxu1 %v6434_v48  ;;  %v6527_v56 = vld [vmem:[%s8400_s15 + $0x8a8] sm:$0xf0] }
 0x18f   : > { %3828 = vmatpush.bf16.msra.mxu2 %v6626_v49  ;;  %3795 = vmatmul.bf16.vlgmr.msrb.gmra.mxu3 %v8763_v0  ;;  %v7468_v24 = vld [vmem:[%s8400_s15 + $0x48c] sm:$0xf]  ;;  %v6530_v28 = vor.u32 %v7596_v21, %v6527_v56  ;;  %v5925_v21 = vld [vmem:[%s8400_s15 + $0x3d0] sm:$0xf] }
 0x190   : > { %3839 = vmatpush.bf16.msra.mxu3 %v6946_v45  ;;  %3802 = vmatpush.bf16.msra.mxu0 %v6114_v59  ;;  %v6015_v25 = vld [vmem:[%s8400_s15 + $0x4a8] sm:$0xf0]  ;;  %v5669_v59 = vld [vmem:[%s8400_s15 + $0x1d0] sm:$0xf] }
 0x191   : > { %v7540_v29 = vld [vmem:[%s8400_s15 + $0x6cc] sm:$0xf]  ;;  %v6018_v36 = vor.u32 %v7468_v24, %v6015_v25  ;;  %v6437_v56 = vld [vmem:[%s8400_s15 + $0x7d0] sm:$0xf] }
 0x192   : > { %3814 = vmatpush.bf16.msra.mxu1 %v6402_v1  ;;  %v7668_v30 = vld [vmem:[%s8400_s15 + $0xacc] sm:$0xf]  ;;  %v6117_v24 = vld [vmem:[%s8400_s15 + $0x550] sm:$0xf] }
 0x193   : > { %3829 = vmatpush.bf16.msra.mxu2 %v6594_v2  ;;  %v6815_v31 = vld [vmem:[%s8400_s15 + $0xae8] sm:$0xf0]  ;;  %v3564_v47 = vpop.f32.mrf.mxu1  ;;  %v7497_v25 = vld [vmem:[%s8400_s15 + $0x56c] sm:$0xf0] }
 0x194   : > { %3840 = vmatpush.bf16.msra.mxu3 %v6914_v60  ;;  %3803 = vmatpush.bf16.msra.mxu0 %v6082_v10  ;;  %v6303_v33 = vld [vmem:[%s8400_s15 + $0x6e8] sm:$0xf0]  ;;  %v6818_v37 = vor.u32 %v7668_v30, %v6815_v31  ;;  %v5670_v10 = vor.u32 %v7385_v62, %v5669_v59  ;;  %v5605_v31 = vld [vmem:[%s8400_s15 + $0x150] sm:$0xf] }
 0x195   : > { %v7588_v34 = vld [vmem:[%s8400_s15 + $0x84c] sm:$0xf]  ;;  %v6306_v40 = vor.u32 %v7540_v29, %v6303_v33  ;;  %v5541_v59 = vld [vmem:[%s8400_s15 + $0xd0] sm:$0xf] }
 0x196   : > { %3815 = vmatpush.bf16.msra.mxu1 %v6370_v14  ;;  %v6495_v35 = vld [vmem:[%s8400_s15 + $0x868] sm:$0xf0] }
 0x197   : > { %3830 = vmatpush.bf16.msra.mxu2 %v6562_v15  ;;  %v7460_v38 = vld [vmem:[%s8400_s15 + $0x44c] sm:$0xf]  ;;  %v6498_v41 = vor.u32 %v7588_v34, %v6495_v35  ;;  %v6118_v34 = vor.u32 %v7497_v25, %v6117_v24  ;;  %v5893_v35 = vld [vmem:[%s8400_s15 + $0x390] sm:$0xf] }
 0x198   : > { %3841 = vmatpush.bf16.msra.mxu3 %v6882_v11  ;;  %3804 = vmatpush.bf16.msra.mxu0 %v6050_v22  ;;  %v5983_v39 = vld [vmem:[%s8400_s15 + $0x468] sm:$0xf0]  ;;  %v7577_v22 = vld [vmem:[%s8400_s15 + $0x7ec] sm:$0xf0] }
 0x199   : > { %v7532_v43 = vld [vmem:[%s8400_s15 + $0x68c] sm:$0xf]  ;;  %v5986_v50 = vor.u32 %v7460_v38, %v5983_v39  ;;  %v6438_v30 = vor.u32 %v7577_v22, %v6437_v56  ;;  %v7441_v38 = vld [vmem:[%s8400_s15 + $0x3ac] sm:$0xf0] }
 0x19a   : > { %3816 = vmatpush.bf16.msra.mxu1 %v6338_v27  ;;  %v7660_v44 = vld [vmem:[%s8400_s15 + $0xa8c] sm:$0xf]  ;;  %v5638_v27 = vor.u32 %v7377_v53, %v5637_v13  ;;  %v6085_v39 = vld [vmem:[%s8400_s15 + $0x510] sm:$0xf] }
 0x19b   : > { %3831 = vmatpush.bf16.msra.mxu2 %v6530_v28  ;;  %v6783_v45 = vld [vmem:[%s8400_s15 + $0xaa8] sm:$0xf0]  ;;  %v7345_v13 = vld [vmem:[%s8400_s15 + $0xac] sm:$0xf0] }
 0x19c   : > { %3842 = vmatpush.bf16.msra.mxu3 %v6850_v23  ;;  %v6271_v46 = vld [vmem:[%s8400_s15 + $0x6a8] sm:$0xf0]  ;;  %3805 = vmatpush.bf16.msra.mxu0 %v6018_v36  ;;  %v6786_v55 = vor.u32 %v7660_v44, %v6783_v45  ;;  %v7449_v23 = vld [vmem:[%s8400_s15 + $0x3ec] sm:$0xf0] }
 0x19d   : > { %v7580_v48 = vld [vmem:[%s8400_s15 + $0x80c] sm:$0xf]  ;;  %v6274_v60 = vor.u32 %v7532_v43, %v6271_v46  ;;  %v5926_v33 = vor.u32 %v7449_v23, %v5925_v21  ;;  %v6405_v36 = vld [vmem:[%s8400_s15 + $0x790] sm:$0xf]  ;;  %v5894_v46 = vor.u32 %v7441_v38, %v5893_v35  ;;  %v5671_v38 = vld [vmem:[%s8400_s15 + $0x1f0] sm:$0xf0] }
 0x19e   : > { %v6463_v49 = vld [vmem:[%s8400_s15 + $0x828] sm:$0xf0]  ;;  %3817 = vmatpush.bf16.msra.mxu1 %v6306_v40  ;;  %v7489_v40 = vld [vmem:[%s8400_s15 + $0x52c] sm:$0xf0] }
 0x19f   : > { %v7452_v57 = vld [vmem:[%s8400_s15 + $0x40c] sm:$0xf]  ;;  %3832 = vmatpush.bf16.msra.mxu2 %v6498_v41  ;;  %v6466_v61 = vor.u32 %v7580_v48, %v6463_v49  ;;  %v5606_v41 = vor.u32 %v7369_v32, %v5605_v31  ;;  %v5573_v44 = vld [vmem:[%s8400_s15 + $0x110] sm:$0xf]  ;;  %v6086_v47 = vor.u32 %v7489_v40, %v6085_v39 }
 0x1a0   : > { %3843 = vmatpush.bf16.msra.mxu3 %v6818_v37  ;;  %v5951_v58 = vld [vmem:[%s8400_s15 + $0x428] sm:$0xf0]  ;;  %3806 = vmatpush.bf16.msra.mxu0 %v5986_v50  ;;  %v7569_v37 = vld [vmem:[%s8400_s15 + $0x7ac] sm:$0xf0] }
 0x1a1   : > { %v7652_v1 = vld [vmem:[%s8400_s15 + $0xa4c] sm:$0xf]  ;;  %v5954_v6 = vor.u32 %v7452_v57, %v5951_v58  ;;  %v6406_v43 = vor.u32 %v7569_v37, %v6405_v36  ;;  %v7361_v45 = vld [vmem:[%s8400_s15 + $0x12c] sm:$0xf0]  ;;  %v7381_v37 = vld [vmem:[%s8400_s15 + $0x1d4] sm:$0xf] }
 0x1a2   : > { %v6751_v2 = vld [vmem:[%s8400_s15 + $0xa68] sm:$0xf0]  ;;  %3818 = vmatpush.bf16.msra.mxu1 %v6274_v60  ;;  %v5861_v48 = vld [vmem:[%s8400_s15 + $0x350] sm:$0xf]  ;;  %v5574_v57 = vor.u32 %v7361_v45, %v5573_v44 }
 0x1a3   : > { %v7524_v63 = vld [vmem:[%s8400_s15 + $0x64c] sm:$0xf]  ;;  %v6754_v11 = vor.u32 %v7652_v1, %v6751_v2  ;;  %3833 = vmatpush.bf16.msra.mxu2 %v6466_v61  ;;  %v6373_v49 = vld [vmem:[%s8400_s15 + $0x750] sm:$0xf]  ;;  %v5862_v61 = vor.u32 %v7433_v52, %v5861_v48 }
 0x1a4   : > { %v6239_v4 = vld [vmem:[%s8400_s15 + $0x668] sm:$0xf0]  ;;  %3844 = vmatpush.bf16.msra.mxu3 %v6786_v55  ;;  %3807 = vmatpush.bf16.msra.mxu0 %v5954_v6  ;;  %v7561_v50 = vld [vmem:[%s8400_s15 + $0x76c] sm:$0xf0] }
 0x1a5   : > { %v7516_v14 = vld [vmem:[%s8400_s15 + $0x60c] sm:$0xf]  ;;  %v6242_v15 = vor.u32 %v7524_v63, %v6239_v4  ;;  %v7481_v55 = vld [vmem:[%s8400_s15 + $0x4ec] sm:$0xf0]  ;;  %v6374_v58 = vor.u32 %v7561_v50, %v6373_v49  ;;  %v5674_v49 = vor.u32 %v7381_v37, %v5671_v38 }
 0x1a6   : > { %v6207_v16 = vld [vmem:[%s8400_s15 + $0x628] sm:$0xf0]  ;;  %3834 = vmatmul.bf16.vlgmr.msra.gmra.mxu2 %v8843_v8  ;;  %v7353_v60 = vld [vmem:[%s8400_s15 + $0xec] sm:$0xf0]  ;;  %v6054_v62 = vor.u32 %v7481_v55, %v6053_v54  ;;  %v7373_v55 = vld [vmem:[%s8400_s15 + $0x194] sm:$0xf] }
 0x1a7   : > { %v7644_v17 = vld [vmem:[%s8400_s15 + $0xa0c] sm:$0xf]  ;;  %3878 = vmatpush.bf16.msrb.mxu2 %v6182_v3  ;;  %3819 = vmatpush.bf16.msra.mxu1 %v6242_v15  ;;  %v6210_v29 = vor.u32 %v7516_v14, %v6207_v16  ;;  %v5829_v1 = vld [vmem:[%s8400_s15 + $0x310] sm:$0xf]  ;;  %v5542_v9 = vor.u32 %v7353_v60, %v5541_v59 }
 0x1a8   : > { %v6719_v18 = vld [vmem:[%s8400_s15 + $0xa28] sm:$0xf0]  ;;  %3852 = vmatpush.bf16.msrb.mxu0 %v5670_v10  ;;  %3845 = vmatpush.bf16.msra.mxu3 %v6754_v11  ;;  %v6341_v2 = vld [vmem:[%s8400_s15 + $0x710] sm:$0xf] }
 0x1a9   : > { %v6722_v28 = vor.u32 %v7644_v17, %v6719_v18  ;;  %3808 = vmatmul.bf16.vlgmr.msra.gmra.mxu0 %v8795_v51  ;;  %v7553_v3 = vld [vmem:[%s8400_s15 + $0x72c] sm:$0xf0]  ;;  %v9094_v7 = vpop.f32.mrf.mxu2 }
 0x1aa   : > { %v7425_v63 = vld [vmem:[%s8400_s15 + $0x32c] sm:$0xf0]  ;;  %v6342_v10 = vor.u32 %v7553_v3, %v6341_v2 }
 0x1ab   : > { %3879 = vmatpush.bf16.msrb.mxu2 %v6150_v19  ;;  %3820 = vmatpush.bf16.msra.mxu1 %v6210_v29  ;;  %v6021_v4 = vld [vmem:[%s8400_s15 + $0x490] sm:$0xf]  ;;  %v5830_v53 = vor.u32 %v7425_v63, %v5829_v1 }
 0x1ac   : > { %3853 = vmatpush.bf16.msrb.mxu0 %v5638_v27  ;;  %3846 = vmatpush.bf16.msra.mxu3 %v6722_v28  ;;  %v7473_v6 = vld [vmem:[%s8400_s15 + $0x4ac] sm:$0xf0] }
 0x1ad   : > { %v5509_v11 = vld [vmem:[%s8400_s15 + $0x90] sm:$0xf]  ;;  %v6022_v14 = vor.u32 %v7473_v6, %v6021_v4 }
 0x1ae   : > { %3821 = vmatmul.bf16.vlgmr.msra.gmra.mxu1 %v8807_v12  ;;  %v5797_v15 = vld [vmem:[%s8400_s15 + $0x2d0] sm:$0xf]  ;;  %v5510_v56 = vor.u32 %v7345_v13, %v5509_v11  ;;  %v5927_v11 = vld [vmem:[%s8400_s15 + $0x3f0] sm:$0xf0] }
 0x1af   : > { %3865 = vmatpush.bf16.msrb.mxu1 %v5926_v33  ;;  %3880 = vmatpush.bf16.msrb.mxu2 %v6118_v34  ;;  %v6309_v16 = vld [vmem:[%s8400_s15 + $0x6d0] sm:$0xf] }
 0x1b0   : > { %3891 = vmatpush.bf16.msrb.mxu3 %v6438_v30  ;;  %3854 = vmatpush.bf16.msrb.mxu0 %v5606_v41  ;;  %v7545_v17 = vld [vmem:[%s8400_s15 + $0x6ec] sm:$0xf0] }
 0x1b1   : > { %3847 = vmatmul.bf16.vlgmr.msra.gmra.mxu3 %v8858_v26  ;;  %v7417_v18 = vld [vmem:[%s8400_s15 + $0x2ec] sm:$0xf0]  ;;  %v6310_v22 = vor.u32 %v7545_v17, %v6309_v16  ;;  %v3577_v35 = vpop.f32.mrf.mxu2 }
 0x1b2   : > { %v5989_v19 = vld [vmem:[%s8400_s15 + $0x450] sm:$0xf]  ;;  %v5798_v25 = vor.u32 %v7417_v18, %v5797_v15  ;;  %v9109_v31 = vpop.f32.mrf.mxu3  ;;  %v5607_v15 = vld [vmem:[%s8400_s15 + $0x170] sm:$0xf0] }
 0x1b3   : > { %3866 = vmatpush.bf16.msrb.mxu1 %v5894_v46  ;;  %3881 = vmatpush.bf16.msrb.mxu2 %v6086_v47  ;;  %v7465_v21 = vld [vmem:[%s8400_s15 + $0x46c] sm:$0xf0] }
 0x1b4   : > { %3892 = vmatpush.bf16.msrb.mxu3 %v6406_v43  ;;  %3855 = vmatpush.bf16.msrb.mxu0 %v5574_v57  ;;  %v5477_v23 = vld [vmem:[%s8400_s15 + $0x50] sm:$0xf]  ;;  %v5990_v27 = vor.u32 %v7465_v21, %v5989_v19  ;;  %v5639_v57 = vld [vmem:[%s8400_s15 + $0x1b0] sm:$0xf0] }
 0x1b5   : > { %v7337_v24 = vld [vmem:[%s8400_s15 + $0x6c] sm:$0xf0]  ;;  %v5642_v6 = vor.u32 %v7373_v55, %v5639_v57 }
 0x1b6   : > { %v5765_v28 = vld [vmem:[%s8400_s15 + $0x290] sm:$0xf]  ;;  %v5478_v36 = vor.u32 %v7337_v24, %v5477_v23 }
 0x1b7   : > { %3867 = vmatpush.bf16.msrb.mxu1 %v5862_v61  ;;  %3882 = vmatpush.bf16.msrb.mxu2 %v6054_v62  ;;  %v6277_v29 = vld [vmem:[%s8400_s15 + $0x690] sm:$0xf] }
 0x1b8   : > { %3893 = vmatpush.bf16.msrb.mxu3 %v6374_v58  ;;  %3856 = vmatpush.bf16.msrb.mxu0 %v5542_v9  ;;  %v7537_v30 = vld [vmem:[%s8400_s15 + $0x6ac] sm:$0xf0] }
 0x1b9   : > { %v7409_v32 = vld [vmem:[%s8400_s15 + $0x2ac] sm:$0xf0]  ;;  %v6278_v39 = vor.u32 %v7537_v30, %v6277_v29  ;;  %v9135_v13 = vpop.f32.mrf.mxu2  ;;  %v7357_v29 = vld [vmem:[%s8400_s15 + $0x114] sm:$0xf] }
 0x1ba   : > { %v5957_v33 = vld [vmem:[%s8400_s15 + $0x410] sm:$0xf]  ;;  %v5766_v44 = vor.u32 %v7409_v32, %v5765_v28  ;;  %v3590_v4 = vpop.f32.mrf.mxu3  ;;  %v5575_v30 = vld [vmem:[%s8400_s15 + $0x130] sm:$0xf0] }
 0x1bb   : > { %3868 = vmatpush.bf16.msrb.mxu1 %v5830_v53  ;;  %3883 = vmatpush.bf16.msrb.mxu2 %v6022_v14  ;;  %v7457_v34 = vld [vmem:[%s8400_s15 + $0x42c] sm:$0xf0]  ;;  %v7365_v14 = vld [vmem:[%s8400_s15 + $0x154] sm:$0xf]  ;;  %v5578_v38 = vor.u32 %v7357_v29, %v5575_v30 }
 0x1bc   : > { %3894 = vmatpush.bf16.msrb.mxu3 %v6342_v10  ;;  %3857 = vmatpush.bf16.msrb.mxu0 %v5510_v56  ;;  %v5445_v40 = vld [vmem:[%s8400_s15 + $0x10] sm:$0xf]  ;;  %v5958_v45 = vor.u32 %v7457_v34, %v5957_v33  ;;  %v7445_v10 = vld [vmem:[%s8400_s15 + $0x3d4] sm:$0xf]  ;;  %v5610_v23 = vor.u32 %v7365_v14, %v5607_v15 }
 0x1bd   : > { %v7329_v41 = vld [vmem:[%s8400_s15 + $0x2c] sm:$0xf0]  ;;  %v5930_v19 = vor.u32 %v7445_v10, %v5927_v11  ;;  %v7413_v14 = vld [vmem:[%s8400_s15 + $0x2d4] sm:$0xf] }
 0x1be   : > { %v6693_v43 = vld [vmem:[%s8400_s15 + $0x9d0] sm:$0xf]  ;;  %v5446_v54 = vor.u32 %v7329_v41, %v5445_v40  ;;  %v7429_v40 = vld [vmem:[%s8400_s15 + $0x354] sm:$0xf] }
 0x1bf   : > { %3869 = vmatpush.bf16.msrb.mxu1 %v5798_v25  ;;  %3884 = vmatpush.bf16.msrb.mxu2 %v5990_v27  ;;  %v7641_v46 = vld [vmem:[%s8400_s15 + $0x9ec] sm:$0xf0]  ;;  %v7437_v25 = vld [vmem:[%s8400_s15 + $0x394] sm:$0xf] }
 0x1c0   : > { %3895 = vmatpush.bf16.msrb.mxu3 %v6310_v22  ;;  %v6245_v47 = vld [vmem:[%s8400_s15 + $0x650] sm:$0xf]  ;;  %3858 = vmatpush.bf16.msrb.mxu0 %v5478_v36  ;;  %v6694_v58 = vor.u32 %v7641_v46, %v6693_v43  ;;  %v5895_v27 = vld [vmem:[%s8400_s15 + $0x3b0] sm:$0xf0]  ;;  %v3563_v43 = vadd.f32 %v9022_v20, %v9009_v5 }
 0x1c1   : > { %v7529_v48 = vld [vmem:[%s8400_s15 + $0x66c] sm:$0xf0]  ;;  %v5898_v33 = vor.u32 %v7437_v25, %v5895_v27  ;;  %v5863_v41 = vld [vmem:[%s8400_s15 + $0x370] sm:$0xf0] }
 0x1c2   : > { %v5733_v50 = vld [vmem:[%s8400_s15 + $0x250] sm:$0xf]  ;;  %v6246_v59 = vor.u32 %v7529_v48, %v6245_v47  ;;  %v9152_v36 = vpop.f32.mrf.mxu3  ;;  %v7349_v46 = vld [vmem:[%s8400_s15 + $0xd4] sm:$0xf]  ;;  %v5866_v5 = vor.u32 %v7429_v40, %v5863_v41 }
 0x1c3   : > { %v7401_v52 = vld [vmem:[%s8400_s15 + $0x26c] sm:$0xf0]  ;;  %3870 = vmatpush.bf16.msrb.mxu1 %v5766_v44  ;;  %3885 = vmatpush.bf16.msrb.mxu2 %v5958_v45  ;;  %v3629_v44 = vpop.f32.mrf.mxu2  ;;  %v5543_v47 = vld [vmem:[%s8400_s15 + $0xf0] sm:$0xf0] }
 0x1c4   : > { %3896 = vmatpush.bf16.msrb.mxu3 %v6278_v39  ;;  %v6661_v60 = vld [vmem:[%s8400_s15 + $0x990] sm:$0xf]  ;;  %v5734_v1 = vor.u32 %v7401_v52, %v5733_v50  ;;  %3859 = vmatpush.bf16.msrb.mxu0 %v5446_v54  ;;  %v3601_v48 = vpop.f32.mrf.mxu0  ;;  %v3576_v50 = vadd.f32 %v9094_v7, %v3563_v43  ;;  %v5546_v55 = vor.u32 %v7349_v46, %v5543_v47  ;;  %v5799_v15 = vld [vmem:[%s8400_s15 + $0x2f0] sm:$0xf0] }
 0x1c5   : > { %v7633_v61 = vld [vmem:[%s8400_s15 + $0x9ac] sm:$0xf0]  ;;  %v6695_v40 = vld [vmem:[%s8400_s15 + $0x9f0] sm:$0xf0] }
 0x1c6   : > { %v5701_v62 = vld [vmem:[%s8400_s15 + $0x210] sm:$0xf]  ;;  %v6662_v16 = vor.u32 %v7633_v61, %v6661_v60  ;;  %3886 = vmatmul.bf16.vlgmr.msrb.gmra.mxu2 %v8795_v51  ;;  %v3589_v60 = vadd.f32 %v9109_v31, %v3576_v50  ;;  %v6183_v50 = vld [vmem:[%s8400_s15 + $0x5f0] sm:$0xf0] }
 0x1c7   : > { %v7393_v2 = vld [vmem:[%s8400_s15 + $0x22c] sm:$0xf0]  ;;  %3930 = vmatpush.bf16.msra.mxu2 %v5674_v49  ;;  %3871 = vmatpush.bf16.msrb.mxu1 %v5734_v1  ;;  %v5511_v1 = vld [vmem:[%s8400_s15 + $0xb0] sm:$0xf0] }
 0x1c8   : > { %v6213_v3 = vld [vmem:[%s8400_s15 + $0x610] sm:$0xf]  ;;  %3904 = vmatpush.bf16.msra.mxu0 %v6694_v58  ;;  %3897 = vmatpush.bf16.msrb.mxu3 %v6246_v59  ;;  %v5702_v18 = vor.u32 %v7393_v2, %v5701_v62  ;;  %v7421_v58 = vld [vmem:[%s8400_s15 + $0x314] sm:$0xf]  ;;  %v3602_v2 = vadd.f32 %v3601_v48, %v3589_v60 }
 0x1c9   : > { %v7521_v63 = vld [vmem:[%s8400_s15 + $0x62c] sm:$0xf0]  ;;  %3860 = vmatmul.bf16.vlgmr.msrb.gmra.mxu0 %v8750_v42  ;;  %v5831_v59 = vld [vmem:[%s8400_s15 + $0x330] sm:$0xf0] }
 0x1ca   : > { %v6949_v9 = vld [vmem:[%s8400_s15 + $0xbd0] sm:$0xf]  ;;  %v6214_v17 = vor.u32 %v7521_v63, %v6213_v3  ;;  %v7341_v62 = vld [vmem:[%s8400_s15 + $0x94] sm:$0xf]  ;;  %v5834_v63 = vor.u32 %v7421_v58, %v5831_v59  ;;  %v3642_v31 = vpop.f32.mrf.mxu3 }
 0x1cb   : > { %v7705_v53 = vld [vmem:[%s8400_s15 + $0xbec] sm:$0xf0]  ;;  %3931 = vmatpush.bf16.msra.mxu2 %v5642_v6  ;;  %3872 = vmatpush.bf16.msrb.mxu1 %v5702_v18  ;;  %v1228_v3 = vld [vmem:[#allocation2 + $0x30] sm:$0xff]  ;;  %v5514_v11 = vor.u32 %v7341_v62, %v5511_v1  ;;  %v3641_v31 = vadd.f32 %v9152_v36, %v9135_v13 }
 0x1cc   : > { %v6629_v21 = vld [vmem:[%s8400_s15 + $0x950] sm:$0xf]  ;;  %v6950_v22 = vor.u32 %v7705_v53, %v6949_v9  ;;  %3905 = vmatpush.bf16.msra.mxu0 %v6662_v16  ;;  %3898 = vmatpush.bf16.msrb.mxu3 %v6214_v17  ;;  %v3614_v9 = vpop.f32.mrf.mxu1  ;;  %v7333_v18 = vld [vmem:[%s8400_s15 + $0x54] sm:$0xf] }
 0x1cd   : > { %v7625_v56 = vld [vmem:[%s8400_s15 + $0x96c] sm:$0xf0]  ;;  %v3615_v16 = vadd.f32 %v3614_v9, %v3602_v2  ;;  %v7629_v60 = vld [vmem:[%s8400_s15 + $0x994] sm:$0xf] }
 0x1ce   : > { %v6917_v24 = vld [vmem:[%s8400_s15 + $0xb90] sm:$0xf]  ;;  %v6630_v32 = vor.u32 %v7625_v56, %v6629_v21  ;;  %3873 = vmatmul.bf16.vlgmr.msrb.gmra.mxu1 %v8763_v0  ;;  %v3603_v21 = vpop.f32.mrf.mxu0  ;;  %v9182_v56 = vpop.f32.mrf.mxu2  ;;  %v6151_v2 = vld [vmem:[%s8400_s15 + $0x5b0] sm:$0xf0] }
 0x1cf   : > { %v7697_v28 = vld [vmem:[%s8400_s15 + $0xbac] sm:$0xf0]  ;;  %3917 = vmatpush.bf16.msra.mxu1 %v6950_v22  ;;  %3932 = vmatpush.bf16.msra.mxu2 %v5610_v23  ;;  %v4164_v23 = vadd.f32 %v3615_v16, %v1228_v3  ;;  %v5703_v9 = vld [vmem:[%s8400_s15 + $0x230] sm:$0xf0] }
 0x1d0   : > { %3943 = vmatpush.bf16.msra.mxu3 %v5930_v19  ;;  %v6597_v34 = vld [vmem:[%s8400_s15 + $0x910] sm:$0xf]  ;;  %v6918_v37 = vor.u32 %v7697_v28, %v6917_v24  ;;  %3906 = vmatpush.bf16.msra.mxu0 %v6630_v32  ;;  %v5479_v19 = vld [vmem:[%s8400_s15 + $0x70] sm:$0xf0]  ;;  %v5802_v24 = vor.u32 %v7413_v14, %v5799_v15 }
 0x1d1   : > { %v7617_v35 = vld [vmem:[%s8400_s15 + $0x92c] sm:$0xf0]  ;;  %3899 = vmatmul.bf16.vlgmr.msrb.gmra.mxu3 %v8807_v12  ;;  %v5482_v30 = vor.u32 %v7333_v18, %v5479_v19  ;;  %4172 = vst [vmem:[#allocation2 + $0x30] sm:$0xff] %v4164_v23  ;;  %v6951_v14 = vld [vmem:[%s8400_s15 + $0xbf0] sm:$0xf0] }
 0x1d2   : > { %v6885_v39 = vld [vmem:[%s8400_s15 + $0xb50] sm:$0xf]  ;;  %v6598_v49 = vor.u32 %v7617_v35, %v6597_v34  ;;  %v5767_v34 = vld [vmem:[%s8400_s15 + $0x2b0] sm:$0xf0]  ;;  %v9197_v47 = vpop.f32.mrf.mxu3 }
 0x1d3   : > { %v7689_v45 = vld [vmem:[%s8400_s15 + $0xb6c] sm:$0xf0]  ;;  %3918 = vmatpush.bf16.msra.mxu1 %v6918_v37  ;;  %3933 = vmatpush.bf16.msra.mxu2 %v5578_v38  ;;  %v7325_v35 = vld [vmem:[%s8400_s15 + $0x14] sm:$0xf] }
 0x1d4   : > { %3944 = vmatpush.bf16.msra.mxu3 %v5898_v33  ;;  %v6565_v20 = vld [vmem:[%s8400_s15 + $0x8d0] sm:$0xf]  ;;  %v6886_v54 = vor.u32 %v7689_v45, %v6885_v39  ;;  %3907 = vmatpush.bf16.msra.mxu0 %v6598_v49  ;;  %v7405_v33 = vld [vmem:[%s8400_s15 + $0x294] sm:$0xf]  ;;  %v3616_v46 = vpop.f32.mrf.mxu1 }
 0x1d5   : > { %v7609_v52 = vld [vmem:[%s8400_s15 + $0x8ec] sm:$0xf0]  ;;  %v5447_v37 = vld [vmem:[%s8400_s15 + $0x30] sm:$0xf0]  ;;  %v5770_v41 = vor.u32 %v7405_v33, %v5767_v34 }
 0x1d6   : > { %v6853_v57 = vld [vmem:[%s8400_s15 + $0xb10] sm:$0xf]  ;;  %v6566_v7 = vor.u32 %v7609_v52, %v6565_v20  ;;  %v7637_v39 = vld [vmem:[%s8400_s15 + $0x9d4] sm:$0xf]  ;;  %v5450_v49 = vor.u32 %v7325_v35, %v5447_v37  ;;  %v3681_v58 = vpop.f32.mrf.mxu2 }
 0x1d7   : > { %v7681_v61 = vld [vmem:[%s8400_s15 + $0xb2c] sm:$0xf0]  ;;  %3919 = vmatpush.bf16.msra.mxu1 %v6886_v54  ;;  %3934 = vmatpush.bf16.msra.mxu2 %v5546_v55  ;;  %v7509_v45 = vld [vmem:[%s8400_s15 + $0x5d4] sm:$0xf]  ;;  %v6698_v52 = vor.u32 %v7637_v39, %v6695_v40 }
 0x1d8   : > { %3945 = vmatpush.bf16.msra.mxu3 %v5866_v5  ;;  %v6533_v4 = vld [vmem:[%s8400_s15 + $0x890] sm:$0xf]  ;;  %v6854_v10 = vor.u32 %v7681_v61, %v6853_v57  ;;  %3908 = vmatpush.bf16.msra.mxu0 %v6566_v7  ;;  %v7397_v5 = vld [vmem:[%s8400_s15 + $0x254] sm:$0xf]  ;;  %v3653_v57 = vpop.f32.mrf.mxu0  ;;  %v6186_v62 = vor.u32 %v7509_v45, %v6183_v50 }
 0x1d9   : > { %v7601_v6 = vld [vmem:[%s8400_s15 + $0x8ac] sm:$0xf0]  ;;  %v5735_v20 = vld [vmem:[%s8400_s15 + $0x270] sm:$0xf0]  ;;  %v3654_v18 = vadd.f32 %v3653_v57, %v3641_v31 }
 0x1da   : > { %v6821_v53 = vld [vmem:[%s8400_s15 + $0xad0] sm:$0xf]  ;;  %v6534_v22 = vor.u32 %v7601_v6, %v6533_v4  ;;  %v6663_v61 = vld [vmem:[%s8400_s15 + $0x9b0] sm:$0xf0]  ;;  %v5738_v1 = vor.u32 %v7397_v5, %v5735_v20  ;;  %v3694_v36 = vpop.f32.mrf.mxu3 }
 0x1db   : > { %v7673_v17 = vld [vmem:[%s8400_s15 + $0xaec] sm:$0xf0]  ;;  %3920 = vmatpush.bf16.msra.mxu1 %v6854_v10  ;;  %3935 = vmatpush.bf16.msra.mxu2 %v5514_v11  ;;  %v7501_v7 = vld [vmem:[%s8400_s15 + $0x594] sm:$0xf]  ;;  %v6666_v10 = vor.u32 %v7629_v60, %v6663_v61 }
 0x1dc   : > { %3946 = vmatpush.bf16.msra.mxu3 %v5834_v63  ;;  %v6501_v25 = vld [vmem:[%s8400_s15 + $0x850] sm:$0xf]  ;;  %v6822_v29 = vor.u32 %v7673_v17, %v6821_v53  ;;  %3909 = vmatpush.bf16.msra.mxu0 %v6534_v22  ;;  %v7389_v6 = vld [vmem:[%s8400_s15 + $0x214] sm:$0xf]  ;;  %v6154_v19 = vor.u32 %v7501_v7, %v6151_v2  ;;  %v3666_v13 = vpop.f32.mrf.mxu1 }
 0x1dd   : > { %v7593_v27 = vld [vmem:[%s8400_s15 + $0x86c] sm:$0xf0]  ;;  %v7573_v11 = vld [vmem:[%s8400_s15 + $0x7d4] sm:$0xf]  ;;  %v5706_v21 = vor.u32 %v7389_v6, %v5703_v9 }
 0x1de   : > { %v6789_v28 = vld [vmem:[%s8400_s15 + $0xa90] sm:$0xf]  ;;  %v6502_v38 = vor.u32 %v7593_v27, %v6501_v25  ;;  %v7701_v53 = vld [vmem:[%s8400_s15 + $0xbd4] sm:$0xf]  ;;  %v3667_v27 = vadd.f32 %v3666_v13, %v3654_v18 }
 0x1df   : > { %v7665_v32 = vld [vmem:[%s8400_s15 + $0xaac] sm:$0xf0]  ;;  %3921 = vmatpush.bf16.msra.mxu1 %v6822_v29  ;;  %3936 = vmatpush.bf16.msra.mxu2 %v5482_v30  ;;  %v6439_v15 = vld [vmem:[%s8400_s15 + $0x7f0] sm:$0xf0]  ;;  %v6954_v23 = vor.u32 %v7701_v53, %v6951_v14 }
 0x1e0   : > { %3947 = vmatpush.bf16.msra.mxu3 %v5802_v24  ;;  %v6469_v43 = vld [vmem:[%s8400_s15 + $0x810] sm:$0xf]  ;;  %v6790_v48 = vor.u32 %v7665_v32, %v6789_v28  ;;  %3910 = vmatpush.bf16.msra.mxu0 %v6502_v38  ;;  %v7621_v16 = vld [vmem:[%s8400_s15 + $0x954] sm:$0xf]  ;;  %v6442_v28 = vor.u32 %v7573_v11, %v6439_v15  ;;  %v3655_v34 = vpop.f32.mrf.mxu0  ;;  %v3680_v39 = vadd.f32 %v9182_v56, %v3667_v27 }
 0x1e1   : > { %v7585_v44 = vld [vmem:[%s8400_s15 + $0x82c] sm:$0xf0]  ;;  %v6631_v17 = vld [vmem:[%s8400_s15 + $0x970] sm:$0xf0] }
 0x1e2   : > { %v6757_v54 = vld [vmem:[%s8400_s15 + $0xa50] sm:$0xf]  ;;  %v6470_v59 = vor.u32 %v7585_v44, %v6469_v43  ;;  %v7493_v24 = vld [vmem:[%s8400_s15 + $0x554] sm:$0xf]  ;;  %v6634_v29 = vor.u32 %v7621_v16, %v6631_v17  ;;  %v3693_v46 = vadd.f32 %v9197_v47, %v3680_v39  ;;  %v6189_v39 = vld [vmem:[%s8400_s15 + $0x5d8] sm:$0xf] }
 0x1e3   : > { %v7657_v55 = vld [vmem:[%s8400_s15 + $0xa6c] sm:$0xf0]  ;;  %3922 = vmatpush.bf16.msra.mxu1 %v6790_v48  ;;  %3937 = vmatpush.bf16.msra.mxu2 %v5450_v49  ;;  %v6119_v25 = vld [vmem:[%s8400_s15 + $0x570] sm:$0xf0] }
 0x1e4   : > { %3948 = vmatpush.bf16.msra.mxu3 %v5770_v41  ;;  %v6725_v3 = vld [vmem:[%s8400_s15 + $0xa10] sm:$0xf]  ;;  %v6758_v63 = vor.u32 %v7657_v55, %v6757_v54  ;;  %3911 = vmatpush.bf16.msra.mxu0 %v6470_v59  ;;  %v7565_v30 = vld [vmem:[%s8400_s15 + $0x794] sm:$0xf]  ;;  %v6122_v40 = vor.u32 %v7493_v24, %v6119_v25  ;;  %v1229_v41 = vld [vmem:[#allocation2] sm:$0xff]  ;;  %v3668_v57 = vpop.f32.mrf.mxu1 }
 0x1e5   : > { %v7649_v4 = vld [vmem:[%s8400_s15 + $0xa2c] sm:$0xf0]  ;;  %v7693_v32 = vld [vmem:[%s8400_s15 + $0xb94] sm:$0xf]  ;;  %v4165_v55 = vadd.f32 %v3693_v46, %v1229_v41  ;;  %v6157_v57 = vld [vmem:[%s8400_s15 + $0x598] sm:$0xf] }
 0x1e6   : > { %3938 = vmatmul.bf16.vlgmr.msra.gmra.mxu2 %v8750_v42  ;;  %v6726_v22 = vor.u32 %v7649_v4, %v6725_v3  ;;  %v6919_v33 = vld [vmem:[%s8400_s15 + $0xbb0] sm:$0xf0] }
 0x1e7   : > { %3982 = vmatpush.bf16.msrb.mxu2 %v6698_v52  ;;  %3923 = vmatpush.bf16.msra.mxu1 %v6758_v63  ;;  %v6407_v35 = vld [vmem:[%s8400_s15 + $0x7b0] sm:$0xf0]  ;;  %v6922_v43 = vor.u32 %v7693_v32, %v6919_v33  ;;  %4173 = vst [vmem:[#allocation2] sm:$0xff] %v4165_v55 }
 0x1e8   : > { %3956 = vmatpush.bf16.msrb.mxu0 %v6186_v62  ;;  %3949 = vmatpush.bf16.msra.mxu3 %v5738_v1  ;;  %v7613_v37 = vld [vmem:[%s8400_s15 + $0x914] sm:$0xf]  ;;  %v6410_v48 = vor.u32 %v7565_v30, %v6407_v35  ;;  %v9247_v3 = vpop.f32.mrf.mxu0 }
 0x1e9   : > { %3912 = vmatmul.bf16.vlgmr.msra.gmra.mxu0 %v8843_v8  ;;  %v6599_v38 = vld [vmem:[%s8400_s15 + $0x930] sm:$0xf0]  ;;  %v9260_v13 = vpop.f32.mrf.mxu2 }
 0x1ea   : > { %v7485_v44 = vld [vmem:[%s8400_s15 + $0x514] sm:$0xf]  ;;  %v6602_v56 = vor.u32 %v7613_v37, %v6599_v38 }
 0x1eb   : > { %3983 = vmatpush.bf16.msrb.mxu2 %v6666_v10  ;;  %3924 = vmatpush.bf16.msra.mxu1 %v6726_v22  ;;  %v6087_v45 = vld [vmem:[%s8400_s15 + $0x530] sm:$0xf0] }
 0x1ec   : > { %3957 = vmatpush.bf16.msrb.mxu0 %v6154_v19  ;;  %3950 = vmatpush.bf16.msra.mxu3 %v5706_v21  ;;  %v7557_v49 = vld [vmem:[%s8400_s15 + $0x754] sm:$0xf]  ;;  %v6090_v47 = vor.u32 %v7485_v44, %v6087_v45  ;;  %v9262_v22 = vpop.f32.mrf.mxu1  ;;  %v5677_v45 = vld [vmem:[%s8400_s15 + $0x1d8] sm:$0xf] }
 0x1ed   : > { %v7685_v50 = vld [vmem:[%s8400_s15 + $0xb54] sm:$0xf] }
 0x1ee   : > { %v6887_v5 = vld [vmem:[%s8400_s15 + $0xb70] sm:$0xf0]  ;;  %3925 = vmatmul.bf16.vlgmr.msra.gmra.mxu1 %v8858_v26 }
 0x1ef   : > { %3969 = vmatpush.bf16.msrb.mxu1 %v6442_v28  ;;  %3984 = vmatpush.bf16.msrb.mxu2 %v6634_v29  ;;  %v6375_v20 = vld [vmem:[%s8400_s15 + $0x770] sm:$0xf0]  ;;  %v6890_v58 = vor.u32 %v7685_v50, %v6887_v5 }
 0x1f0   : > { %3995 = vmatpush.bf16.msrb.mxu3 %v6954_v23  ;;  %v7605_v52 = vld [vmem:[%s8400_s15 + $0x8d4] sm:$0xf]  ;;  %3958 = vmatpush.bf16.msrb.mxu0 %v6122_v40  ;;  %v6378_v62 = vor.u32 %v7557_v49, %v6375_v20  ;;  %v3707_v33 = vpop.f32.mrf.mxu0  ;;  %v7514_v40 = vld [vmem:[%s8400_s15 + $0x5f4] sm:$0xf0] }
 0x1f1   : > { %3951 = vmatmul.bf16.vlgmr.msra.gmra.mxu3 %v8763_v0  ;;  %v6567_v54 = vld [vmem:[%s8400_s15 + $0x8f0] sm:$0xf0]  ;;  %v7386_v49 = vld [vmem:[%s8400_s15 + $0x1f4] sm:$0xf0]  ;;  %v6190_v20 = vor.u32 %v7514_v40, %v6189_v39  ;;  %v3733_v55 = vpop.f32.mrf.mxu2  ;;  %v3719_v39 = vadd.f32 %v9262_v22, %v9247_v3 }
 0x1f2   : > { %v7477_v59 = vld [vmem:[%s8400_s15 + $0x4d4] sm:$0xf]  ;;  %v6570_v1 = vor.u32 %v7605_v52, %v6567_v54  ;;  %v9277_v46 = vpop.f32.mrf.mxu3  ;;  %v7490_v33 = vld [vmem:[%s8400_s15 + $0x534] sm:$0xf0] }
 0x1f3   : > { %v6055_v60 = vld [vmem:[%s8400_s15 + $0x4f0] sm:$0xf0]  ;;  %3970 = vmatpush.bf16.msrb.mxu1 %v6410_v48  ;;  %3985 = vmatpush.bf16.msrb.mxu2 %v6602_v56  ;;  %v5837_v55 = vld [vmem:[%s8400_s15 + $0x318] sm:$0xf] }
 0x1f4   : > { %3996 = vmatpush.bf16.msrb.mxu3 %v6922_v43  ;;  %v7549_v61 = vld [vmem:[%s8400_s15 + $0x714] sm:$0xf]  ;;  %3959 = vmatpush.bf16.msrb.mxu0 %v6090_v47  ;;  %v6058_v9 = vor.u32 %v7477_v59, %v6055_v60  ;;  %v3720_v59 = vpop.f32.mrf.mxu1  ;;  %v5678_v60 = vor.u32 %v7386_v49, %v5677_v45  ;;  %v7562_v45 = vld [vmem:[%s8400_s15 + $0x774] sm:$0xf0] }
 0x1f5   : > { %v7677_v7 = vld [vmem:[%s8400_s15 + $0xb14] sm:$0xf]  ;;  %v7482_v49 = vld [vmem:[%s8400_s15 + $0x4f4] sm:$0xf0] }
 0x1f6   : > { %v6855_v2 = vld [vmem:[%s8400_s15 + $0xb30] sm:$0xf0]  ;;  %v7426_v59 = vld [vmem:[%s8400_s15 + $0x334] sm:$0xf0] }
 0x1f7   : > { %v6343_v63 = vld [vmem:[%s8400_s15 + $0x730] sm:$0xf0]  ;;  %v6858_v31 = vor.u32 %v7677_v7, %v6855_v2  ;;  %3971 = vmatpush.bf16.msrb.mxu1 %v6378_v62  ;;  %3986 = vmatpush.bf16.msrb.mxu2 %v6570_v1  ;;  %v5645_v62 = vld [vmem:[%s8400_s15 + $0x198] sm:$0xf] }
 0x1f8   : > { %v7597_v4 = vld [vmem:[%s8400_s15 + $0x894] sm:$0xf]  ;;  %3997 = vmatpush.bf16.msrb.mxu3 %v6890_v58  ;;  %v6346_v53 = vor.u32 %v7549_v61, %v6343_v63  ;;  %3960 = vmatpush.bf16.msrb.mxu0 %v6058_v9  ;;  %v7506_v58 = vld [vmem:[%s8400_s15 + $0x5b4] sm:$0xf0] }
 0x1f9   : > { %v6535_v6 = vld [vmem:[%s8400_s15 + $0x8b0] sm:$0xf0]  ;;  %v7378_v1 = vld [vmem:[%s8400_s15 + $0x1b4] sm:$0xf0]  ;;  %v6158_v9 = vor.u32 %v7506_v58, %v6157_v57 }
 0x1fa   : > { %v7469_v10 = vld [vmem:[%s8400_s15 + $0x494] sm:$0xf]  ;;  %v6538_v14 = vor.u32 %v7597_v4, %v6535_v6  ;;  %v7554_v57 = vld [vmem:[%s8400_s15 + $0x734] sm:$0xf0] }
 0x1fb   : > { %v6023_v11 = vld [vmem:[%s8400_s15 + $0x4b0] sm:$0xf0]  ;;  %3972 = vmatpush.bf16.msrb.mxu1 %v6346_v53  ;;  %v7450_v53 = vld [vmem:[%s8400_s15 + $0x3f4] sm:$0xf0] }
 0x1fc   : > { %v7541_v15 = vld [vmem:[%s8400_s15 + $0x6d4] sm:$0xf]  ;;  %v6026_v36 = vor.u32 %v7469_v10, %v6023_v11  ;;  %3998 = vmatpush.bf16.msrb.mxu3 %v6858_v31  ;;  %3987 = vmatpush.bf16.msrb.mxu2 %v6538_v14  ;;  %v5933_v31 = vld [vmem:[%s8400_s15 + $0x3d8] sm:$0xf] }
 0x1fd   : > { %v7669_v16 = vld [vmem:[%s8400_s15 + $0xad4] sm:$0xf]  ;;  %v6445_v10 = vld [vmem:[%s8400_s15 + $0x7d8] sm:$0xf] }
 0x1fe   : > { %v6823_v17 = vld [vmem:[%s8400_s15 + $0xaf0] sm:$0xf0]  ;;  %3961 = vmatpush.bf16.msrb.mxu0 %v6026_v36  ;;  %v7578_v11 = vld [vmem:[%s8400_s15 + $0x7f4] sm:$0xf0] }
 0x1ff   : > { %v6311_v18 = vld [vmem:[%s8400_s15 + $0x6f0] sm:$0xf0]  ;;  %v6826_v23 = vor.u32 %v7669_v16, %v6823_v17  ;;  %v6125_v14 = vld [vmem:[%s8400_s15 + $0x558] sm:$0xf]  ;;  %v5646_v16 = vor.u32 %v7378_v1, %v5645_v62 }
 0x200   : > { %v7589_v19 = vld [vmem:[%s8400_s15 + $0x854] sm:$0xf]  ;;  %v6314_v27 = vor.u32 %v7541_v15, %v6311_v18  ;;  %v7498_v15 = vld [vmem:[%s8400_s15 + $0x574] sm:$0xf0]  ;;  %v3746_v18 = vpop.f32.mrf.mxu3 }
 0x201   : > { %v6503_v21 = vld [vmem:[%s8400_s15 + $0x870] sm:$0xf0]  ;;  %3999 = vmatpush.bf16.msrb.mxu3 %v6826_v23  ;;  %v5613_v36 = vld [vmem:[%s8400_s15 + $0x158] sm:$0xf] }
 0x202   : > { %v7461_v24 = vld [vmem:[%s8400_s15 + $0x454] sm:$0xf]  ;;  %v6506_v28 = vor.u32 %v7589_v19, %v6503_v21  ;;  %3973 = vmatpush.bf16.msrb.mxu1 %v6314_v27  ;;  %v6446_v21 = vor.u32 %v7578_v11, %v6445_v10  ;;  %v7370_v23 = vld [vmem:[%s8400_s15 + $0x174] sm:$0xf0] }
 0x203   : > { %v5991_v25 = vld [vmem:[%s8400_s15 + $0x470] sm:$0xf0]  ;;  %v5901_v27 = vld [vmem:[%s8400_s15 + $0x398] sm:$0xf] }
 0x204   : > { %v7533_v29 = vld [vmem:[%s8400_s15 + $0x694] sm:$0xf]  ;;  %v5994_v38 = vor.u32 %v7461_v24, %v5991_v25  ;;  %3988 = vmatpush.bf16.msrb.mxu2 %v6506_v28  ;;  %v5934_v24 = vor.u32 %v7450_v53, %v5933_v31  ;;  %v6126_v25 = vor.u32 %v7498_v15, %v6125_v14  ;;  %v6413_v28 = vld [vmem:[%s8400_s15 + $0x798] sm:$0xf]  ;;  %v3757_v58 = vpop.f32.mrf.mxu0 }
 0x205   : > { %v7661_v30 = vld [vmem:[%s8400_s15 + $0xa94] sm:$0xf]  ;;  %v5517_v1 = vld [vmem:[%s8400_s15 + $0x98] sm:$0xf] }
 0x206   : > { %v6791_v32 = vld [vmem:[%s8400_s15 + $0xab0] sm:$0xf0]  ;;  %3962 = vmatpush.bf16.msrb.mxu0 %v5994_v38  ;;  %v7362_v38 = vld [vmem:[%s8400_s15 + $0x134] sm:$0xf0] }
 0x207   : > { %v6279_v34 = vld [vmem:[%s8400_s15 + $0x6b0] sm:$0xf0]  ;;  %v6794_v41 = vor.u32 %v7661_v30, %v6791_v32  ;;  %v7442_v30 = vld [vmem:[%s8400_s15 + $0x3b4] sm:$0xf0] }
 0x208   : > { %v7581_v35 = vld [vmem:[%s8400_s15 + $0x814] sm:$0xf]  ;;  %v6282_v48 = vor.u32 %v7533_v29, %v6279_v34  ;;  %v7570_v29 = vld [vmem:[%s8400_s15 + $0x7b4] sm:$0xf0]  ;;  %v5614_v34 = vor.u32 %v7370_v23, %v5613_v36  ;;  %v5902_v40 = vor.u32 %v7442_v30, %v5901_v27 }
 0x209   : > { %v6471_v37 = vld [vmem:[%s8400_s15 + $0x830] sm:$0xf0]  ;;  %4000 = vmatpush.bf16.msrb.mxu3 %v6794_v41  ;;  %v6093_v32 = vld [vmem:[%s8400_s15 + $0x518] sm:$0xf]  ;;  %v9338_v15 = vpop.f32.mrf.mxu2 }
 0x20a   : > { %v7453_v43 = vld [vmem:[%s8400_s15 + $0x414] sm:$0xf]  ;;  %v6474_v56 = vor.u32 %v7581_v35, %v6471_v37  ;;  %3974 = vmatpush.bf16.msrb.mxu1 %v6282_v48  ;;  %v6414_v35 = vor.u32 %v7570_v29, %v6413_v28  ;;  %v5581_v37 = vld [vmem:[%s8400_s15 + $0x118] sm:$0xf]  ;;  %v6094_v41 = vor.u32 %v7490_v33, %v6093_v32 }
 0x20b   : > { %v5959_v44 = vld [vmem:[%s8400_s15 + $0x430] sm:$0xf0]  ;;  %v7434_v48 = vld [vmem:[%s8400_s15 + $0x374] sm:$0xf0]  ;;  %v5582_v3 = vor.u32 %v7362_v38, %v5581_v37  ;;  %v7382_v38 = vld [vmem:[%s8400_s15 + $0x1dc] sm:$0xf] }
 0x20c   : > { %v7653_v50 = vld [vmem:[%s8400_s15 + $0xa54] sm:$0xf]  ;;  %v5962_v47 = vor.u32 %v7453_v43, %v5959_v44  ;;  %3989 = vmatpush.bf16.msrb.mxu2 %v6474_v56  ;;  %v5869_v43 = vld [vmem:[%s8400_s15 + $0x358] sm:$0xf]  ;;  %v3759_v29 = vpop.f32.mrf.mxu0 }
 0x20d   : > { %v6759_v5 = vld [vmem:[%s8400_s15 + $0xa70] sm:$0xf0]  ;;  %v6381_v44 = vld [vmem:[%s8400_s15 + $0x758] sm:$0xf] }
 0x20e   : > { %v7525_v52 = vld [vmem:[%s8400_s15 + $0x654] sm:$0xf]  ;;  %v6762_v61 = vor.u32 %v7653_v50, %v6759_v5  ;;  %3963 = vmatpush.bf16.msrb.mxu0 %v5962_v47  ;;  %v6061_v56 = vld [vmem:[%s8400_s15 + $0x4d8] sm:$0xf]  ;;  %v6382_v22 = vor.u32 %v7562_v45, %v6381_v44 }
 0x20f   : > { %v6247_v54 = vld [vmem:[%s8400_s15 + $0x670] sm:$0xf0]  ;;  %3990 = vmatmul.bf16.vlgmr.msrb.gmra.mxu2 %v8843_v8  ;;  %v5549_v50 = vld [vmem:[%s8400_s15 + $0xd8] sm:$0xf] }
 0x210   : > { %v7517_v7 = vld [vmem:[%s8400_s15 + $0x614] sm:$0xf]  ;;  %v6250_v2 = vor.u32 %v7525_v52, %v6247_v54  ;;  %4034 = vmatpush.bf16.msra.mxu2 %v6190_v20  ;;  %4001 = vmatpush.bf16.msrb.mxu3 %v6762_v61  ;;  %v7354_v5 = vld [vmem:[%s8400_s15 + $0xf4] sm:$0xf0]  ;;  %v3732_v20 = vadd.f32 %v9260_v13, %v3719_v39  ;;  %v5870_v52 = vor.u32 %v7434_v48, %v5869_v43  ;;  %v5679_v39 = vld [vmem:[%s8400_s15 + $0x1f8] sm:$0xf0] }
 0x211   : > { %v6215_v63 = vld [vmem:[%s8400_s15 + $0x630] sm:$0xf0]  ;;  %3964 = vmatmul.bf16.vlgmr.msrb.gmra.mxu0 %v8795_v51  ;;  %v6062_v54 = vor.u32 %v7482_v49, %v6061_v56  ;;  %v6349_v47 = vld [vmem:[%s8400_s15 + $0x718] sm:$0xf]  ;;  %v5550_v13 = vor.u32 %v7354_v5, %v5549_v50 }
 0x212   : > { %v7645_v4 = vld [vmem:[%s8400_s15 + $0xa14] sm:$0xf]  ;;  %4008 = vmatpush.bf16.msra.mxu0 %v5678_v60  ;;  %3975 = vmatpush.bf16.msrb.mxu1 %v6250_v2  ;;  %v6218_v19 = vor.u32 %v7517_v7, %v6215_v63  ;;  %v6029_v60 = vld [vmem:[%s8400_s15 + $0x498] sm:$0xf]  ;;  %v6350_v62 = vor.u32 %v7554_v57, %v6349_v47  ;;  %v3745_v2 = vadd.f32 %v9277_v46, %v3732_v20  ;;  %v9354_v45 = vpop.f32.mrf.mxu3  ;;  %v3785_v20 = vpop.f32.mrf.mxu2 }
 0x213   : > { %v6727_v6 = vld [vmem:[%s8400_s15 + $0xa30] sm:$0xf0]  ;;  %v7474_v61 = vld [vmem:[%s8400_s15 + $0x4b4] sm:$0xf0]  ;;  %v5838_v63 = vor.u32 %v7426_v59, %v5837_v55  ;;  %v5647_v55 = vld [vmem:[%s8400_s15 + $0x1b8] sm:$0xf0] }
 0x214   : > { %v6730_v17 = vor.u32 %v7645_v4, %v6727_v6  ;;  %4035 = vmatpush.bf16.msra.mxu2 %v6158_v9  ;;  %v7346_v7 = vld [vmem:[%s8400_s15 + $0xb4] sm:$0xf0]  ;;  %v6030_v4 = vor.u32 %v7474_v61, %v6029_v60  ;;  %v3758_v14 = vadd.f32 %v3757_v58, %v3745_v2  ;;  %v5839_v20 = vld [vmem:[%s8400_s15 + $0x338] sm:$0xf0] }
 0x215   : > { %v5805_v6 = vld [vmem:[%s8400_s15 + $0x2d8] sm:$0xf]  ;;  %v5518_v46 = vor.u32 %v7346_v7, %v5517_v1 }
 0x216   : > { %4009 = vmatpush.bf16.msra.mxu0 %v5646_v16  ;;  %4002 = vmatpush.bf16.msrb.mxu3 %v6730_v17  ;;  %v6317_v9 = vld [vmem:[%s8400_s15 + $0x6d8] sm:$0xf]  ;;  %v1230_v16 = vld [vmem:[#allocation2 + $0x18] sm:$0xff]  ;;  %v3770_v17 = vpop.f32.mrf.mxu1 }
 0x217   : > { %3976 = vmatpush.bf16.msrb.mxu1 %v6218_v19  ;;  %v7546_v31 = vld [vmem:[%s8400_s15 + $0x6f4] sm:$0xf0]  ;;  %v3771_v36 = vadd.f32 %v3770_v17, %v3758_v14 }
 0x218   : > { %4036 = vmatpush.bf16.msra.mxu2 %v6126_v25  ;;  %v7418_v10 = vld [vmem:[%s8400_s15 + $0x2f4] sm:$0xf0]  ;;  %v6318_v18 = vor.u32 %v7546_v31, %v6317_v9  ;;  %v7366_v31 = vld [vmem:[%s8400_s15 + $0x15c] sm:$0xf] }
 0x219   : > { %4003 = vmatmul.bf16.vlgmr.msrb.gmra.mxu3 %v8858_v26  ;;  %v5997_v11 = vld [vmem:[%s8400_s15 + $0x458] sm:$0xf]  ;;  %v5806_v23 = vor.u32 %v7418_v10, %v5805_v6  ;;  %v5935_v6 = vld [vmem:[%s8400_s15 + $0x3f8] sm:$0xf0] }
 0x21a   : > { %4047 = vmatpush.bf16.msra.mxu3 %v6446_v21  ;;  %3977 = vmatmul.bf16.vlgmr.msrb.gmra.mxu1 %v8807_v12  ;;  %v7466_v53 = vld [vmem:[%s8400_s15 + $0x474] sm:$0xf0]  ;;  %v5615_v10 = vld [vmem:[%s8400_s15 + $0x178] sm:$0xf0]  ;;  %v3798_v14 = vpop.f32.mrf.mxu3 }
 0x21b   : > { %4021 = vmatpush.bf16.msra.mxu1 %v5934_v24  ;;  %4010 = vmatpush.bf16.msra.mxu0 %v5614_v34  ;;  %v5485_v19 = vld [vmem:[%s8400_s15 + $0x58] sm:$0xf]  ;;  %v5998_v24 = vor.u32 %v7466_v53, %v5997_v11  ;;  %v4166_v34 = vadd.f32 %v3771_v36, %v1230_v16 }
 0x21c   : > { %4037 = vmatpush.bf16.msra.mxu2 %v6094_v41  ;;  %v7338_v21 = vld [vmem:[%s8400_s15 + $0x74] sm:$0xf0] }
 0x21d   : > { %v5773_v25 = vld [vmem:[%s8400_s15 + $0x298] sm:$0xf]  ;;  %4174 = vst [vmem:[#allocation2 + $0x18] sm:$0xff] %v4166_v34 }
 0x21e   : > { %4048 = vmatpush.bf16.msra.mxu3 %v6414_v35  ;;  %v6285_v27 = vld [vmem:[%s8400_s15 + $0x698] sm:$0xf]  ;;  %v5486_v35 = vor.u32 %v7338_v21, %v5485_v19  ;;  %v3772_v47 = vpop.f32.mrf.mxu1  ;;  %v5618_v21 = vor.u32 %v7366_v31, %v5615_v10 }
 0x21f   : > { %4022 = vmatpush.bf16.msra.mxu1 %v5902_v40  ;;  %4011 = vmatpush.bf16.msra.mxu0 %v5582_v3  ;;  %v7538_v28 = vld [vmem:[%s8400_s15 + $0x6b4] sm:$0xf0]  ;;  %v5519_v47 = vld [vmem:[%s8400_s15 + $0xb8] sm:$0xf0] }
 0x220   : > { %4038 = vmatpush.bf16.msra.mxu2 %v6062_v54  ;;  %v7410_v30 = vld [vmem:[%s8400_s15 + $0x2b4] sm:$0xf0]  ;;  %v6286_v40 = vor.u32 %v7538_v28, %v6285_v27  ;;  %v7374_v54 = vld [vmem:[%s8400_s15 + $0x19c] sm:$0xf] }
 0x221   : > { %v5965_v32 = vld [vmem:[%s8400_s15 + $0x418] sm:$0xf]  ;;  %v5774_v48 = vor.u32 %v7410_v30, %v5773_v25  ;;  %v5650_v2 = vor.u32 %v7374_v54, %v5647_v55  ;;  %v7358_v27 = vld [vmem:[%s8400_s15 + $0x11c] sm:$0xf] }
 0x222   : > { %4049 = vmatpush.bf16.msra.mxu3 %v6382_v22  ;;  %v7458_v33 = vld [vmem:[%s8400_s15 + $0x434] sm:$0xf0]  ;;  %v5682_v22 = vor.u32 %v7382_v38, %v5679_v39  ;;  %v5583_v28 = vld [vmem:[%s8400_s15 + $0x138] sm:$0xf0] }
 0x223   : > { %4023 = vmatpush.bf16.msra.mxu1 %v5870_v52  ;;  %4012 = vmatpush.bf16.msra.mxu0 %v5550_v13  ;;  %v5453_v37 = vld [vmem:[%s8400_s15 + $0x18] sm:$0xf]  ;;  %v5966_v56 = vor.u32 %v7458_v33, %v5965_v32  ;;  %v7430_v38 = vld [vmem:[%s8400_s15 + $0x35c] sm:$0xf] }
 0x224   : > { %4039 = vmatpush.bf16.msra.mxu2 %v6030_v4  ;;  %v7330_v41 = vld [vmem:[%s8400_s15 + $0x34] sm:$0xf0]  ;;  %v7446_v4 = vld [vmem:[%s8400_s15 + $0x3dc] sm:$0xf] }
 0x225   : > { %v6701_v43 = vld [vmem:[%s8400_s15 + $0x9d8] sm:$0xf]  ;;  %v5454_v52 = vor.u32 %v7330_v41, %v5453_v37  ;;  %v5938_v16 = vor.u32 %v7446_v4, %v5935_v6  ;;  %v5871_v39 = vld [vmem:[%s8400_s15 + $0x378] sm:$0xf0] }
 0x226   : > { %4050 = vmatpush.bf16.msra.mxu3 %v6350_v62  ;;  %v7642_v44 = vld [vmem:[%s8400_s15 + $0x9f4] sm:$0xf0]  ;;  %v7350_v41 = vld [vmem:[%s8400_s15 + $0xdc] sm:$0xf] }
 0x227   : > { %4024 = vmatpush.bf16.msra.mxu1 %v5838_v63  ;;  %4013 = vmatpush.bf16.msra.mxu0 %v5518_v46  ;;  %v6253_v49 = vld [vmem:[%s8400_s15 + $0x658] sm:$0xf]  ;;  %v6702_v57 = vor.u32 %v7642_v44, %v6701_v43  ;;  %v5551_v43 = vld [vmem:[%s8400_s15 + $0xf8] sm:$0xf0] }
 0x228   : > { %4040 = vmatpush.bf16.msra.mxu2 %v5998_v24  ;;  %v7530_v3 = vld [vmem:[%s8400_s15 + $0x674] sm:$0xf0]  ;;  %v5903_v24 = vld [vmem:[%s8400_s15 + $0x3b8] sm:$0xf0] }
 0x229   : > { %v5741_v50 = vld [vmem:[%s8400_s15 + $0x258] sm:$0xf]  ;;  %v6254_v58 = vor.u32 %v7530_v3, %v6253_v49  ;;  %v7342_v55 = vld [vmem:[%s8400_s15 + $0x9c] sm:$0xf]  ;;  %v3835_v31 = vpop.f32.mrf.mxu2 }
 0x22a   : > { %4051 = vmatpush.bf16.msra.mxu3 %v6318_v18  ;;  %v7402_v5 = vld [vmem:[%s8400_s15 + $0x274] sm:$0xf0]  ;;  %v7334_v4 = vld [vmem:[%s8400_s15 + $0x5c] sm:$0xf] }
 0x22b   : > { %4025 = vmatpush.bf16.msra.mxu1 %v5806_v23  ;;  %4014 = vmatpush.bf16.msra.mxu0 %v5486_v35  ;;  %v6669_v59 = vld [vmem:[%s8400_s15 + $0x998] sm:$0xf]  ;;  %v5742_v13 = vor.u32 %v7402_v5, %v5741_v50  ;;  %v7438_v23 = vld [vmem:[%s8400_s15 + $0x39c] sm:$0xf]  ;;  %v5586_v35 = vor.u32 %v7358_v27, %v5583_v28 }
 0x22c   : > { %v7634_v60 = vld [vmem:[%s8400_s15 + $0x9b4] sm:$0xf0]  ;;  %4041 = vmatpush.bf16.msra.mxu2 %v5966_v56  ;;  %v5906_v30 = vor.u32 %v7438_v23, %v5903_v24  ;;  %v7422_v5 = vld [vmem:[%s8400_s15 + $0x31c] sm:$0xf] }
 0x22d   : > { %v5709_v61 = vld [vmem:[%s8400_s15 + $0x218] sm:$0xf]  ;;  %v6670_v11 = vor.u32 %v7634_v60, %v6669_v59  ;;  %v5487_v6 = vld [vmem:[%s8400_s15 + $0x78] sm:$0xf0] }
 0x22e   : > { %4052 = vmatpush.bf16.msra.mxu3 %v6286_v40  ;;  %v7394_v62 = vld [vmem:[%s8400_s15 + $0x234] sm:$0xf0]  ;;  %v7326_v23 = vld [vmem:[%s8400_s15 + $0x1c] sm:$0xf] }
 0x22f   : > { %4026 = vmatpush.bf16.msra.mxu1 %v5774_v48  ;;  %v6221_v1 = vld [vmem:[%s8400_s15 + $0x618] sm:$0xf]  ;;  %4015 = vmatpush.bf16.msra.mxu0 %v5454_v52  ;;  %v5710_v46 = vor.u32 %v7394_v62, %v5709_v61  ;;  %v5874_v48 = vor.u32 %v7430_v38, %v5871_v39  ;;  %v3809_v52 = vpop.f32.mrf.mxu0  ;;  %v3797_v61 = vadd.f32 %v9354_v45, %v9338_v15  ;;  %v3822_v45 = vpop.f32.mrf.mxu1  ;;  %v5455_v24 = vld [vmem:[%s8400_s15 + $0x38] sm:$0xf0] }
 0x230   : > { %v7522_v7 = vld [vmem:[%s8400_s15 + $0x634] sm:$0xf0]  ;;  %4086 = vmatpush.bf16.msrb.mxu2 %v5682_v22  ;;  %v5554_v22 = vor.u32 %v7350_v41, %v5551_v43  ;;  %v5522_v62 = vor.u32 %v7342_v55, %v5519_v47  ;;  %v7638_v28 = vld [vmem:[%s8400_s15 + $0x9dc] sm:$0xf]  ;;  %v5458_v39 = vor.u32 %v7326_v23, %v5455_v24 }
 0x231   : > { %v6957_v63 = vld [vmem:[%s8400_s15 + $0xbd8] sm:$0xf]  ;;  %v6222_v53 = vor.u32 %v7522_v7, %v6221_v1  ;;  %4042 = vmatmul.bf16.vlgmr.msra.gmra.mxu2 %v8795_v51  ;;  %v7414_v7 = vld [vmem:[%s8400_s15 + $0x2dc] sm:$0xf] }
 0x232   : > { %v7706_v9 = vld [vmem:[%s8400_s15 + $0xbf4] sm:$0xf0]  ;;  %4053 = vmatpush.bf16.msra.mxu3 %v6254_v58  ;;  %4016 = vmatmul.bf16.vlgmr.msra.gmra.mxu0 %v8750_v42  ;;  %v5842_v58 = vor.u32 %v7422_v5, %v5839_v20  ;;  %v7398_v41 = vld [vmem:[%s8400_s15 + $0x25c] sm:$0xf] }
 0x233   : > { %4060 = vmatpush.bf16.msrb.mxu0 %v6702_v57  ;;  %4027 = vmatpush.bf16.msra.mxu1 %v5742_v13  ;;  %v6637_v17 = vld [vmem:[%s8400_s15 + $0x958] sm:$0xf]  ;;  %v6958_v19 = vor.u32 %v7706_v9, %v6957_v63  ;;  %v3810_v9 = vadd.f32 %v3809_v52, %v3797_v61  ;;  %v5743_v43 = vld [vmem:[%s8400_s15 + $0x278] sm:$0xf0] }
 0x234   : > { %v7626_v18 = vld [vmem:[%s8400_s15 + $0x974] sm:$0xf0]  ;;  %4087 = vmatpush.bf16.msrb.mxu2 %v5650_v2  ;;  %v5807_v2 = vld [vmem:[%s8400_s15 + $0x2f8] sm:$0xf0]  ;;  %v5746_v47 = vor.u32 %v7398_v41, %v5743_v43 }
 0x235   : > { %v6925_v36 = vld [vmem:[%s8400_s15 + $0xb98] sm:$0xf]  ;;  %v6638_v29 = vor.u32 %v7626_v18, %v6637_v17  ;;  %v5810_v10 = vor.u32 %v7414_v7, %v5807_v2  ;;  %v3823_v14 = vadd.f32 %v3822_v45, %v3810_v9  ;;  %v7406_v18 = vld [vmem:[%s8400_s15 + $0x29c] sm:$0xf] }
 0x236   : > { %v7698_v25 = vld [vmem:[%s8400_s15 + $0xbb4] sm:$0xf0]  ;;  %4054 = vmatpush.bf16.msra.mxu3 %v6222_v53  ;;  %v7630_v5 = vld [vmem:[%s8400_s15 + $0x99c] sm:$0xf] }
 0x237   : > { %4061 = vmatpush.bf16.msrb.mxu0 %v6670_v11  ;;  %4028 = vmatpush.bf16.msra.mxu1 %v5710_v46  ;;  %v6605_v32 = vld [vmem:[%s8400_s15 + $0x918] sm:$0xf]  ;;  %v6926_v34 = vor.u32 %v7698_v25, %v6925_v36  ;;  %v6671_v20 = vld [vmem:[%s8400_s15 + $0x9b8] sm:$0xf0] }
 0x238   : > { %v7618_v33 = vld [vmem:[%s8400_s15 + $0x934] sm:$0xf0]  ;;  %4088 = vmatpush.bf16.msrb.mxu2 %v5618_v21  ;;  %v3811_v21 = vpop.f32.mrf.mxu0  ;;  %v7390_v61 = vld [vmem:[%s8400_s15 + $0x21c] sm:$0xf] }
 0x239   : > { %v6893_v37 = vld [vmem:[%s8400_s15 + $0xb58] sm:$0xf]  ;;  %4055 = vmatmul.bf16.vlgmr.msra.gmra.mxu3 %v8807_v12  ;;  %v6606_v44 = vor.u32 %v7618_v33, %v6605_v32  ;;  %v7702_v7 = vld [vmem:[%s8400_s15 + $0xbdc] sm:$0xf] }
 0x23a   : > { %4099 = vmatpush.bf16.msrb.mxu3 %v5938_v16  ;;  %v7690_v40 = vld [vmem:[%s8400_s15 + $0xb74] sm:$0xf0]  ;;  %4029 = vmatmul.bf16.vlgmr.msra.gmra.mxu1 %v8763_v0  ;;  %v5490_v16 = vor.u32 %v7334_v4, %v5487_v6  ;;  %v6959_v2 = vld [vmem:[%s8400_s15 + $0xbf8] sm:$0xf0] }
 0x23b   : > { %4073 = vmatpush.bf16.msrb.mxu1 %v6958_v19  ;;  %4062 = vmatpush.bf16.msrb.mxu0 %v6638_v29  ;;  %v6573_v56 = vld [vmem:[%s8400_s15 + $0x8d8] sm:$0xf]  ;;  %v6894_v3 = vor.u32 %v7690_v40, %v6893_v37  ;;  %v5775_v19 = vld [vmem:[%s8400_s15 + $0x2b8] sm:$0xf0]  ;;  %v3848_v37 = vpop.f32.mrf.mxu3 }
 0x23c   : > { %v7610_v49 = vld [vmem:[%s8400_s15 + $0x8f4] sm:$0xf0]  ;;  %4089 = vmatpush.bf16.msrb.mxu2 %v5586_v35  ;;  %v6703_v29 = vld [vmem:[%s8400_s15 + $0x9f8] sm:$0xf0]  ;;  %v5778_v32 = vor.u32 %v7406_v18, %v5775_v19 }
 0x23d   : > { %v6861_v50 = vld [vmem:[%s8400_s15 + $0xb18] sm:$0xf]  ;;  %v6574_v57 = vor.u32 %v7610_v49, %v6573_v56  ;;  %v7510_v35 = vld [vmem:[%s8400_s15 + $0x5dc] sm:$0xf] }
 0x23e   : > { %4100 = vmatpush.bf16.msrb.mxu3 %v5906_v30  ;;  %v7682_v54 = vld [vmem:[%s8400_s15 + $0xb34] sm:$0xf0]  ;;  %v3836_v30 = vadd.f32 %v3835_v31, %v3823_v14  ;;  %v6191_v40 = vld [vmem:[%s8400_s15 + $0x5f8] sm:$0xf0] }
 0x23f   : > { %4074 = vmatpush.bf16.msrb.mxu1 %v6926_v34  ;;  %4063 = vmatpush.bf16.msrb.mxu0 %v6606_v44  ;;  %v6541_v59 = vld [vmem:[%s8400_s15 + $0x898] sm:$0xf]  ;;  %v6862_v13 = vor.u32 %v7682_v54, %v6861_v50  ;;  %v7502_v50 = vld [vmem:[%s8400_s15 + $0x59c] sm:$0xf]  ;;  %v3824_v54 = vpop.f32.mrf.mxu1  ;;  %v6194_v55 = vor.u32 %v7510_v35, %v6191_v40 }
 0x240   : > { %v7602_v60 = vld [vmem:[%s8400_s15 + $0x8b4] sm:$0xf0]  ;;  %4090 = vmatpush.bf16.msrb.mxu2 %v5554_v22  ;;  %v3849_v44 = vadd.f32 %v3848_v37, %v3836_v30  ;;  %v7622_v4 = vld [vmem:[%s8400_s15 + $0x95c] sm:$0xf] }
 0x241   : > { %v6829_v1 = vld [vmem:[%s8400_s15 + $0xad8] sm:$0xf]  ;;  %v6542_v15 = vor.u32 %v7602_v60, %v6541_v59  ;;  %v6639_v6 = vld [vmem:[%s8400_s15 + $0x978] sm:$0xf0] }
 0x242   : > { %4101 = vmatpush.bf16.msrb.mxu3 %v5874_v48  ;;  %v7674_v63 = vld [vmem:[%s8400_s15 + $0xaf4] sm:$0xf0]  ;;  %v6706_v48 = vor.u32 %v7638_v28, %v6703_v29  ;;  %v6927_v18 = vld [vmem:[%s8400_s15 + $0xbb8] sm:$0xf0] }
 0x243   : > { %4075 = vmatpush.bf16.msrb.mxu1 %v6894_v3  ;;  %4064 = vmatpush.bf16.msrb.mxu0 %v6574_v57  ;;  %v6509_v11 = vld [vmem:[%s8400_s15 + $0x858] sm:$0xf]  ;;  %v6830_v46 = vor.u32 %v7674_v63, %v6829_v1  ;;  %v3837_v3 = vpop.f32.mrf.mxu2  ;;  %v6159_v57 = vld [vmem:[%s8400_s15 + $0x5b8] sm:$0xf0]  ;;  %v6674_v1 = vor.u32 %v7630_v5, %v6671_v20 }
 0x244   : > { %v7594_v53 = vld [vmem:[%s8400_s15 + $0x874] sm:$0xf0]  ;;  %4091 = vmatpush.bf16.msrb.mxu2 %v5522_v62  ;;  %v7574_v62 = vld [vmem:[%s8400_s15 + $0x7dc] sm:$0xf]  ;;  %v6162_v9 = vor.u32 %v7502_v50, %v6159_v57 }
 0x245   : > { %v6797_v17 = vld [vmem:[%s8400_s15 + $0xa98] sm:$0xf]  ;;  %v6510_v27 = vor.u32 %v7594_v53, %v6509_v11  ;;  %v6447_v63 = vld [vmem:[%s8400_s15 + $0x7f8] sm:$0xf0] }
 0x246   : > { %4102 = vmatpush.bf16.msrb.mxu3 %v5842_v58  ;;  %v7666_v36 = vld [vmem:[%s8400_s15 + $0xab4] sm:$0xf0]  ;;  %v7494_v11 = vld [vmem:[%s8400_s15 + $0x55c] sm:$0xf]  ;;  %v6450_v14 = vor.u32 %v7574_v62, %v6447_v63 }
 0x247   : > { %4076 = vmatpush.bf16.msrb.mxu1 %v6862_v13  ;;  %4065 = vmatpush.bf16.msrb.mxu0 %v6542_v15  ;;  %v1231_v25 = vld [vmem:[#allocation2 + $0x10] sm:$0xff]  ;;  %v6798_v38 = vor.u32 %v7666_v36, %v6797_v17  ;;  %v5711_v13 = vld [vmem:[%s8400_s15 + $0x238] sm:$0xf0]  ;;  %v3850_v15 = vpop.f32.mrf.mxu3 }
 0x248   : > { %v6477_v33 = vld [vmem:[%s8400_s15 + $0x818] sm:$0xf]  ;;  %4092 = vmatpush.bf16.msrb.mxu2 %v5490_v16  ;;  %v4167_v52 = vadd.f32 %v3849_v44, %v1231_v25  ;;  %v5714_v31 = vor.u32 %v7390_v61, %v5711_v13  ;;  %v6127_v53 = vld [vmem:[%s8400_s15 + $0x578] sm:$0xf0] }
 0x249   : > { %v7586_v34 = vld [vmem:[%s8400_s15 + $0x834] sm:$0xf0]  ;;  %v7566_v16 = vld [vmem:[%s8400_s15 + $0x79c] sm:$0xf]  ;;  %v6130_v36 = vor.u32 %v7494_v11, %v6127_v53 }
 0x24a   : > { %4103 = vmatpush.bf16.msrb.mxu3 %v5810_v10  ;;  %v6765_v56 = vld [vmem:[%s8400_s15 + $0xa58] sm:$0xf]  ;;  %v6478_v22 = vor.u32 %v7586_v34, %v6477_v33  ;;  %4175 = vst [vmem:[#allocation2 + $0x10] sm:$0xff] %v4167_v52  ;;  %v6962_v10 = vor.u32 %v7702_v7, %v6959_v2  ;;  %v7694_v17 = vld [vmem:[%s8400_s15 + $0xb9c] sm:$0xf] }
 0x24b   : > { %4077 = vmatpush.bf16.msrb.mxu1 %v6830_v46  ;;  %v7658_v49 = vld [vmem:[%s8400_s15 + $0xa74] sm:$0xf0]  ;;  %4066 = vmatpush.bf16.msrb.mxu0 %v6510_v27  ;;  %v6642_v46 = vor.u32 %v7622_v4, %v6639_v6  ;;  %v6415_v19 = vld [vmem:[%s8400_s15 + $0x7b8] sm:$0xf0]  ;;  %v6930_v23 = vor.u32 %v7694_v17, %v6927_v18  ;;  %v3887_v13 = vpop.f32.mrf.mxu2 }
 0x24c   : > { %v6733_v58 = vld [vmem:[%s8400_s15 + $0xa18] sm:$0xf]  ;;  %4093 = vmatpush.bf16.msrb.mxu2 %v5458_v39  ;;  %v6766_v60 = vor.u32 %v7658_v49, %v6765_v56  ;;  %v7614_v21 = vld [vmem:[%s8400_s15 + $0x91c] sm:$0xf]  ;;  %v6418_v27 = vor.u32 %v7566_v16, %v6415_v19  ;;  %v9469_v56 = vpop.f32.mrf.mxu0 }
 0x24d   : > { %v7650_v59 = vld [vmem:[%s8400_s15 + $0xa34] sm:$0xf0]  ;;  %v7486_v24 = vld [vmem:[%s8400_s15 + $0x51c] sm:$0xf] }
 0x24e   : > { %4104 = vmatpush.bf16.msrb.mxu3 %v5778_v32  ;;  %v6734_v45 = vor.u32 %v7650_v59, %v6733_v58  ;;  %v6095_v25 = vld [vmem:[%s8400_s15 + $0x538] sm:$0xf0] }
 0x24f   : > { %4078 = vmatpush.bf16.msrb.mxu1 %v6798_v38  ;;  %4067 = vmatpush.bf16.msrb.mxu0 %v6478_v22  ;;  %v7558_v29 = vld [vmem:[%s8400_s15 + $0x75c] sm:$0xf]  ;;  %v6098_v37 = vor.u32 %v7486_v24, %v6095_v25 }
 0x250   : > { %4138 = vmatpush.bf16.msra.mxu2 %v6706_v48  ;;  %v7686_v30 = vld [vmem:[%s8400_s15 + $0xb5c] sm:$0xf] }
 0x251   : > { %4094 = vmatmul.bf16.vlgmr.msrb.gmra.mxu2 %v8750_v42  ;;  %v6607_v42 = vld [vmem:[%s8400_s15 + $0x938] sm:$0xf0] }
 0x252   : > { %4105 = vmatpush.bf16.msrb.mxu3 %v5746_v47  ;;  %4068 = vmatmul.bf16.vlgmr.msrb.gmra.mxu0 %v8843_v8  ;;  %v6610_v28 = vor.u32 %v7614_v21, %v6607_v42  ;;  %v6895_v32 = vld [vmem:[%s8400_s15 + $0xb78] sm:$0xf0] }
 0x253   : > { %4112 = vmatpush.bf16.msra.mxu0 %v6194_v55  ;;  %4079 = vmatpush.bf16.msrb.mxu1 %v6766_v60  ;;  %v6383_v33 = vld [vmem:[%s8400_s15 + $0x778] sm:$0xf0]  ;;  %v6898_v38 = vor.u32 %v7686_v30, %v6895_v32  ;;  %v3889_v25 = vpop.f32.mrf.mxu2 }
 0x254   : > { %4139 = vmatpush.bf16.msra.mxu2 %v6674_v1  ;;  %v7606_v34 = vld [vmem:[%s8400_s15 + $0x8dc] sm:$0xf]  ;;  %v3874_v1 = vpop.f32.mrf.mxu1  ;;  %v3900_v18 = vpop.f32.mrf.mxu3 }
 0x255   : > { %v6575_v35 = vld [vmem:[%s8400_s15 + $0x8f8] sm:$0xf0] }
 0x256   : > { %4106 = vmatpush.bf16.msrb.mxu3 %v5714_v31  ;;  %v7478_v39 = vld [vmem:[%s8400_s15 + $0x4dc] sm:$0xf]  ;;  %v6578_v41 = vor.u32 %v7606_v34, %v6575_v35 }
 0x257   : > { %4113 = vmatpush.bf16.msra.mxu0 %v6162_v9  ;;  %4080 = vmatpush.bf16.msrb.mxu1 %v6734_v45  ;;  %v6063_v40 = vld [vmem:[%s8400_s15 + $0x4f8] sm:$0xf0]  ;;  %v3863_v45 = vpop.f32.mrf.mxu0 }
 0x258   : > { %4140 = vmatpush.bf16.msra.mxu2 %v6642_v46  ;;  %v7550_v43 = vld [vmem:[%s8400_s15 + $0x71c] sm:$0xf]  ;;  %v6066_v50 = vor.u32 %v7478_v39, %v6063_v40  ;;  %v3875_v40 = vadd.f32 %v3874_v1, %v9469_v56 }
 0x259   : > { %4107 = vmatmul.bf16.vlgmr.msrb.gmra.mxu3 %v8763_v0  ;;  %v6386_v0 = vor.u32 %v7558_v29, %v6383_v33  ;;  %v7678_v44 = vld [vmem:[%s8400_s15 + $0xb1c] sm:$0xf] }
 0x25a   : > { %4151 = vmatpush.bf16.msra.mxu3 %v6962_v10  ;;  %4081 = vmatmul.bf16.vlgmr.msrb.gmra.mxu1 %v8858_v26  ;;  %v6863_v48 = vld [vmem:[%s8400_s15 + $0xb38] sm:$0xf0] }
 0x25b   : > { %4125 = vmatpush.bf16.msra.mxu1 %v6450_v14  ;;  %4114 = vmatpush.bf16.msra.mxu0 %v6130_v36  ;;  %v6351_v49 = vld [vmem:[%s8400_s15 + $0x738] sm:$0xf0]  ;;  %v6866_v5 = vor.u32 %v7678_v44, %v6863_v48 }
 0x25c   : > { %4141 = vmatpush.bf16.msra.mxu2 %v6610_v28  ;;  %v7598_v3 = vld [vmem:[%s8400_s15 + $0x89c] sm:$0xf]  ;;  %v6354_v54 = vor.u32 %v7550_v43, %v6351_v49  ;;  %v3876_v28 = vpop.f32.mrf.mxu1 }
 0x25d   : > { %v6543_v22 = vld [vmem:[%s8400_s15 + $0x8b8] sm:$0xf0] }
 0x25e   : > { %4152 = vmatpush.bf16.msra.mxu3 %v6930_v23  ;;  %v7470_v20 = vld [vmem:[%s8400_s15 + $0x49c] sm:$0xf]  ;;  %v6546_v55 = vor.u32 %v7598_v3, %v6543_v22 }
 0x25f   : > { %4126 = vmatpush.bf16.msra.mxu1 %v6418_v27  ;;  %4115 = vmatpush.bf16.msra.mxu0 %v6098_v37  ;;  %v6031_v52 = vld [vmem:[%s8400_s15 + $0x4b8] sm:$0xf0] }
 0x260   : > { %4142 = vmatpush.bf16.msra.mxu2 %v6578_v41  ;;  %v7542_v47 = vld [vmem:[%s8400_s15 + $0x6dc] sm:$0xf]  ;;  %v6034_v62 = vor.u32 %v7470_v20, %v6031_v52  ;;  %v3888_v41 = vadd.f32 %v3887_v13, %v3875_v40 }
 0x261   : > { %v7670_v57 = vld [vmem:[%s8400_s15 + $0xadc] sm:$0xf] }
 0x262   : > { %4153 = vmatpush.bf16.msra.mxu3 %v6898_v38  ;;  %v6831_v58 = vld [vmem:[%s8400_s15 + $0xaf8] sm:$0xf0]  ;;  %v3902_v38 = vpop.f32.mrf.mxu3  ;;  %v3901_v43 = vadd.f32 %v3900_v18, %v3888_v41 }
 0x263   : > { %4127 = vmatpush.bf16.msra.mxu1 %v6386_v0  ;;  %v6319_v59 = vld [vmem:[%s8400_s15 + $0x6f8] sm:$0xf0]  ;;  %4116 = vmatpush.bf16.msra.mxu0 %v6066_v50  ;;  %v6834_v7 = vor.u32 %v7670_v57, %v6831_v58 }
 0x264   : > { %v7590_v60 = vld [vmem:[%s8400_s15 + $0x85c] sm:$0xf]  ;;  %4143 = vmatpush.bf16.msra.mxu2 %v6546_v55  ;;  %v6322_v4 = vor.u32 %v7542_v47, %v6319_v59  ;;  %v1233_v59 = vld [vmem:[#allocation2 + $0x20] sm:$0xff] }
 0x265   : > { %v6511_v61 = vld [vmem:[%s8400_s15 + $0x878] sm:$0xf0] }
 0x266   : > { %4154 = vmatpush.bf16.msra.mxu3 %v6866_v5  ;;  %v7462_v2 = vld [vmem:[%s8400_s15 + $0x45c] sm:$0xf]  ;;  %v6514_v6 = vor.u32 %v7590_v60, %v6511_v61  ;;  %v3913_v0 = vpop.f32.mrf.mxu0 }
 0x267   : > { %v5999_v63 = vld [vmem:[%s8400_s15 + $0x478] sm:$0xf0]  ;;  %4128 = vmatpush.bf16.msra.mxu1 %v6354_v54  ;;  %4117 = vmatpush.bf16.msra.mxu0 %v6034_v62  ;;  %v3914_v44 = vadd.f32 %v3913_v0, %v3901_v43 }
 0x268   : > { %v7534_v9 = vld [vmem:[%s8400_s15 + $0x69c] sm:$0xf]  ;;  %v6002_v14 = vor.u32 %v7462_v2, %v5999_v63  ;;  %4144 = vmatpush.bf16.msra.mxu2 %v6514_v6 }
 0x269   : > { %v7662_v31 = vld [vmem:[%s8400_s15 + $0xa9c] sm:$0xf]  ;;  %v3939_v48 = vpop.f32.mrf.mxu2 }
 0x26a   : > { %v6799_v15 = vld [vmem:[%s8400_s15 + $0xab8] sm:$0xf0]  ;;  %4155 = vmatpush.bf16.msra.mxu3 %v6834_v7 }
 0x26b   : > { %v6287_v10 = vld [vmem:[%s8400_s15 + $0x6b8] sm:$0xf0]  ;;  %v6802_v46 = vor.u32 %v7662_v31, %v6799_v15  ;;  %4129 = vmatpush.bf16.msra.mxu1 %v6322_v4  ;;  %4118 = vmatpush.bf16.msra.mxu0 %v6002_v14  ;;  %v3926_v49 = vpop.f32.mrf.mxu1 }
 0x26c   : > { %v7582_v11 = vld [vmem:[%s8400_s15 + $0x81c] sm:$0xf]  ;;  %v6290_v19 = vor.u32 %v7534_v9, %v6287_v10  ;;  %v3927_v3 = vadd.f32 %v3926_v49, %v3914_v44 }
 0x26d   : > { %v6479_v53 = vld [vmem:[%s8400_s15 + $0x838] sm:$0xf0] }
 0x26e   : > { %v7454_v16 = vld [vmem:[%s8400_s15 + $0x41c] sm:$0xf]  ;;  %v6482_v21 = vor.u32 %v7582_v11, %v6479_v53  ;;  %4156 = vmatpush.bf16.msra.mxu3 %v6802_v46  ;;  %v3915_v22 = vpop.f32.mrf.mxu0 }
 0x26f   : > { %v5967_v17 = vld [vmem:[%s8400_s15 + $0x438] sm:$0xf0]  ;;  %4130 = vmatpush.bf16.msra.mxu1 %v6290_v19 }
 0x270   : > { %v7654_v42 = vld [vmem:[%s8400_s15 + $0xa5c] sm:$0xf]  ;;  %v5970_v27 = vor.u32 %v7454_v16, %v5967_v17  ;;  %4145 = vmatpush.bf16.msra.mxu2 %v6482_v21  ;;  %v1234_v17 = vld [vmem:[#allocation2 + $0x28] sm:$0xff] }
 0x271   : > { %v6767_v36 = vld [vmem:[%s8400_s15 + $0xa78] sm:$0xf0]  ;;  %v3941_v5 = vpop.f32.mrf.mxu2 }
 0x272   : > { %v7526_v23 = vld [vmem:[%s8400_s15 + $0x65c] sm:$0xf]  ;;  %v6770_v29 = vor.u32 %v7654_v42, %v6767_v36  ;;  %4119 = vmatpush.bf16.msra.mxu0 %v5970_v27 }
 0x273   : > { %v6255_v24 = vld [vmem:[%s8400_s15 + $0x678] sm:$0xf0]  ;;  %4146 = vmatmul.bf16.vlgmr.msra.gmra.mxu2 %v8843_v8  ;;  %v1232_v8 = vld [vmem:[#allocation2 + $0x8] sm:$0xff]  ;;  %v3928_v20 = vpop.f32.mrf.mxu1 }
 0x274   : > { %v6258_v30 = vor.u32 %v7526_v23, %v6255_v24  ;;  %v7646_v32 = vld [vmem:[%s8400_s15 + $0xa1c] sm:$0xf]  ;;  %4157 = vmatpush.bf16.msra.mxu3 %v6770_v29  ;;  %v4168_v50 = vadd.f32 %v3927_v3, %v1232_v8 }
 0x275   : > { %v6735_v33 = vld [vmem:[%s8400_s15 + $0xa38] sm:$0xf0]  ;;  %4120 = vmatmul.bf16.vlgmr.msra.gmra.mxu0 %v8795_v51  ;;  %v3952_v51 = vpop.f32.mrf.mxu3 }
 0x276   : > { %v7518_v34 = vld [vmem:[%s8400_s15 + $0x61c] sm:$0xf]  ;;  %v6738_v37 = vor.u32 %v7646_v32, %v6735_v33  ;;  %4131 = vmatpush.bf16.msra.mxu1 %v6258_v30  ;;  %4176 = vst [vmem:[#allocation2 + $0x8] sm:$0xff] %v4168_v50  ;;  %v3953_v54 = vadd.f32 %v3952_v51, %v3939_v48 }
 0x277   : > { %v6223_v35 = vld [vmem:[%s8400_s15 + $0x638] sm:$0xf0] }
 0x278   : > { %v6226_v39 = vor.u32 %v7518_v34, %v6223_v35  ;;  %4158 = vmatpush.bf16.msra.mxu3 %v6738_v37  ;;  %v1235_v37 = vld [vmem:[#allocation2 + $0x38] sm:$0xff] }
 0x27a   : > { %4132 = vmatpush.bf16.msra.mxu1 %v6226_v39 }
 0x27b   : > { %4159 = vmatmul.bf16.vlgmr.msra.gmra.mxu3 %v8858_v26 }
 0x27d   : > { %4133 = vmatmul.bf16.vlgmr.msra.gmra.mxu1 %v8807_v12  ;;  %v3954_v52 = vpop.f32.mrf.mxu3 }
 0x28e   : > { %v3965_v26 = vpop.f32.mrf.mxu0 }
 0x28f   : > { %v3966_v56 = vadd.f32 %v3965_v26, %v3953_v54 }
 0x292   : > { %v3991_v55 = vpop.f32.mrf.mxu2 }
 0x296   : > { %v3967_v57 = vpop.f32.mrf.mxu0 }
 0x297   : > { %v3978_v12 = vpop.f32.mrf.mxu1 }
 0x298   : > { %v3979_v47 = vadd.f32 %v3978_v12, %v3966_v56 }
 0x29a   : > { %v3992_v58 = vadd.f32 %v3991_v55, %v3979_v47  ;;  %v3993_v13 = vpop.f32.mrf.mxu2 }
 0x29c   : > { %v4004_v60 = vpop.f32.mrf.mxu3 }
 0x29d   : > { %v4005_v61 = vadd.f32 %v4004_v60, %v3992_v58 }
 0x29f   : > { %v4169_v62 = vadd.f32 %v4005_v61, %v1233_v59  ;;  %v3980_v1 = vpop.f32.mrf.mxu1 }
 0x2a1   : > { %4177 = vst [vmem:[#allocation2 + $0x20] sm:$0xff] %v4169_v62 }
 0x2a4   : > { %v4006_v7 = vpop.f32.mrf.mxu3 }
 0x2af   : > { %v4017_v2 = vpop.f32.mrf.mxu0 }
 0x2b4   : > { %v4043_v63 = vpop.f32.mrf.mxu2 }
 0x2b7   : > { %v4030_v4 = vpop.f32.mrf.mxu1  ;;  %v4019_v6 = vpop.f32.mrf.mxu0 }
 0x2b8   : > { %v4031_v10 = vadd.f32 %v4030_v4, %v4017_v2 }
 0x2ba   : > { %v4044_v53 = vadd.f32 %v4043_v63, %v4031_v10 }
 0x2bc   : > { %v4056_v9 = vpop.f32.mrf.mxu3  ;;  %v4045_v31 = vpop.f32.mrf.mxu2 }
 0x2bd   : > { %v4057_v14 = vadd.f32 %v4056_v9, %v4044_v53 }
 0x2bf   : > { %v4032_v15 = vpop.f32.mrf.mxu1 }
 0x2c4   : > { %v4058_v45 = vpop.f32.mrf.mxu3 }
 0x2cf   : > { %v4069_v11 = vpop.f32.mrf.mxu0 }
 0x2d0   : > { %v4070_v46 = vadd.f32 %v4069_v11, %v4057_v14 }
 0x2d4   : > { %v4095_v16 = vpop.f32.mrf.mxu2 }
 0x2d7   : > { %v4082_v18 = vpop.f32.mrf.mxu1  ;;  %v4071_v21 = vpop.f32.mrf.mxu0 }
 0x2d8   : > { %v4083_v19 = vadd.f32 %v4082_v18, %v4070_v46 }
 0x2da   : > { %v4170_v42 = vadd.f32 %v4083_v19, %v1234_v17 }
 0x2dc   : > { %4178 = vst [vmem:[#allocation2 + $0x28] sm:$0xff] %v4170_v42  ;;  %v4108_v36 = vpop.f32.mrf.mxu3  ;;  %v4097_v23 = vpop.f32.mrf.mxu2 }
 0x2dd   : > { %v4109_v28 = vadd.f32 %v4108_v36, %v4095_v16 }
 0x2df   : > { %v4084_v24 = vpop.f32.mrf.mxu1 }
 0x2e4   : > { %v4110_v25 = vpop.f32.mrf.mxu3 }
 0x2f2   : > { %v4121_v27 = vpop.f32.mrf.mxu0 }
 0x2f3   : > { %v4122_v30 = vadd.f32 %v4121_v27, %v4109_v28 }
 0x2f6   : > { %v4147_v29 = vpop.f32.mrf.mxu2 }
 0x2fa   : > { %v4134_v32 = vpop.f32.mrf.mxu1  ;;  %v4123_v34 = vpop.f32.mrf.mxu0 }
 0x2fb   : > { %v4135_v33 = vadd.f32 %v4134_v32, %v4122_v30 }
 0x2fd   : > { %v4148_v35 = vadd.f32 %v4147_v29, %v4135_v33 }
 0x2fe   : > { %v4160_v38 = vpop.f32.mrf.mxu3  ;;  %v4149_v40 = vpop.f32.mrf.mxu2 }
 0x2ff   : > { %v4161_v39 = vadd.f32 %v4160_v38, %v4148_v35 }
 0x301   : > { %v4171_v0 = vadd.f32 %v4161_v39, %v1235_v37 }
 0x302   : > { %v4136_v41 = vpop.f32.mrf.mxu1  ;;  %4183 = sbr.rel (%p6963_p1) target bundleno = 1118 (0x45e), region = 84 }
 0x303   : > { %4179 = vst [vmem:[#allocation2 + $0x38] sm:$0xff] %v4171_v0 }
 0x306   : > { %v4162_v43 = vpop.f32.mrf.mxu3 }
 0x307   : > { %v7714_v44 = vld [vmem:[#allocation12 + $0x38] sm:$0xff]  ;;  %v7713_v3 = vld [vmem:[#allocation12 + $0x30] sm:$0xff]  ;;  %v7712_v5 = vld [vmem:[#allocation12 + $0x28] sm:$0xff] }
 0x308   : > { %v7722_v48 = vld [vmem:[#allocation12 + $0x78] sm:$0xff]  ;;  %4750 = vmatpush.bf16.msra.mxu0 %v7714_v44  ;;  %v7721_v22 = vld [vmem:[#allocation12 + $0x70] sm:$0xff]  ;;  %v7720_v20 = vld [vmem:[#allocation12 + $0x68] sm:$0xff] }
 0x309   : > { %v7730_v8 = vld [vmem:[#allocation12 + $0xb8] sm:$0xff]  ;;  %4763 = vmatpush.bf16.msra.mxu1 %v7722_v48  ;;  %v7729_v50 = vld [vmem:[#allocation12 + $0xb0] sm:$0xff]  ;;  %v7728_v52 = vld [vmem:[#allocation12 + $0xa8] sm:$0xff] }
 0x30a   : > { %v7738_v49 = vld [vmem:[#allocation12 + $0xf8] sm:$0xff]  ;;  %4776 = vmatpush.bf16.msra.mxu2 %v7730_v8  ;;  %v7737_v51 = vld [vmem:[#allocation12 + $0xf0] sm:$0xff]  ;;  %v7736_v26 = vld [vmem:[#allocation12 + $0xe8] sm:$0xff] }
 0x30b   : > { %4789 = vmatpush.bf16.msra.mxu3 %v7738_v49  ;;  %v7711_v54 = vld [vmem:[#allocation12 + $0x20] sm:$0xff]  ;;  %v7710_v47 = vld [vmem:[#allocation12 + $0x18] sm:$0xff]  ;;  %v7709_v61 = vld [vmem:[#allocation12 + $0x10] sm:$0xff] }
 0x30c   : > { %4751 = vmatpush.bf16.msra.mxu0 %v7713_v3  ;;  %v7719_v56 = vld [vmem:[#allocation12 + $0x60] sm:$0xff]  ;;  %v7718_v57 = vld [vmem:[#allocation12 + $0x58] sm:$0xff]  ;;  %v7717_v13 = vld [vmem:[#allocation12 + $0x50] sm:$0xff] }
 0x30d   : > { %4764 = vmatpush.bf16.msra.mxu1 %v7721_v22  ;;  %v7727_v55 = vld [vmem:[#allocation12 + $0xa0] sm:$0xff]  ;;  %v7726_v58 = vld [vmem:[#allocation12 + $0x98] sm:$0xff]  ;;  %v7725_v62 = vld [vmem:[#allocation12 + $0x90] sm:$0xff] }
 0x30e   : > { %4777 = vmatpush.bf16.msra.mxu2 %v7729_v50  ;;  %v7735_v12 = vld [vmem:[#allocation12 + $0xe0] sm:$0xff]  ;;  %v7734_v59 = vld [vmem:[#allocation12 + $0xd8] sm:$0xff]  ;;  %v7733_v2 = vld [vmem:[#allocation12 + $0xd0] sm:$0xff] }
 0x30f   : > { %4790 = vmatpush.bf16.msra.mxu3 %v7737_v51  ;;  %v9506_v60 = vld [vmem:[#allocation11] sm:$0xff]  ;;  %v4184_v4 = vld [vmem:[#allocation2 + $0x30] sm:$0xff]  ;;  %v7707_v18 = vld [vmem:[#allocation12] sm:$0xff] }
 0x310   : > { %4752 = vmatpush.bf16.msra.mxu0 %v7712_v5  ;;  %v4196_v1 = vperm.slane %v9506_v60, 2  ;;  %v4194_v7 = vperm.slane %v9506_v60, 0  ;;  %v4186_v63 = vld [vmem:[#allocation2 + $0x18] sm:$0xff]  ;;  %v4197_v6 = vperm.slane %v9506_v60, 3  ;;  %v4195_v9 = vperm.slane %v9506_v60, 1  ;;  %v4187_v31 = vld [vmem:[#allocation2 + $0x10] sm:$0xff] }
 0x311   : > { %4765 = vmatpush.bf16.msra.mxu1 %v7720_v20  ;;  %v4185_v15 = vld [vmem:[#allocation2] sm:$0xff]  ;;  %v7708_v45 = vld [vmem:[#allocation12 + $0x8] sm:$0xff]  ;;  %v7745_v37 = vld [vmem:[#allocation12 + $0x130] sm:$0xff] }
 0x312   : > { %4778 = vmatpush.bf16.msra.mxu2 %v7728_v52  ;;  %v7716_v10 = vld [vmem:[#allocation12 + $0x48] sm:$0xff]  ;;  %v4212_v11 = vadd.f32 %v4196_v1, %v4186_v63  ;;  %v4210_v53 = vadd.f32 %v4194_v7, %v4184_v4  ;;  %v4213_v16 = vadd.f32 %v4197_v6, %v4187_v31  ;;  %v4211_v17 = vadd.f32 %v4195_v9, %v4185_v15  ;;  %v7715_v19 = vld [vmem:[#allocation12 + $0x40] sm:$0xff]  ;;  %v7746_v27 = vld [vmem:[#allocation12 + $0x138] sm:$0xff] }
 0x313   : > { %4791 = vmatpush.bf16.msra.mxu3 %v7736_v26  ;;  %v7724_v14 = vld [vmem:[#allocation12 + $0x88] sm:$0xff]  ;;  %v7723_v36 = vld [vmem:[#allocation12 + $0x80] sm:$0xff]  ;;  %v7754_v28 = vld [vmem:[#allocation12 + $0x178] sm:$0xff]  ;;  %v4198_v26 = vperm.slane %v9506_v60, 4 }
 0x314   : > { %4753 = vmatpush.bf16.msra.mxu0 %v7711_v54  ;;  %v7732_v46 = vld [vmem:[#allocation12 + $0xc8] sm:$0xff]  ;;  %v4220_v21 = vmax.f32 %v4212_v11, 0.0  ;;  %v4218_v42 = vmax.f32 %v4210_v53, 0.0  ;;  %v7731_v23 = vld [vmem:[#allocation12 + $0xc0] sm:$0xff]  ;;  %v4221_v24 = vmax.f32 %v4213_v16, 0.0  ;;  %v4219_v25 = vmax.f32 %v4211_v17, 0.0 }
 0x315   : > { %4766 = vmatpush.bf16.msra.mxu1 %v7719_v56  ;;  %v7762_v29 = vld [vmem:[#allocation12 + $0x1b8] sm:$0xff]  ;;  %v7753_v38 = vld [vmem:[#allocation12 + $0x170] sm:$0xff]  ;;  %v7744_v0 = vld [vmem:[#allocation12 + $0x128] sm:$0xff]  ;;  %v4199_v54 = vperm.slane %v9506_v60, 5 }
 0x316   : > { %4779 = vmatpush.bf16.msra.mxu2 %v7727_v55  ;;  %v7770_v30 = vld [vmem:[#allocation12 + $0x1f8] sm:$0xff]  ;;  %v4228_v32 = vpack.c.bf16 %v4220_v21, %v4220_v21  ;;  %v4226_v33 = vpack.c.bf16 %v4218_v42, %v4218_v42  ;;  %v4229_v34 = vpack.c.bf16 %v4221_v24, %v4221_v24  ;;  %v4227_v35 = vpack.c.bf16 %v4219_v25, %v4219_v25  ;;  %v7761_v39 = vld [vmem:[#allocation12 + $0x1b0] sm:$0xff]  ;;  %v7752_v41 = vld [vmem:[#allocation12 + $0x168] sm:$0xff] }
 0x317   : > { %4792 = vmatpush.bf16.msra.mxu3 %v7735_v12  ;;  %v7769_v40 = vld [vmem:[#allocation12 + $0x1f0] sm:$0xff]  ;;  %v7760_v43 = vld [vmem:[#allocation12 + $0x1a8] sm:$0xff]  ;;  %v7743_v48 = vld [vmem:[#allocation12 + $0x120] sm:$0xff] }
 0x318   : > { %4754 = vmatpush.bf16.msra.mxu0 %v7710_v47  ;;  %v7768_v44 = vld [vmem:[#allocation12 + $0x1e8] sm:$0xff]  ;;  %v7751_v8 = vld [vmem:[#allocation12 + $0x160] sm:$0xff]  ;;  %v7742_v22 = vld [vmem:[#allocation12 + $0x118] sm:$0xff]  ;;  %v4200_v47 = vperm.slane %v9506_v60, 6 }
 0x319   : > { %4767 = vmatpush.bf16.msra.mxu1 %v7718_v57  ;;  %v7759_v49 = vld [vmem:[#allocation12 + $0x1a0] sm:$0xff]  ;;  %v7750_v50 = vld [vmem:[#allocation12 + $0x158] sm:$0xff]  ;;  %v7741_v20 = vld [vmem:[#allocation12 + $0x110] sm:$0xff]  ;;  %v4201_v57 = vperm.slane %v9506_v60, 7 }
 0x31a   : > { %4780 = vmatpush.bf16.msra.mxu2 %v7726_v58  ;;  %v7767_v3 = vld [vmem:[#allocation12 + $0x1e0] sm:$0xff]  ;;  %v7758_v51 = vld [vmem:[#allocation12 + $0x198] sm:$0xff]  ;;  %v7749_v52 = vld [vmem:[#allocation12 + $0x150] sm:$0xff] }
 0x31b   : > { %4793 = vmatpush.bf16.msra.mxu3 %v7734_v59  ;;  %v7766_v5 = vld [vmem:[#allocation12 + $0x1d8] sm:$0xff]  ;;  %v7757_v56 = vld [vmem:[#allocation12 + $0x190] sm:$0xff]  ;;  %v4188_v55 = vld [vmem:[#allocation2 + $0x8] sm:$0xff] }
 0x31c   : > { %4755 = vmatpush.bf16.msra.mxu0 %v7709_v61  ;;  %v4189_v12 = vld [vmem:[#allocation2 + $0x20] sm:$0xff]  ;;  %v7765_v58 = vld [vmem:[#allocation12 + $0x1d0] sm:$0xff]  ;;  %v4190_v59 = vld [vmem:[#allocation2 + $0x28] sm:$0xff] }
 0x31d   : > { %4768 = vmatpush.bf16.msra.mxu1 %v7717_v13  ;;  %v4191_v61 = vld [vmem:[#allocation2 + $0x38] sm:$0xff]  ;;  %v4214_v13 = vadd.f32 %v4198_v26, %v4188_v55  ;;  %v7740_v1 = vld [vmem:[#allocation12 + $0x108] sm:$0xff]  ;;  %v7739_v60 = vld [vmem:[#allocation12 + $0x100] sm:$0xff] }
 0x31e   : > { %4781 = vmatpush.bf16.msra.mxu2 %v7725_v62  ;;  %v4215_v62 = vadd.f32 %v4199_v54, %v4189_v12  ;;  %v7748_v7 = vld [vmem:[#allocation12 + $0x148] sm:$0xff]  ;;  %v4217_v63 = vadd.f32 %v4201_v57, %v4191_v61  ;;  %v7747_v15 = vld [vmem:[#allocation12 + $0x140] sm:$0xff] }
 0x31f   : > { %4794 = vmatpush.bf16.msra.mxu3 %v7733_v2  ;;  %v4216_v2 = vadd.f32 %v4200_v47, %v4190_v59  ;;  %v7756_v4 = vld [vmem:[#allocation12 + $0x188] sm:$0xff]  ;;  %v4222_v9 = vmax.f32 %v4214_v13, 0.0  ;;  %v7755_v11 = vld [vmem:[#allocation12 + $0x180] sm:$0xff] }
 0x320   : > { %4756 = vmatpush.bf16.msra.mxu0 %v7708_v45  ;;  %v7764_v6 = vld [vmem:[#allocation12 + $0x1c8] sm:$0xff]  ;;  %v4223_v31 = vmax.f32 %v4215_v62, 0.0  ;;  %v7763_v53 = vld [vmem:[#allocation12 + $0x1c0] sm:$0xff] }
 0x321   : > { %4769 = vmatpush.bf16.msra.mxu1 %v7716_v10  ;;  %v4224_v45 = vmax.f32 %v4216_v2, 0.0  ;;  %v4225_v10 = vmax.f32 %v4217_v63, 0.0  ;;  %v7899_v24 = vld [vmem:[#allocation14] ss:$0 sm:$0xff] }
 0x322   : > { %4782 = vmatpush.bf16.msra.mxu2 %v7724_v14  ;;  %v4230_v14 = vpack.c.bf16 %v4222_v9, %v4222_v9 }
 0x323   : > { %4795 = vmatpush.bf16.msra.mxu3 %v7732_v46  ;;  %v4231_v46 = vpack.c.bf16 %v4223_v31, %v4223_v31  ;;  %v4232_v16 = vpack.c.bf16 %v4224_v45, %v4224_v45  ;;  %v4233_v17 = vpack.c.bf16 %v4225_v10, %v4225_v10 }
 0x324   : > { %4757 = vmatpush.bf16.msra.mxu0 %v7707_v18 }
 0x325   : > { %4770 = vmatpush.bf16.msra.mxu1 %v7715_v19 }
 0x326   : > { %4783 = vmatpush.bf16.msra.mxu2 %v7723_v36 }
 0x327   : > { %4796 = vmatpush.bf16.msra.mxu3 %v7731_v23  ;;  %4758 = vmatmul.bf16.vlgmr.msra.gmra.mxu0 %v4226_v33 }
 0x328   : > { %4802 = vmatpush.bf16.msrb.mxu0 %v7746_v27  ;;  %4771 = vmatmul.bf16.vlgmr.msra.gmra.mxu1 %v4227_v35 }
 0x329   : > { %4815 = vmatpush.bf16.msrb.mxu1 %v7754_v28  ;;  %4784 = vmatmul.bf16.vlgmr.msra.gmra.mxu2 %v4228_v32 }
 0x32a   : > { %4828 = vmatpush.bf16.msrb.mxu2 %v7762_v29  ;;  %4797 = vmatmul.bf16.vlgmr.msra.gmra.mxu3 %v4229_v34 }
 0x32b   : > { %4841 = vmatpush.bf16.msrb.mxu3 %v7770_v30 }
 0x32c   : > { %4803 = vmatpush.bf16.msrb.mxu0 %v7745_v37 }
 0x32d   : > { %4816 = vmatpush.bf16.msrb.mxu1 %v7753_v38 }
 0x32e   : > { %4829 = vmatpush.bf16.msrb.mxu2 %v7761_v39 }
 0x32f   : > { %4842 = vmatpush.bf16.msrb.mxu3 %v7769_v40 }
 0x330   : > { %4804 = vmatpush.bf16.msrb.mxu0 %v7744_v0 }
 0x331   : > { %4817 = vmatpush.bf16.msrb.mxu1 %v7752_v41 }
 0x332   : > { %4830 = vmatpush.bf16.msrb.mxu2 %v7760_v43 }
 0x333   : > { %4843 = vmatpush.bf16.msrb.mxu3 %v7768_v44 }
 0x334   : > { %4805 = vmatpush.bf16.msrb.mxu0 %v7743_v48 }
 0x335   : > { %4818 = vmatpush.bf16.msrb.mxu1 %v7751_v8 }
 0x336   : > { %4831 = vmatpush.bf16.msrb.mxu2 %v7759_v49 }
 0x337   : > { %4844 = vmatpush.bf16.msrb.mxu3 %v7767_v3 }
 0x338   : > { %4806 = vmatpush.bf16.msrb.mxu0 %v7742_v22 }
 0x339   : > { %4819 = vmatpush.bf16.msrb.mxu1 %v7750_v50 }
 0x33a   : > { %4832 = vmatpush.bf16.msrb.mxu2 %v7758_v51 }
 0x33b   : > { %4845 = vmatpush.bf16.msrb.mxu3 %v7766_v5 }
 0x33c   : > { %4807 = vmatpush.bf16.msrb.mxu0 %v7741_v20 }
 0x33d   : > { %4820 = vmatpush.bf16.msrb.mxu1 %v7749_v52 }
 0x33e   : > { %4833 = vmatpush.bf16.msrb.mxu2 %v7757_v56 }
 0x33f   : > { %4846 = vmatpush.bf16.msrb.mxu3 %v7765_v58 }
 0x340   : > { %4808 = vmatpush.bf16.msrb.mxu0 %v7740_v1 }
 0x341   : > { %4821 = vmatpush.bf16.msrb.mxu1 %v7748_v7 }
 0x342   : > { %4834 = vmatpush.bf16.msrb.mxu2 %v7756_v4 }
 0x343   : > { %4847 = vmatpush.bf16.msrb.mxu3 %v7764_v6 }
 0x344   : > { %4809 = vmatpush.bf16.msrb.mxu0 %v7739_v60 }
 0x345   : > { %4822 = vmatpush.bf16.msrb.mxu1 %v7747_v15 }
 0x346   : > { %4835 = vmatpush.bf16.msrb.mxu2 %v7755_v11 }
 0x347   : > { %4848 = vmatpush.bf16.msrb.mxu3 %v7763_v53  ;;  %4810 = vmatmul.bf16.vlgmr.msrb.gmra.mxu0 %v4230_v14 }
 0x348   : > { %4823 = vmatmul.bf16.vlgmr.msrb.gmra.mxu1 %v4231_v46 }
 0x349   : > { %4836 = vmatmul.bf16.vlgmr.msrb.gmra.mxu2 %v4232_v16 }
 0x34a   : > { %4849 = vmatmul.bf16.vlgmr.msrb.gmra.mxu3 %v4233_v17 }
 0x3a4   : > { %v4759_v18 = vpop.f32.mrf.mxu0 }
 0x3a5   : > { %v4772_v19 = vpop.f32.mrf.mxu1  ;;  %v4760_v28 = vadd.f32 %v7899_v24, %v4759_v18 }
 0x3a7   : > { %v4773_v29 = vadd.f32 %v4772_v19, %v4760_v28 }
 0x3ac   : > { %v4785_v21 = vpop.f32.mrf.mxu2  ;;  %v4761_v36 = vpop.f32.mrf.mxu0 }
 0x3ad   : > { %v4798_v42 = vpop.f32.mrf.mxu3  ;;  %v4774_v23 = vpop.f32.mrf.mxu1  ;;  %v4786_v30 = vadd.f32 %v4785_v21, %v4773_v29 }
 0x3af   : > { %v4799_v32 = vadd.f32 %v4798_v42, %v4786_v30 }
 0x3b4   : > { %v4787_v25 = vpop.f32.mrf.mxu2 }
 0x3b5   : > { %v4800_v27 = vpop.f32.mrf.mxu3 }
 0x3c4   : > { %v4811_v33 = vpop.f32.mrf.mxu0 }
 0x3c5   : > { %v4824_v34 = vpop.f32.mrf.mxu1  ;;  %v4812_v35 = vadd.f32 %v4811_v33, %v4799_v32 }
 0x3c7   : > { %v4825_v37 = vadd.f32 %v4824_v34, %v4812_v35 }
 0x3cc   : > { %v4837_v38 = vpop.f32.mrf.mxu2  ;;  %v4813_v0 = vpop.f32.mrf.mxu0 }
 0x3cd   : > { %v4850_v39 = vpop.f32.mrf.mxu3  ;;  %v4838_v40 = vadd.f32 %v4837_v38, %v4825_v37  ;;  %v4826_v41 = vpop.f32.mrf.mxu1 }
 0x3cf   : > { %v4851_v43 = vadd.f32 %v4850_v39, %v4838_v40 }
 0x3d1   : > { %v4854_v44 = vmul.f32 %v4851_v43, %v4851_v43 }
 0x3d3   : > { %4855 = vadd.xlane.f32.xlu0 %v4854_v44 }
 0x3d4   : > { %v4839_v48 = vpop.f32.mrf.mxu2 }
 0x3d5   : > { %v4852_v8 = vpop.f32.mrf.mxu3 }
 0x446   : > { %v4856_v49 = vpop.xlane.xlu0 %4855 }
 0x447   : > { %v4857_v3 = vmax.f32 %v4856_v49, 1e-24 }
 0x449   : > { %7900 = vrsqrt.f32 %v4857_v3  ;;  %vm4864_vm1 = vweird.f32 %v4857_v3 }
 0x44f   : > { %v7901_v22 = vpop.eup %7900 }
 0x450   : > { %v4859_v50 = vmul.f32 %v7901_v22, %v4857_v3  ;;  %vm4865_vm0 = vweird.f32 %v7901_v22 }
 0x451   : > { %vm4866_vm2 = vmor %vm4864_vm1, %vm4865_vm0 }
 0x452   : > { %v4860_v51 = vmul.f32 %v7901_v22, %v4859_v50 }
 0x454   : > { %v4861_v5 = vmul.f32 0.5, %v4860_v51 }
 0x456   : > { %v4862_v20 = vsub.f32 1.5, %v4861_v5 }
 0x458   : > { %v4863_v52 = vmul.f32 %v7901_v22, %v4862_v20 }
 0x45a   : > { %v4867_v26 = vsel %vm4866_vm2, %v7901_v22, %v4863_v52 }
 0x45b   : > { %v4868_v54 = vmul.f32 %v4867_v26, %v4851_v43 }
 0x45d   : > { %4869 = vst [vmem:[#allocation15] sm:$0xff] %v4868_v54 }
 0x45e PF: > { %p7836_p3 = scmp.eq.s32.totalorder %s8294_s30, 3  ;;  %s4880_s20 = sshll.u32 %s9545_s7, 4  ;;  %s4881_s20 = int_to_ptr.hbm [resolvable:$true] %s4880_s20 }
 0x45f   : > { %s8224_s21 = smov [#allocation15]  }
 0x460   : > { %s4878_s5 = sshll.u32 %s8224_s21, 4  ;;  %s4879_s5 = int_to_ptr.vmem [resolvable:$true] %s4878_s5 }
 0x461   : > { %7801 = dma.vmem_to_hbm [thread:$0]  (%p7836_p3), %s4879_s5, 128, %s4881_s20, [#allocation5]  }
 0x462   : > { %8185 = dma.done.wait (%p7836_p3), [#allocation5], 128  }
 0x463   : > { %8187 = vsyncadd (%p7836_p3), [#allocation5], 4294967168 }
 0x464 PF: > { %s26_s29 = sadd.s32 1, %s8210_s29   ;;  %s9563_s18 = sld [smem:[#allocation23_spill]] }
 0x465   : > { %p23_p4 = scmp.ge.s32.totalorder %s26_s29, 6   ;;  %s9564_s30 = sld [smem:[#allocation22_spill]] }
 0x466   : > { %s9565_s24 = smov %s8194_s25  ;;  %s9566_s25 = smov %s8198_s26 }
 0x467   : > { %s9568_s27 = smov %s8206_s28  ;;  %25 = sbr.rel (!%p23_p4) target bundleno = 14 (0xe), region = 136 }
 0x46a   : > { %s9567_s26 = smov %s9563_s18 }
 0x46b   : > { %s9569_s28 = smov %s9564_s30 }
 0x46c   :  { %4894 = vsyncpa [#allocation4], 1 }
 0x46d   :  { %4896 = vsyncpa [#allocation4 + $0x1], 1 }
 0x46e   :  { %4897 = vsyncpa [#allocation7], 1 }
 0x46f   :  { %4899 = vsyncpa [#allocation7 + $0x1], 1 }
 0x470   :  { %4900 = vsyncpa [#allocation10], 1 }
 0x471   :  { %4902 = vsyncpa [#allocation10 + $0x1], 1 }
 0x472   :  { %4903 = vsyncpa [#allocation13], 1 }
 0x473   :  { %4904 = vsyncpa [#allocation5], 1 }
 0x474   :  { %4906 = vsyncpa [#allocation5 + $0x1], 1 }

</bundles_post_ra>
